<compile_context>
chip_gen: v7x
topology: tpu7x:2x2x1
jax: 0.10.0
libtpu: 0.0.40
codegen_flags: <defaults>
</compile_context>

<pallas_src>
import math
import jax
import jax.numpy as jnp
from jax.experimental import pallas as pl
from jax.experimental.pallas import tpu as pltpu

# ---------------- small, deterministic config ----------------
BATCH = 2
IN_CH = 3
IMG = 56                         # image_size (small)
PATCH = 14                       # DINO patch size
GRID_HW = IMG // PATCH           # 4
NUM_PATCHES = GRID_HW * GRID_HW  # 16
ENC_DIM = 128                    # enc_embed_dim (DINO-small would be 384; small demo)
MLP_RATIO = 2
HIDDEN = ENC_DIM * MLP_RATIO     # 256
OUT_DIM = 128                    # mlp_out_features
NUM_CLASSES = 32
CLS_PAD = 128                    # lane-dense padded class dim
N_DISTRACTORS = 7
N_SAMPLES = N_DISTRACTORS + 1    # 8 (original reference + distractors)
TOTAL_KV = NUM_PATCHES * N_SAMPLES   # 128 key/value rows per batch element
BETA = 0.07
LN_EPS = 1e-6
PATCH_DIM = IN_CH * PATCH * PATCH    # 588
PATCH_DIM_PAD = 640                  # 5 * 128 (zero padded; lane PATCH_DIM carries the bias 1.0)
M_ALL = 2 * BATCH * NUM_PATCHES      # 64 tokens (target then reference)


# ---------------- the single fused Pallas kernel ----------------

def _dipnet_fused_kernel(idx_ref,                      # SMEM (BATCH*N_SAMPLES,) int32
                         x_ref,                        # (M_ALL, PATCH_DIM_PAD) bf16
                         pew_ref,                      # (PATCH_DIM_PAD, ENC_DIM) bf16 (bias folded)
                         w1_ref, b1_ref,               # (ENC_DIM, HIDDEN) bf16, (1, HIDDEN) f32
                         w2_ref,                       # (HIDDEN, OUT_DIM) bf16
                         sb_ref,                       # (3, OUT_DIM) f32: rows = [b2, ln_g, ln_b]
                         v_ref,                        # (BATCH, TOTAL_KV, CLS_PAD) bf16
                         o_ref,                        # out (BATCH, NUM_PATCHES, CLS_PAD) f32
                         post_ref,                     # VMEM scratch (M_ALL, OUT_DIM) bf16
                         k_ref):                       # VMEM scratch (BATCH*TOTAL_KV, OUT_DIM) bf16
    # --- fused patch-embed + projector MLP + LayerNorm + L2 row-normalize ---
    x = x_ref[...]                                                        # bf16
    f = jnp.dot(x, pew_ref[...], preferred_element_type=jnp.float32)      # (M, E) f32, bias folded
    h = jnp.dot(f.astype(jnp.bfloat16), w1_ref[...],
                preferred_element_type=jnp.float32) + b1_ref[...]         # (M, H) f32
    # NOTE: PyTorch nn.GELU is exact-erf; tanh approximation used here.
    # TODO(synk): switch to exact erf GELU once Mosaic erf lowering is verified.
    h = jax.nn.gelu(h, approximate=True)
    y = jnp.dot(h.astype(jnp.bfloat16), w2_ref[...],
                preferred_element_type=jnp.float32)                       # (M, D) f32
    sb = sb_ref[...]
    y = y + sb[0:1, :]                                                    # + b2
    inv_d = 1.0 / OUT_DIM
    s1 = jnp.sum(y, axis=-1, keepdims=True)                               # single reduction pass
    s2 = jnp.sum(y * y, axis=-1, keepdims=True)
    mu = s1 * inv_d
    var = s2 * inv_d - mu * mu
    yhat = (y - mu) * jax.lax.rsqrt(var + LN_EPS)
    post = yhat * sb[1:2, :] + sb[2:3, :]                                 # LayerNorm affine
    # F.normalize(dim=-1, eps=1e-12) == x * rsqrt(max(sum(x*x), 1e-24)); done once for q and k.
    pn = post * jax.lax.rsqrt(
        jnp.maximum(jnp.sum(post * post, axis=-1, keepdims=True), 1e-24))
    post_ref[...] = pn.astype(jnp.bfloat16)

    # --- distractor gather of reference feature blocks (VMEM -> VMEM, tile-aligned) ---
    # post_ref rows [0, BATCH*N) are target tokens, [BATCH*N, 2*BATCH*N) are reference tokens.
    for t in range(BATCH * N_SAMPLES):                # 16 static block copies of (16, 128) bf16
        b = t // N_SAMPLES
        j = t % N_SAMPLES
        src = idx_ref[t]                              # source batch index in [0, BATCH)
        src_start = pl.multiple_of((src + BATCH) * NUM_PATCHES, NUM_PATCHES)
        dst_start = b * TOTAL_KV + j * NUM_PATCHES
        k_ref[pl.ds(dst_start, NUM_PATCHES), :] = post_ref[pl.ds(src_start, NUM_PATCHES), :]

    # --- cosine-similarity cross attention (static per-batch loop) ---
    inv_beta = 1.0 / BETA
    for b in range(BATCH):
        q_b = post_ref[pl.ds(b * NUM_PATCHES, NUM_PATCHES), :]            # (Nq, D) bf16 normalized
        k_b = k_ref[pl.ds(b * TOTAL_KV, TOTAL_KV), :]                     # (Nk, D) bf16 normalized
        s = jnp.einsum('qd,kd->qk', q_b, k_b,
                       preferred_element_type=jnp.float32) * inv_beta     # (Nq, Nk) f32
        # constant shift: cos-sim <= 1  =>  s <= 1/beta, so exp stays bounded (no row-max reduce)
        p = jnp.exp(s - inv_beta)
        p = p * pl.reciprocal(jnp.sum(p, axis=-1, keepdims=True), approx=True)
        o_ref[b] = jnp.dot(p.astype(jnp.bfloat16), v_ref[b],
                           preferred_element_type=jnp.float32)            # (Nq, CLS_PAD) f32


def dipnet_fused_call(idx_flat, x_all, pe_w, w1, b1, w2, sb, v_pad):
    # Single grid step: the whole problem (<1 MiB) is VMEM resident on every generation.
    # TODO(synk): tile over M / enable megacore 'parallel' sharding when the real
    #             12-block backbone (and larger batch) is added.
    return pl.pallas_call(
        _dipnet_fused_kernel,
        out_shape=jax.ShapeDtypeStruct((BATCH, NUM_PATCHES, CLS_PAD), jnp.float32),
        grid_spec=pltpu.PrefetchScalarGridSpec(
            num_scalar_prefetch=1,
            grid=(1,),
            in_specs=[
                pl.BlockSpec((M_ALL, PATCH_DIM_PAD), lambda i, idx: (0, 0)),
                pl.BlockSpec((PATCH_DIM_PAD, ENC_DIM), lambda i, idx: (0, 0)),
                pl.BlockSpec((ENC_DIM, HIDDEN), lambda i, idx: (0, 0)),
                pl.BlockSpec((1, HIDDEN), lambda i, idx: (0, 0)),
                pl.BlockSpec((HIDDEN, OUT_DIM), lambda i, idx: (0, 0)),
                pl.BlockSpec((3, OUT_DIM), lambda i, idx: (0, 0)),
                pl.BlockSpec((BATCH, TOTAL_KV, CLS_PAD), lambda i, idx: (0, 0, 0)),
            ],
            out_specs=pl.BlockSpec((BATCH, NUM_PATCHES, CLS_PAD), lambda i, idx: (0, 0, 0)),
            scratch_shapes=[
                pltpu.VMEM((M_ALL, OUT_DIM), jnp.bfloat16),               # post-LN, L2-normalized feats
                pltpu.VMEM((BATCH * TOTAL_KV, OUT_DIM), jnp.bfloat16),    # gathered keys (distractors)
            ],
        ),
        compiler_params=pltpu.CompilerParams(dimension_semantics=("arbitrary",)),
    )(idx_flat, x_all, pe_w, w1, b1, w2, sb, v_pad)


# ---------------- glue (plain JAX) ----------------

def patchify_img(img):
    bs, c, h, w = img.shape
    g = h // PATCH
    x = img.reshape(bs, c, g, PATCH, g, PATCH)
    x = x.transpose(0, 2, 4, 1, 3, 5).reshape(bs * g * g, c * PATCH * PATCH)
    x = jnp.pad(x, ((0, 0), (0, PATCH_DIM_PAD - PATCH_DIM)))     # 588 -> 640 (5x128)
    x = x.at[:, PATCH_DIM].set(1.0)                              # bias lane (pe_b folded into pe_w)
    return x


def patchify_label(labels):
    # labels: (bs, 1, h, w) int -> (bs, N, num_classes) patch-wise class histograms
    bs, c, h, w = labels.shape
    g = h // PATCH
    x = labels.reshape(bs, c, g, PATCH, g, PATCH)
    x = x.transpose(0, 2, 4, 1, 3, 5).reshape(bs, g, g, c * PATCH * PATCH)
    oh = jax.nn.one_hot(x, NUM_CLASSES, dtype=jnp.float32)
    return oh.mean(axis=3).reshape(bs, g * g, NUM_CLASSES)


def make_distractor_indices(key, bs):
    # idx[b*N_SAMPLES + j] = source batch index for destination (batch b, block j);
    # block 0 is the identity (original reference), blocks 1..7 are random permutations.
    perms = [jnp.arange(bs, dtype=jnp.int32)]
    for _ in range(N_DISTRACTORS):
        key, sub = jax.random.split(key)
        perms.append(jax.random.permutation(sub, bs).astype(jnp.int32))
    src = jnp.stack(perms, axis=0)              # (N_SAMPLES, bs): src[j, b] = perm_j[b]
    return src.T.reshape(-1)                    # (bs * N_SAMPLES,)


def xavier_uniform(key, fan_in, fan_out):
    bound = math.sqrt(6.0 / (fan_in + fan_out))
    return jax.random.uniform(key, (fan_in, fan_out), jnp.float32, -bound, bound)


def init_params(key):
    k_pe, k_w1, k_w2 = jax.random.split(key, 3)
    pe_w = xavier_uniform(k_pe, PATCH_DIM, ENC_DIM)
    pe_b = jnp.zeros((1, ENC_DIM), jnp.float32)
    # fold pe_b into the padded contraction row (matched by the 1.0 bias lane in patchify_img)
    pe_w_folded = jnp.concatenate(
        [pe_w, pe_b, jnp.zeros((PATCH_DIM_PAD - PATCH_DIM - 1, ENC_DIM), jnp.float32)], axis=0)
    return {
        "pe_w": pe_w_folded,                                  # (PATCH_DIM_PAD, ENC_DIM)
        "w1": xavier_uniform(k_w1, ENC_DIM, HIDDEN),
        "b1": jnp.zeros((1, HIDDEN), jnp.float32),
        "w2": xavier_uniform(k_w2, HIDDEN, OUT_DIM),
        "b2": jnp.zeros((1, OUT_DIM), jnp.float32),
        "ln_g": jnp.ones((1, OUT_DIM), jnp.float32),
        "ln_b": jnp.zeros((1, OUT_DIM), jnp.float32),
    }


@jax.jit
def dipnet_forward(params, img_target, img_ref, labels_ref, distractor_key):
    bs, _, h, w = img_target.shape
    eval_res = GRID_HW

    # patchify both images; target tokens then reference tokens
    xt = patchify_img(img_target)                               # (bs*N, Ppad)
    xr = patchify_img(img_ref)
    x_all = jnp.concatenate([xt, xr], axis=0).astype(jnp.bfloat16)   # (2*bs*N, Ppad)

    # ground-truth patch histograms + distractor label augmentation (single gather)
    label = patchify_label(labels_ref)                          # (bs, N, C) f32
    idx_flat = make_distractor_indices(distractor_key, bs)      # (bs*N_SAMPLES,) int32
    label_d = jnp.take(label, idx_flat, axis=0).reshape(bs, TOTAL_KV, NUM_CLASSES)
    label_d_pad = jnp.pad(
        label_d, ((0, 0), (0, 0), (0, CLS_PAD - NUM_CLASSES))).astype(jnp.bfloat16)

    # pack small per-channel params into one (3, D) input: [b2, ln_g, ln_b]
    sb = jnp.concatenate([params["b2"], params["ln_g"], params["ln_b"]], axis=0)

    # one fused kernel: embed -> MLP -> LN -> normalize -> distractor gather -> cross-attn
    label_hat = dipnet_fused_call(
        idx_flat, x_all,
        params["pe_w"].astype(jnp.bfloat16),
        params["w1"].astype(jnp.bfloat16), params["b1"],
        params["w2"].astype(jnp.bfloat16),
        sb, label_d_pad)                                        # (bs, N, CLS_PAD) f32

    # XLA epilogue: slice padded classes, reshape, nearest-neighbour upsample
    label_hat = label_hat[:, :, :NUM_CLASSES]
    label_hat = label_hat.reshape(bs, eval_res, eval_res, NUM_CLASSES).transpose(0, 3, 1, 2)
    rep = h // eval_res
    out = jnp.repeat(jnp.repeat(label_hat, rep, axis=2), rep, axis=3)
    return out


if __name__ == "__main__":
    key = jax.random.PRNGKey(0)
    k_img_t, k_img_r, k_lab, k_w, k_dist = jax.random.split(key, 5)

    img_target = jax.random.normal(k_img_t, (BATCH, IN_CH, IMG, IMG), jnp.float32)
    img_ref = jax.random.normal(k_img_r, (BATCH, IN_CH, IMG, IMG), jnp.float32)
    labels_ref = jax.random.randint(k_lab, (BATCH, 1, IMG, IMG), 0, NUM_CLASSES)

    params = init_params(k_w)
    out = dipnet_forward(params, img_target, img_ref, labels_ref, k_dist)
    out = jax.block_until_ready(out)

    assert out.shape == (BATCH, NUM_CLASSES, IMG, IMG), out.shape
    assert out.dtype == jnp.float32
    assert bool(jnp.all(jnp.isfinite(out)))
    print("KERNEL_OK")
</pallas_src>

<mosaic_0001>
module attributes {stable_mosaic.version = 11 : i64} {
  func.func @_dipnet_fused_kernel(%arg0: i32, %arg1: memref<16xi32, #tpu.memory_space<smem>>, %arg2: memref<64x640xbf16, #tpu.memory_space<vmem>>, %arg3: memref<640x128xbf16, #tpu.memory_space<vmem>>, %arg4: memref<128x256xbf16, #tpu.memory_space<vmem>>, %arg5: memref<1x256xf32, #tpu.memory_space<vmem>>, %arg6: memref<256x128xbf16, #tpu.memory_space<vmem>>, %arg7: memref<3x128xf32, #tpu.memory_space<vmem>>, %arg8: memref<2x128x128xbf16, #tpu.memory_space<vmem>>, %arg9: memref<2x16x128xf32, #tpu.memory_space<vmem>>, %arg10: memref<64x128xbf16, #tpu.memory_space<vmem>>, %arg11: memref<256x128xbf16, #tpu.memory_space<vmem>>) attributes {dimension_semantics = [#tpu.dimension_semantics<arbitrary>], iteration_bounds = array<i64: 1>, scalar_prefetch = 1 : i64, scratch_operands = 2 : i64, tpu.core_type = #tpu.core_type<tc>, window_params = [{pipeline_mode = #tpu.pipeline_mode<synchronous>, transform_indices = @transform_0, window_bounds = array<i64: 64, 640>}, {pipeline_mode = #tpu.pipeline_mode<synchronous>, transform_indices = @transform_1, window_bounds = array<i64: 640, 128>}, {pipeline_mode = #tpu.pipeline_mode<synchronous>, transform_indices = @transform_2, window_bounds = array<i64: 128, 256>}, {pipeline_mode = #tpu.pipeline_mode<synchronous>, transform_indices = @transform_3, window_bounds = array<i64: 1, 256>}, {pipeline_mode = #tpu.pipeline_mode<synchronous>, transform_indices = @transform_4, window_bounds = array<i64: 256, 128>}, {pipeline_mode = #tpu.pipeline_mode<synchronous>, transform_indices = @transform_5, window_bounds = array<i64: 3, 128>}, {pipeline_mode = #tpu.pipeline_mode<synchronous>, transform_indices = @transform_6, window_bounds = array<i64: 2, 128, 128>}, {pipeline_mode = #tpu.pipeline_mode<synchronous>, transform_indices = @transform_7, window_bounds = array<i64: 2, 16, 128>}]} {
    %c0 = arith.constant 0 : index
    %c0_0 = arith.constant 0 : index
    %0 = vector.load %arg2[%c0, %c0_0] : memref<64x640xbf16, #tpu.memory_space<vmem>>, vector<64x640xbf16>
    %c0_1 = arith.constant 0 : index
    %c0_2 = arith.constant 0 : index
    %1 = vector.load %arg3[%c0_1, %c0_2] : memref<640x128xbf16, #tpu.memory_space<vmem>>, vector<640x128xbf16>
    %cst = arith.constant dense<0.000000e+00> : vector<64x128xf32>
    %2 = tpu.matmul %0, %1, %cst {dimension_numbers = #tpu.dot_dimension_numbers<[1], [0], [0], [1], [0, 0, 1, 1], [], []>} : vector<64x640xbf16>, vector<640x128xbf16>, vector<64x128xf32> -> vector<64x128xf32>
    %3 = arith.truncf %2 : vector<64x128xf32> to vector<64x128xbf16>
    %c0_3 = arith.constant 0 : index
    %c0_4 = arith.constant 0 : index
    %4 = vector.load %arg4[%c0_3, %c0_4] : memref<128x256xbf16, #tpu.memory_space<vmem>>, vector<128x256xbf16>
    %cst_5 = arith.constant dense<0.000000e+00> : vector<64x256xf32>
    %5 = tpu.matmul %3, %4, %cst_5 {dimension_numbers = #tpu.dot_dimension_numbers<[1], [0], [0], [1], [0, 0, 1, 1], [], []>} : vector<64x128xbf16>, vector<128x256xbf16>, vector<64x256xf32> -> vector<64x256xf32>
    %c0_6 = arith.constant 0 : index
    %c0_7 = arith.constant 0 : index
    %6 = vector.load %arg5[%c0_6, %c0_7] : memref<1x256xf32, #tpu.memory_space<vmem>>, vector<1x256xf32>
    %7 = vector.broadcast %6 : vector<1x256xf32> to vector<64x256xf32>
    %8 = arith.addf %5, %7 : vector<64x256xf32>
    %9 = arith.mulf %8, %8 : vector<64x256xf32>
    %10 = arith.mulf %8, %9 : vector<64x256xf32>
    %cst_8 = arith.constant 4.471500e-02 : f32
    %11 = vector.broadcast %cst_8 : f32 to vector<64x256xf32>
    %12 = arith.mulf %11, %10 : vector<64x256xf32>
    %13 = arith.addf %8, %12 : vector<64x256xf32>
    %cst_9 = arith.constant 0.797884583 : f32
    %14 = vector.broadcast %cst_9 : f32 to vector<64x256xf32>
    %15 = arith.mulf %14, %13 : vector<64x256xf32>
    %16 = math.tanh %15 : vector<64x256xf32>
    %cst_10 = arith.constant 1.000000e+00 : f32
    %17 = vector.broadcast %cst_10 : f32 to vector<64x256xf32>
    %18 = arith.addf %17, %16 : vector<64x256xf32>
    %cst_11 = arith.constant 5.000000e-01 : f32
    %19 = vector.broadcast %cst_11 : f32 to vector<64x256xf32>
    %20 = arith.mulf %19, %18 : vector<64x256xf32>
    %21 = arith.mulf %8, %20 : vector<64x256xf32>
    %22 = arith.truncf %21 : vector<64x256xf32> to vector<64x256xbf16>
    %c0_12 = arith.constant 0 : index
    %c0_13 = arith.constant 0 : index
    %23 = vector.load %arg6[%c0_12, %c0_13] : memref<256x128xbf16, #tpu.memory_space<vmem>>, vector<256x128xbf16>
    %cst_14 = arith.constant dense<0.000000e+00> : vector<64x128xf32>
    %24 = tpu.matmul %22, %23, %cst_14 {dimension_numbers = #tpu.dot_dimension_numbers<[1], [0], [0], [1], [0, 0, 1, 1], [], []>} : vector<64x256xbf16>, vector<256x128xbf16>, vector<64x128xf32> -> vector<64x128xf32>
    %c0_15 = arith.constant 0 : index
    %c0_16 = arith.constant 0 : index
    %25 = vector.load %arg7[%c0_15, %c0_16] : memref<3x128xf32, #tpu.memory_space<vmem>>, vector<3x128xf32>
    %26 = vector.extract_strided_slice %25 {offsets = [0, 0], sizes = [1, 128], strides = [1, 1]} : vector<3x128xf32> to vector<1x128xf32>
    %27 = vector.broadcast %26 : vector<1x128xf32> to vector<64x128xf32>
    %28 = arith.addf %24, %27 : vector<64x128xf32>
    %cst_17 = arith.constant dense<0.000000e+00> : vector<64xf32>
    %29 = vector.multi_reduction <add>, %28, %cst_17 [1] : vector<64x128xf32> to vector<64xf32>
    %30 = vector.shape_cast %29 : vector<64xf32> to vector<64x1xf32>
    %31 = arith.mulf %28, %28 : vector<64x128xf32>
    %cst_18 = arith.constant dense<0.000000e+00> : vector<64xf32>
    %32 = vector.multi_reduction <add>, %31, %cst_18 [1] : vector<64x128xf32> to vector<64xf32>
    %33 = vector.shape_cast %32 : vector<64xf32> to vector<64x1xf32>
    %cst_19 = arith.constant 7.812500e-03 : f32
    %34 = vector.broadcast %cst_19 : f32 to vector<64x1xf32>
    %35 = arith.mulf %30, %34 : vector<64x1xf32>
    %cst_20 = arith.constant 7.812500e-03 : f32
    %36 = vector.broadcast %cst_20 : f32 to vector<64x1xf32>
    %37 = arith.mulf %33, %36 : vector<64x1xf32>
    %38 = arith.mulf %35, %35 : vector<64x1xf32>
    %39 = arith.subf %37, %38 : vector<64x1xf32>
    %40 = vector.broadcast %35 : vector<64x1xf32> to vector<64x128xf32>
    %41 = arith.subf %28, %40 : vector<64x128xf32>
    %cst_21 = arith.constant 9.99999997E-7 : f32
    %42 = vector.broadcast %cst_21 : f32 to vector<64x1xf32>
    %43 = arith.addf %39, %42 : vector<64x1xf32>
    %44 = math.rsqrt %43 : vector<64x1xf32>
    %45 = vector.broadcast %44 : vector<64x1xf32> to vector<64x128xf32>
    %46 = arith.mulf %41, %45 : vector<64x128xf32>
    %47 = vector.extract_strided_slice %25 {offsets = [1, 0], sizes = [1, 128], strides = [1, 1]} : vector<3x128xf32> to vector<1x128xf32>
    %48 = vector.broadcast %47 : vector<1x128xf32> to vector<64x128xf32>
    %49 = arith.mulf %46, %48 : vector<64x128xf32>
    %50 = vector.extract_strided_slice %25 {offsets = [2, 0], sizes = [1, 128], strides = [1, 1]} : vector<3x128xf32> to vector<1x128xf32>
    %51 = vector.broadcast %50 : vector<1x128xf32> to vector<64x128xf32>
    %52 = arith.addf %49, %51 : vector<64x128xf32>
    %53 = arith.mulf %52, %52 : vector<64x128xf32>
    %cst_22 = arith.constant dense<0.000000e+00> : vector<64xf32>
    %54 = vector.multi_reduction <add>, %53, %cst_22 [1] : vector<64x128xf32> to vector<64xf32>
    %55 = vector.shape_cast %54 : vector<64xf32> to vector<64x1xf32>
    %cst_23 = arith.constant 1.000000e-24 : f32
    %56 = vector.broadcast %cst_23 : f32 to vector<64x1xf32>
    %57 = arith.maximumf %55, %56 : vector<64x1xf32>
    %58 = math.rsqrt %57 : vector<64x1xf32>
    %59 = vector.broadcast %58 : vector<64x1xf32> to vector<64x128xf32>
    %60 = arith.mulf %52, %59 : vector<64x128xf32>
    %61 = arith.truncf %60 : vector<64x128xf32> to vector<64x128xbf16>
    %c0_24 = arith.constant 0 : index
    %c0_25 = arith.constant 0 : index
    %62 = vector.load %arg10[%c0_24, %c0_25] : memref<64x128xbf16, #tpu.memory_space<vmem>>, vector<64x128xbf16>
    tpu.vector_store %arg10[%c0_24, %c0_25], %61 {strides = array<i32>} : memref<64x128xbf16, #tpu.memory_space<vmem>>, vector<64x128xbf16>,
    %c0_26 = arith.constant 0 : index
    %63 = memref.load %arg1[%c0_26] : memref<16xi32, #tpu.memory_space<smem>>
    %c2_i32 = arith.constant 2 : i32
    %64 = arith.addi %63, %c2_i32 : i32
    %c16_i32 = arith.constant 16 : i32
    %65 = arith.muli %64, %c16_i32 : i32
    %66 = tpu.assume_multiple %65, 16 : i32
    %67 = arith.index_cast %66 : i32 to index
    %c0_27 = arith.constant 0 : index
    %68 = vector.load %arg10[%67, %c0_27] : memref<64x128xbf16, #tpu.memory_space<vmem>>, vector<16x128xbf16>
    %c0_28 = arith.constant 0 : index
    %c0_29 = arith.constant 0 : index
    %69 = vector.load %arg11[%c0_28, %c0_29] : memref<256x128xbf16, #tpu.memory_space<vmem>>, vector<16x128xbf16>
    tpu.vector_store %arg11[%c0_28, %c0_29], %68 {strides = array<i32>} : memref<256x128xbf16, #tpu.memory_space<vmem>>, vector<16x128xbf16>,
    %c1 = arith.constant 1 : index
    %70 = memref.load %arg1[%c1] : memref<16xi32, #tpu.memory_space<smem>>
    %c2_i32_30 = arith.constant 2 : i32
    %71 = arith.addi %70, %c2_i32_30 : i32
    %c16_i32_31 = arith.constant 16 : i32
    %72 = arith.muli %71, %c16_i32_31 : i32
    %73 = tpu.assume_multiple %72, 16 : i32
    %74 = arith.index_cast %73 : i32 to index
    %c0_32 = arith.constant 0 : index
    %75 = vector.load %arg10[%74, %c0_32] : memref<64x128xbf16, #tpu.memory_space<vmem>>, vector<16x128xbf16>
    %c16 = arith.constant 16 : index
    %c0_33 = arith.constant 0 : index
    %76 = vector.load %arg11[%c16, %c0_33] : memref<256x128xbf16, #tpu.memory_space<vmem>>, vector<16x128xbf16>
    tpu.vector_store %arg11[%c16, %c0_33], %75 {strides = array<i32>} : memref<256x128xbf16, #tpu.memory_space<vmem>>, vector<16x128xbf16>,
    %c2 = arith.constant 2 : index
    %77 = memref.load %arg1[%c2] : memref<16xi32, #tpu.memory_space<smem>>
    %c2_i32_34 = arith.constant 2 : i32
    %78 = arith.addi %77, %c2_i32_34 : i32
    %c16_i32_35 = arith.constant 16 : i32
    %79 = arith.muli %78, %c16_i32_35 : i32
    %80 = tpu.assume_multiple %79, 16 : i32
    %81 = arith.index_cast %80 : i32 to index
    %c0_36 = arith.constant 0 : index
    %82 = vector.load %arg10[%81, %c0_36] : memref<64x128xbf16, #tpu.memory_space<vmem>>, vector<16x128xbf16>
    %c32 = arith.constant 32 : index
    %c0_37 = arith.constant 0 : index
    %83 = vector.load %arg11[%c32, %c0_37] : memref<256x128xbf16, #tpu.memory_space<vmem>>, vector<16x128xbf16>
    tpu.vector_store %arg11[%c32, %c0_37], %82 {strides = array<i32>} : memref<256x128xbf16, #tpu.memory_space<vmem>>, vector<16x128xbf16>,
    %c3 = arith.constant 3 : index
    %84 = memref.load %arg1[%c3] : memref<16xi32, #tpu.memory_space<smem>>
    %c2_i32_38 = arith.constant 2 : i32
    %85 = arith.addi %84, %c2_i32_38 : i32
    %c16_i32_39 = arith.constant 16 : i32
    %86 = arith.muli %85, %c16_i32_39 : i32
    %87 = tpu.assume_multiple %86, 16 : i32
    %88 = arith.index_cast %87 : i32 to index
    %c0_40 = arith.constant 0 : index
    %89 = vector.load %arg10[%88, %c0_40] : memref<64x128xbf16, #tpu.memory_space<vmem>>, vector<16x128xbf16>
    %c48 = arith.constant 48 : index
    %c0_41 = arith.constant 0 : index
    %90 = vector.load %arg11[%c48, %c0_41] : memref<256x128xbf16, #tpu.memory_space<vmem>>, vector<16x128xbf16>
    tpu.vector_store %arg11[%c48, %c0_41], %89 {strides = array<i32>} : memref<256x128xbf16, #tpu.memory_space<vmem>>, vector<16x128xbf16>,
    %c4 = arith.constant 4 : index
    %91 = memref.load %arg1[%c4] : memref<16xi32, #tpu.memory_space<smem>>
    %c2_i32_42 = arith.constant 2 : i32
    %92 = arith.addi %91, %c2_i32_42 : i32
    %c16_i32_43 = arith.constant 16 : i32
    %93 = arith.muli %92, %c16_i32_43 : i32
    %94 = tpu.assume_multiple %93, 16 : i32
    %95 = arith.index_cast %94 : i32 to index
    %c0_44 = arith.constant 0 : index
    %96 = vector.load %arg10[%95, %c0_44] : memref<64x128xbf16, #tpu.memory_space<vmem>>, vector<16x128xbf16>
    %c64 = arith.constant 64 : index
    %c0_45 = arith.constant 0 : index
    %97 = vector.load %arg11[%c64, %c0_45] : memref<256x128xbf16, #tpu.memory_space<vmem>>, vector<16x128xbf16>
    tpu.vector_store %arg11[%c64, %c0_45], %96 {strides = array<i32>} : memref<256x128xbf16, #tpu.memory_space<vmem>>, vector<16x128xbf16>,
    %c5 = arith.constant 5 : index
    %98 = memref.load %arg1[%c5] : memref<16xi32, #tpu.memory_space<smem>>
    %c2_i32_46 = arith.constant 2 : i32
    %99 = arith.addi %98, %c2_i32_46 : i32
    %c16_i32_47 = arith.constant 16 : i32
    %100 = arith.muli %99, %c16_i32_47 : i32
    %101 = tpu.assume_multiple %100, 16 : i32
    %102 = arith.index_cast %101 : i32 to index
    %c0_48 = arith.constant 0 : index
    %103 = vector.load %arg10[%102, %c0_48] : memref<64x128xbf16, #tpu.memory_space<vmem>>, vector<16x128xbf16>
    %c80 = arith.constant 80 : index
    %c0_49 = arith.constant 0 : index
    %104 = vector.load %arg11[%c80, %c0_49] : memref<256x128xbf16, #tpu.memory_space<vmem>>, vector<16x128xbf16>
    tpu.vector_store %arg11[%c80, %c0_49], %103 {strides = array<i32>} : memref<256x128xbf16, #tpu.memory_space<vmem>>, vector<16x128xbf16>,
    %c6 = arith.constant 6 : index
    %105 = memref.load %arg1[%c6] : memref<16xi32, #tpu.memory_space<smem>>
    %c2_i32_50 = arith.constant 2 : i32
    %106 = arith.addi %105, %c2_i32_50 : i32
    %c16_i32_51 = arith.constant 16 : i32
    %107 = arith.muli %106, %c16_i32_51 : i32
    %108 = tpu.assume_multiple %107, 16 : i32
    %109 = arith.index_cast %108 : i32 to index
    %c0_52 = arith.constant 0 : index
    %110 = vector.load %arg10[%109, %c0_52] : memref<64x128xbf16, #tpu.memory_space<vmem>>, vector<16x128xbf16>
    %c96 = arith.constant 96 : index
    %c0_53 = arith.constant 0 : index
    %111 = vector.load %arg11[%c96, %c0_53] : memref<256x128xbf16, #tpu.memory_space<vmem>>, vector<16x128xbf16>
    tpu.vector_store %arg11[%c96, %c0_53], %110 {strides = array<i32>} : memref<256x128xbf16, #tpu.memory_space<vmem>>, vector<16x128xbf16>,
    %c7 = arith.constant 7 : index
    %112 = memref.load %arg1[%c7] : memref<16xi32, #tpu.memory_space<smem>>
    %c2_i32_54 = arith.constant 2 : i32
    %113 = arith.addi %112, %c2_i32_54 : i32
    %c16_i32_55 = arith.constant 16 : i32
    %114 = arith.muli %113, %c16_i32_55 : i32
    %115 = tpu.assume_multiple %114, 16 : i32
    %116 = arith.index_cast %115 : i32 to index
    %c0_56 = arith.constant 0 : index
    %117 = vector.load %arg10[%116, %c0_56] : memref<64x128xbf16, #tpu.memory_space<vmem>>, vector<16x128xbf16>
    %c112 = arith.constant 112 : index
    %c0_57 = arith.constant 0 : index
    %118 = vector.load %arg11[%c112, %c0_57] : memref<256x128xbf16, #tpu.memory_space<vmem>>, vector<16x128xbf16>
    tpu.vector_store %arg11[%c112, %c0_57], %117 {strides = array<i32>} : memref<256x128xbf16, #tpu.memory_space<vmem>>, vector<16x128xbf16>,
    %c8 = arith.constant 8 : index
    %119 = memref.load %arg1[%c8] : memref<16xi32, #tpu.memory_space<smem>>
    %c2_i32_58 = arith.constant 2 : i32
    %120 = arith.addi %119, %c2_i32_58 : i32
    %c16_i32_59 = arith.constant 16 : i32
    %121 = arith.muli %120, %c16_i32_59 : i32
    %122 = tpu.assume_multiple %121, 16 : i32
    %123 = arith.index_cast %122 : i32 to index
    %c0_60 = arith.constant 0 : index
    %124 = vector.load %arg10[%123, %c0_60] : memref<64x128xbf16, #tpu.memory_space<vmem>>, vector<16x128xbf16>
    %c128 = arith.constant 128 : index
    %c0_61 = arith.constant 0 : index
    %125 = vector.load %arg11[%c128, %c0_61] : memref<256x128xbf16, #tpu.memory_space<vmem>>, vector<16x128xbf16>
    tpu.vector_store %arg11[%c128, %c0_61], %124 {strides = array<i32>} : memref<256x128xbf16, #tpu.memory_space<vmem>>, vector<16x128xbf16>,
    %c9 = arith.constant 9 : index
    %126 = memref.load %arg1[%c9] : memref<16xi32, #tpu.memory_space<smem>>
    %c2_i32_62 = arith.constant 2 : i32
    %127 = arith.addi %126, %c2_i32_62 : i32
    %c16_i32_63 = arith.constant 16 : i32
    %128 = arith.muli %127, %c16_i32_63 : i32
    %129 = tpu.assume_multiple %128, 16 : i32
    %130 = arith.index_cast %129 : i32 to index
    %c0_64 = arith.constant 0 : index
    %131 = vector.load %arg10[%130, %c0_64] : memref<64x128xbf16, #tpu.memory_space<vmem>>, vector<16x128xbf16>
    %c144 = arith.constant 144 : index
    %c0_65 = arith.constant 0 : index
    %132 = vector.load %arg11[%c144, %c0_65] : memref<256x128xbf16, #tpu.memory_space<vmem>>, vector<16x128xbf16>
    tpu.vector_store %arg11[%c144, %c0_65], %131 {strides = array<i32>} : memref<256x128xbf16, #tpu.memory_space<vmem>>, vector<16x128xbf16>,
    %c10 = arith.constant 10 : index
    %133 = memref.load %arg1[%c10] : memref<16xi32, #tpu.memory_space<smem>>
    %c2_i32_66 = arith.constant 2 : i32
    %134 = arith.addi %133, %c2_i32_66 : i32
    %c16_i32_67 = arith.constant 16 : i32
    %135 = arith.muli %134, %c16_i32_67 : i32
    %136 = tpu.assume_multiple %135, 16 : i32
    %137 = arith.index_cast %136 : i32 to index
    %c0_68 = arith.constant 0 : index
    %138 = vector.load %arg10[%137, %c0_68] : memref<64x128xbf16, #tpu.memory_space<vmem>>, vector<16x128xbf16>
    %c160 = arith.constant 160 : index
    %c0_69 = arith.constant 0 : index
    %139 = vector.load %arg11[%c160, %c0_69] : memref<256x128xbf16, #tpu.memory_space<vmem>>, vector<16x128xbf16>
    tpu.vector_store %arg11[%c160, %c0_69], %138 {strides = array<i32>} : memref<256x128xbf16, #tpu.memory_space<vmem>>, vector<16x128xbf16>,
    %c11 = arith.constant 11 : index
    %140 = memref.load %arg1[%c11] : memref<16xi32, #tpu.memory_space<smem>>
    %c2_i32_70 = arith.constant 2 : i32
    %141 = arith.addi %140, %c2_i32_70 : i32
    %c16_i32_71 = arith.constant 16 : i32
    %142 = arith.muli %141, %c16_i32_71 : i32
    %143 = tpu.assume_multiple %142, 16 : i32
    %144 = arith.index_cast %143 : i32 to index
    %c0_72 = arith.constant 0 : index
    %145 = vector.load %arg10[%144, %c0_72] : memref<64x128xbf16, #tpu.memory_space<vmem>>, vector<16x128xbf16>
    %c176 = arith.constant 176 : index
    %c0_73 = arith.constant 0 : index
    %146 = vector.load %arg11[%c176, %c0_73] : memref<256x128xbf16, #tpu.memory_space<vmem>>, vector<16x128xbf16>
    tpu.vector_store %arg11[%c176, %c0_73], %145 {strides = array<i32>} : memref<256x128xbf16, #tpu.memory_space<vmem>>, vector<16x128xbf16>,
    %c12 = arith.constant 12 : index
    %147 = memref.load %arg1[%c12] : memref<16xi32, #tpu.memory_space<smem>>
    %c2_i32_74 = arith.constant 2 : i32
    %148 = arith.addi %147, %c2_i32_74 : i32
    %c16_i32_75 = arith.constant 16 : i32
    %149 = arith.muli %148, %c16_i32_75 : i32
    %150 = tpu.assume_multiple %149, 16 : i32
    %151 = arith.index_cast %150 : i32 to index
    %c0_76 = arith.constant 0 : index
    %152 = vector.load %arg10[%151, %c0_76] : memref<64x128xbf16, #tpu.memory_space<vmem>>, vector<16x128xbf16>
    %c192 = arith.constant 192 : index
    %c0_77 = arith.constant 0 : index
    %153 = vector.load %arg11[%c192, %c0_77] : memref<256x128xbf16, #tpu.memory_space<vmem>>, vector<16x128xbf16>
    tpu.vector_store %arg11[%c192, %c0_77], %152 {strides = array<i32>} : memref<256x128xbf16, #tpu.memory_space<vmem>>, vector<16x128xbf16>,
    %c13 = arith.constant 13 : index
    %154 = memref.load %arg1[%c13] : memref<16xi32, #tpu.memory_space<smem>>
    %c2_i32_78 = arith.constant 2 : i32
    %155 = arith.addi %154, %c2_i32_78 : i32
    %c16_i32_79 = arith.constant 16 : i32
    %156 = arith.muli %155, %c16_i32_79 : i32
    %157 = tpu.assume_multiple %156, 16 : i32
    %158 = arith.index_cast %157 : i32 to index
    %c0_80 = arith.constant 0 : index
    %159 = vector.load %arg10[%158, %c0_80] : memref<64x128xbf16, #tpu.memory_space<vmem>>, vector<16x128xbf16>
    %c208 = arith.constant 208 : index
    %c0_81 = arith.constant 0 : index
    %160 = vector.load %arg11[%c208, %c0_81] : memref<256x128xbf16, #tpu.memory_space<vmem>>, vector<16x128xbf16>
    tpu.vector_store %arg11[%c208, %c0_81], %159 {strides = array<i32>} : memref<256x128xbf16, #tpu.memory_space<vmem>>, vector<16x128xbf16>,
    %c14 = arith.constant 14 : index
    %161 = memref.load %arg1[%c14] : memref<16xi32, #tpu.memory_space<smem>>
    %c2_i32_82 = arith.constant 2 : i32
    %162 = arith.addi %161, %c2_i32_82 : i32
    %c16_i32_83 = arith.constant 16 : i32
    %163 = arith.muli %162, %c16_i32_83 : i32
    %164 = tpu.assume_multiple %163, 16 : i32
    %165 = arith.index_cast %164 : i32 to index
    %c0_84 = arith.constant 0 : index
    %166 = vector.load %arg10[%165, %c0_84] : memref<64x128xbf16, #tpu.memory_space<vmem>>, vector<16x128xbf16>
    %c224 = arith.constant 224 : index
    %c0_85 = arith.constant 0 : index
    %167 = vector.load %arg11[%c224, %c0_85] : memref<256x128xbf16, #tpu.memory_space<vmem>>, vector<16x128xbf16>
    tpu.vector_store %arg11[%c224, %c0_85], %166 {strides = array<i32>} : memref<256x128xbf16, #tpu.memory_space<vmem>>, vector<16x128xbf16>,
    %c15 = arith.constant 15 : index
    %168 = memref.load %arg1[%c15] : memref<16xi32, #tpu.memory_space<smem>>
    %c2_i32_86 = arith.constant 2 : i32
    %169 = arith.addi %168, %c2_i32_86 : i32
    %c16_i32_87 = arith.constant 16 : i32
    %170 = arith.muli %169, %c16_i32_87 : i32
    %171 = tpu.assume_multiple %170, 16 : i32
    %172 = arith.index_cast %171 : i32 to index
    %c0_88 = arith.constant 0 : index
    %173 = vector.load %arg10[%172, %c0_88] : memref<64x128xbf16, #tpu.memory_space<vmem>>, vector<16x128xbf16>
    %c240 = arith.constant 240 : index
    %c0_89 = arith.constant 0 : index
    %174 = vector.load %arg11[%c240, %c0_89] : memref<256x128xbf16, #tpu.memory_space<vmem>>, vector<16x128xbf16>
    tpu.vector_store %arg11[%c240, %c0_89], %173 {strides = array<i32>} : memref<256x128xbf16, #tpu.memory_space<vmem>>, vector<16x128xbf16>,
    %c0_90 = arith.constant 0 : index
    %c0_91 = arith.constant 0 : index
    %175 = vector.load %arg10[%c0_90, %c0_91] : memref<64x128xbf16, #tpu.memory_space<vmem>>, vector<16x128xbf16>
    %c0_92 = arith.constant 0 : index
    %c0_93 = arith.constant 0 : index
    %176 = vector.load %arg11[%c0_92, %c0_93] : memref<256x128xbf16, #tpu.memory_space<vmem>>, vector<128x128xbf16>
    "tpu.trace_start"() <{level = 10 : i32, message = "qd,kd->qk"}> : () -> ()
    %cst_94 = arith.constant dense<0.000000e+00> : vector<16x128xf32>
    %177 = tpu.matmul %175, %176, %cst_94 {dimension_numbers = #tpu.dot_dimension_numbers<[1], [1], [0], [0], [0, 0, 1, 0], [], []>} : vector<16x128xbf16>, vector<128x128xbf16>, vector<16x128xf32> -> vector<16x128xf32>
    "tpu.trace_stop"() : () -> ()
    %cst_95 = arith.constant 14.2857141 : f32
    %178 = vector.broadcast %cst_95 : f32 to vector<16x128xf32>
    %179 = arith.mulf %177, %178 : vector<16x128xf32>
    %cst_96 = arith.constant 14.2857141 : f32
    %180 = vector.broadcast %cst_96 : f32 to vector<16x128xf32>
    %181 = arith.subf %179, %180 : vector<16x128xf32>
    %182 = math.exp %181 : vector<16x128xf32>
    %cst_97 = arith.constant dense<0.000000e+00> : vector<16xf32>
    %183 = vector.multi_reduction <add>, %182, %cst_97 [1] : vector<16x128xf32> to vector<16xf32>
    %184 = vector.shape_cast %183 : vector<16xf32> to vector<16x1xf32>
    %185 = tpu.reciprocal %184 {approx = true} : vector<16x1xf32> -> vector<16x1xf32>
    %186 = vector.broadcast %185 : vector<16x1xf32> to vector<16x128xf32>
    %187 = arith.mulf %182, %186 : vector<16x128xf32>
    %188 = arith.truncf %187 : vector<16x128xf32> to vector<16x128xbf16>
    %c0_98 = arith.constant 0 : index
    %c0_99 = arith.constant 0 : index
    %c0_100 = arith.constant 0 : index
    %189 = vector.load %arg8[%c0_98, %c0_99, %c0_100] : memref<2x128x128xbf16, #tpu.memory_space<vmem>>, vector<1x128x128xbf16>
    %190 = vector.shape_cast %189 : vector<1x128x128xbf16> to vector<128x128xbf16>
    %cst_101 = arith.constant dense<0.000000e+00> : vector<16x128xf32>
    %191 = tpu.matmul %188, %190, %cst_101 {dimension_numbers = #tpu.dot_dimension_numbers<[1], [0], [0], [1], [0, 0, 1, 1], [], []>} : vector<16x128xbf16>, vector<128x128xbf16>, vector<16x128xf32> -> vector<16x128xf32>
    %c0_102 = arith.constant 0 : index
    %c0_103 = arith.constant 0 : index
    %c0_104 = arith.constant 0 : index
    %192 = vector.load %arg9[%c0_102, %c0_103, %c0_104] : memref<2x16x128xf32, #tpu.memory_space<vmem>>, vector<1x16x128xf32>
    %193 = vector.shape_cast %192 : vector<1x16x128xf32> to vector<16x128xf32>
    %194 = vector.shape_cast %191 : vector<16x128xf32> to vector<1x16x128xf32>
    tpu.vector_store %arg9[%c0_102, %c0_103, %c0_104], %194 {strides = array<i32>} : memref<2x16x128xf32, #tpu.memory_space<vmem>>, vector<1x16x128xf32>,
    %c16_105 = arith.constant 16 : index
    %c0_106 = arith.constant 0 : index
    %195 = vector.load %arg10[%c16_105, %c0_106] : memref<64x128xbf16, #tpu.memory_space<vmem>>, vector<16x128xbf16>
    %c128_107 = arith.constant 128 : index
    %c0_108 = arith.constant 0 : index
    %196 = vector.load %arg11[%c128_107, %c0_108] : memref<256x128xbf16, #tpu.memory_space<vmem>>, vector<128x128xbf16>
    "tpu.trace_start"() <{level = 10 : i32, message = "qd,kd->qk"}> : () -> ()
    %cst_109 = arith.constant dense<0.000000e+00> : vector<16x128xf32>
    %197 = tpu.matmul %195, %196, %cst_109 {dimension_numbers = #tpu.dot_dimension_numbers<[1], [1], [0], [0], [0, 0, 1, 0], [], []>} : vector<16x128xbf16>, vector<128x128xbf16>, vector<16x128xf32> -> vector<16x128xf32>
    "tpu.trace_stop"() : () -> ()
    %cst_110 = arith.constant 14.2857141 : f32
    %198 = vector.broadcast %cst_110 : f32 to vector<16x128xf32>
    %199 = arith.mulf %197, %198 : vector<16x128xf32>
    %cst_111 = arith.constant 14.2857141 : f32
    %200 = vector.broadcast %cst_111 : f32 to vector<16x128xf32>
    %201 = arith.subf %199, %200 : vector<16x128xf32>
    %202 = math.exp %201 : vector<16x128xf32>
    %cst_112 = arith.constant dense<0.000000e+00> : vector<16xf32>
    %203 = vector.multi_reduction <add>, %202, %cst_112 [1] : vector<16x128xf32> to vector<16xf32>
    %204 = vector.shape_cast %203 : vector<16xf32> to vector<16x1xf32>
    %205 = tpu.reciprocal %204 {approx = true} : vector<16x1xf32> -> vector<16x1xf32>
    %206 = vector.broadcast %205 : vector<16x1xf32> to vector<16x128xf32>
    %207 = arith.mulf %202, %206 : vector<16x128xf32>
    %208 = arith.truncf %207 : vector<16x128xf32> to vector<16x128xbf16>
    %c1_113 = arith.constant 1 : index
    %c0_114 = arith.constant 0 : index
    %c0_115 = arith.constant 0 : index
    %209 = vector.load %arg8[%c1_113, %c0_114, %c0_115] : memref<2x128x128xbf16, #tpu.memory_space<vmem>>, vector<1x128x128xbf16>
    %210 = vector.shape_cast %209 : vector<1x128x128xbf16> to vector<128x128xbf16>
    %cst_116 = arith.constant dense<0.000000e+00> : vector<16x128xf32>
    %211 = tpu.matmul %208, %210, %cst_116 {dimension_numbers = #tpu.dot_dimension_numbers<[1], [0], [0], [1], [0, 0, 1, 1], [], []>} : vector<16x128xbf16>, vector<128x128xbf16>, vector<16x128xf32> -> vector<16x128xf32>
    %c1_117 = arith.constant 1 : index
    %c0_118 = arith.constant 0 : index
    %c0_119 = arith.constant 0 : index
    %212 = vector.load %arg9[%c1_117, %c0_118, %c0_119] : memref<2x16x128xf32, #tpu.memory_space<vmem>>, vector<1x16x128xf32>
    %213 = vector.shape_cast %212 : vector<1x16x128xf32> to vector<16x128xf32>
    %214 = vector.shape_cast %211 : vector<16x128xf32> to vector<1x16x128xf32>
    tpu.vector_store %arg9[%c1_117, %c0_118, %c0_119], %214 {strides = array<i32>} : memref<2x16x128xf32, #tpu.memory_space<vmem>>, vector<1x16x128xf32>,
    return
  }
  func.func @transform_0(%arg0: i32, %arg1: memref<16xi32, #tpu.memory_space<smem>>) -> (i32, i32) {
    %c0_i32 = arith.constant 0 : i32
    %c0_i32_0 = arith.constant 0 : i32
    %c0_i32_1 = arith.constant 0 : i32
    return %c0_i32, %c0_i32_0 : i32, i32
  }
  func.func @transform_1(%arg0: i32, %arg1: memref<16xi32, #tpu.memory_space<smem>>) -> (i32, i32) {
    %c0_i32 = arith.constant 0 : i32
    %c0_i32_0 = arith.constant 0 : i32
    %c0_i32_1 = arith.constant 0 : i32
    return %c0_i32, %c0_i32_0 : i32, i32
  }
  func.func @transform_2(%arg0: i32, %arg1: memref<16xi32, #tpu.memory_space<smem>>) -> (i32, i32) {
    %c0_i32 = arith.constant 0 : i32
    %c0_i32_0 = arith.constant 0 : i32
    %c0_i32_1 = arith.constant 0 : i32
    return %c0_i32, %c0_i32_0 : i32, i32
  }
  func.func @transform_3(%arg0: i32, %arg1: memref<16xi32, #tpu.memory_space<smem>>) -> (i32, i32) {
    %c0_i32 = arith.constant 0 : i32
    %c0_i32_0 = arith.constant 0 : i32
    %c0_i32_1 = arith.constant 0 : i32
    return %c0_i32, %c0_i32_0 : i32, i32
  }
  func.func @transform_4(%arg0: i32, %arg1: memref<16xi32, #tpu.memory_space<smem>>) -> (i32, i32) {
    %c0_i32 = arith.constant 0 : i32
    %c0_i32_0 = arith.constant 0 : i32
    %c0_i32_1 = arith.constant 0 : i32
    return %c0_i32, %c0_i32_0 : i32, i32
  }
  func.func @transform_5(%arg0: i32, %arg1: memref<16xi32, #tpu.memory_space<smem>>) -> (i32, i32) {
    %c0_i32 = arith.constant 0 : i32
    %c0_i32_0 = arith.constant 0 : i32
    %c0_i32_1 = arith.constant 0 : i32
    return %c0_i32, %c0_i32_0 : i32, i32
  }
  func.func @transform_6(%arg0: i32, %arg1: memref<16xi32, #tpu.memory_space<smem>>) -> (i32, i32, i32) {
    %c0_i32 = arith.constant 0 : i32
    %c0_i32_0 = arith.constant 0 : i32
    %c0_i32_1 = arith.constant 0 : i32
    %c0_i32_2 = arith.constant 0 : i32
    return %c0_i32, %c0_i32_0, %c0_i32_1 : i32, i32, i32
  }
  func.func @transform_7(%arg0: i32, %arg1: memref<16xi32, #tpu.memory_space<smem>>) -> (i32, i32, i32) {
    %c0_i32 = arith.constant 0 : i32
    %c0_i32_0 = arith.constant 0 : i32
    %c0_i32_1 = arith.constant 0 : i32
    %c0_i32_2 = arith.constant 0 : i32
    return %c0_i32, %c0_i32_0, %c0_i32_1 : i32, i32, i32
  }
}

</mosaic_0001>

<bundles_post_ra>
// kernel: eq.1
= control target key start
LH: loop header
LB: loop body
LE: loop exit
PB: predicated region body
PF: predicated region fallthrough
CT: control target
= control target key end

     0   :  { %vm6_vm0 = vcmask 1043458   ;;  %vm10_vm1 = vcmask 1045508   ;;  %s189_s6 = smov 3  ;;  %vm14_vm2 = vcmask 1047558   ;;  %vm125_vm3 = vcmask 15360   ;;  %s192_s9 = smov 12  ;;  %s2954_s0 = inlined_call_operand.vmem [shape: s32[2,4,4,1,14,14], index: 0, kind: input, shape index: {}]   ;;  %s2955_s1 = inlined_call_operand.vmem [shape: s32[2,4,4,196], index: 1, kind: output, shape index: {}]  }
   0x1   :  { %v1617_v0 = vld [vmem:[%s2954_s0 + $0x109] ss:$16 sm:%s189_s6]   ;;  %s197_s10 = smov 48  ;;  %s202_s15 = smov 192  ;;  %vm129_vm4 = vcmask 97280   ;;  %vm16_vm5 = vcmask 113664  }
   0x2   :  { %v1618_v1 = vld [vmem:[%s2954_s0 + $0x109] ss:$16 sm:%s192_s9]   ;;  %s207_s16 = smov 3  ;;  %s210_s21 = smov 12  ;;  %vm134_vm6 = vcmask 1048560   ;;  %vm308_vm7 = vcmask 1032064  }
   0x3   :  { %v1619_v2 = vld [vmem:[%s2954_s0 + $0x109] ss:$16 sm:%s197_s10]   ;;  %v195_v3 = vsel %vm6_vm0, %v1618_v1, %v1617_v0  ;;  %s215_s22 = smov 48  ;;  %s220_s27 = smov 192  ;;  %vm407_vm8 = vcmask 917264   ;;  %vm506_vm9 = vcmask 802464  }
   0x4   :  { %v1620_v4 = vld [vmem:[%s2954_s0 + $0x109] ss:$16 sm:%s202_s15]   ;;  %v200_v6 = vsel %vm10_vm1, %v1619_v2, %v195_v3  ;;  %s90_s28 = smov 3  ;;  %s93_s4 = smov 12  ;;  %vm605_vm10 = vcmask 687664   ;;  %vm704_vm11 = vcmask 572864  }
   0x5   :  { %v1621_v5 = vld [vmem:[%s2954_s0 + $0x109] ss:$16 sm:%s207_s16]   ;;  %v205_v9 = vsel %vm14_vm2, %v1620_v4, %v200_v6  ;;  %s98_s5 = smov 48  ;;  %s103_s10 = smov 192  ;;  %vm803_vm12 = vcmask 556464   ;;  %vm903_vm13 = vcmask 458064  }
   0x6   :  { %v1622_v7 = vld [vmem:[%s2954_s0 + $0x109] ss:$16 sm:%s210_s21]   ;;  %s108_s11 = smov 3  ;;  %s111_s16 = smov 12  ;;  %vm1002_vm14 = vcmask 441664   ;;  %vm1102_vm15 = vcmask 343264  }
   0x7   :  { %v1623_v8 = vld [vmem:[%s2954_s0 + $0x109] ss:$16 sm:%s215_s22]   ;;  %v213_v10 = vsel %vm6_vm0, %v1622_v7, %v1621_v5  ;;  %s116_s17 = smov 48  ;;  %s121_s22 = smov 192 }
   0x8   :  { %v1624_v11 = vld [vmem:[%s2954_s0 + $0x109] ss:$16 sm:%s220_s27]   ;;  %v218_v13 = vsel %vm10_vm1, %v1623_v8, %v213_v10  ;;  %s239_s23 = smov 3  ;;  %s1853_s24 = smov 126  }
   0x9   :  { %v1601_v12 = vld [vmem:[%s2954_s0 + $0x9] ss:$16 sm:%s90_s28]   ;;  %v223_v16 = vsel %vm14_vm2, %v1624_v11, %v218_v13  ;;  %s242_s27 = smov 12  ;;  %s247_s28 = smov 48 }
   0xa   :  { %v1602_v14 = vld [vmem:[%s2954_s0 + $0x9] ss:$16 sm:%s93_s4]   ;;  %v225_v20 = vsel %vm125_vm3, %v223_v16, %v205_v9  ;;  %s252_s4 = smov 192  ;;  %s142_s20 = smov 12 }
   0xb   :  { %v1603_v15 = vld [vmem:[%s2954_s0 + $0x9] ss:$16 sm:%s98_s5]   ;;  %v96_v17 = vsel %vm6_vm0, %v1602_v14, %v1601_v12  ;;  %226 = vrot.lane.b32.xlu1 %v225_v20, %s1853_s24  ;;  %s257_s5 = smov 3  ;;  %s147_s21 = smov 48 }
   0xc   :  { %v1604_v18 = vld [vmem:[%s2954_s0 + $0x9] ss:$16 sm:%s103_s10]   ;;  %v101_v21 = vsel %vm10_vm1, %v1603_v15, %v96_v17  ;;  %s260_s10 = smov 12  ;;  %s313_s13 = smov 3 }
   0xd   :  { %v1605_v19 = vld [vmem:[%s2954_s0 + $0x9] ss:$16 sm:%s108_s11]   ;;  %v106_v24 = vsel %vm14_vm2, %v1604_v18, %v101_v21  ;;  %s265_s11 = smov 48  ;;  %s316_s14 = smov 12  ;;  %v1637_v58 = vld [vmem:[%s2954_s0 + $0x88] ss:$16 sm:%s313_s13]  }
   0xe   :  { %v1606_v22 = vld [vmem:[%s2954_s0 + $0x9] ss:$16 sm:%s111_s16]   ;;  %s270_s16 = smov 192  ;;  %s321_s19 = smov 48  ;;  %v1638_v59 = vld [vmem:[%s2954_s0 + $0x88] ss:$16 sm:%s316_s14]  }
   0xf   :  { %v1607_v23 = vld [vmem:[%s2954_s0 + $0x9] ss:$16 sm:%s116_s17]   ;;  %v114_v25 = vsel %vm6_vm0, %v1606_v22, %v1605_v19  ;;  %s139_s17 = smov 3  ;;  %s289_s26 = smov 3  ;;  %v319_v61 = vsel %vm6_vm0, %v1638_v59, %v1637_v58  ;;  %v1639_v62 = vld [vmem:[%s2954_s0 + $0x88] ss:$16 sm:%s321_s19]  }
  0x10   :  { %v1608_v26 = vld [vmem:[%s2954_s0 + $0x9] ss:$16 sm:%s121_s22]   ;;  %v119_v27 = vsel %vm10_vm1, %v1607_v23, %v114_v25  ;;  %s297_s3 = smov 48  ;;  %v324_v1 = vsel %vm10_vm1, %v1639_v62, %v319_v61  ;;  %v1633_v2 = vld [vmem:[%s2954_s0 + $0x8] ss:$16 sm:%s289_s26]   ;;  %s363_s9 = smov 3 }
  0x11   :  { %v1625_v28 = vld [vmem:[%s2954_s0 + $0x189] ss:$16 sm:%s239_s23]   ;;  %v124_v30 = vsel %vm14_vm2, %v1608_v26, %v119_v27  ;;  %v1635_v6 = vld [vmem:[%s2954_s0 + $0x8] ss:$16 sm:%s297_s3]   ;;  %s371_s12 = smov 48  ;;  %s376_s13 = smov 192 }
  0x12   :  { %v1626_v29 = vld [vmem:[%s2954_s0 + $0x189] ss:$16 sm:%s242_s27]   ;;  %v126_v34 = vsel %vm125_vm3, %v124_v30, %v106_v24  ;;  %s152_s27 = smov 192  ;;  %s1854_s14 = smov 112   ;;  %v1645_v10 = vld [vmem:[%s2954_s0 + $0x188] ss:$16 sm:%s363_s9]  }
  0x13   :  { %v245_v31 = vsel %vm6_vm0, %v1626_v29, %v1625_v28  ;;  %v1627_v32 = vld [vmem:[%s2954_s0 + $0x189] ss:$16 sm:%s247_s28]   ;;  %127 = vrot.lane.b32.xlu0 %v126_v34, %s1853_s24  ;;  %s157_s28 = smov 3  ;;  %s341_s22 = smov 12 }
  0x14   :  { %v1628_v33 = vld [vmem:[%s2954_s0 + $0x189] ss:$16 sm:%s252_s4]   ;;  %v250_v35 = vsel %vm10_vm1, %v1627_v32, %v245_v31  ;;  %s160_s4 = smov 12  ;;  %s346_s23 = smov 48  ;;  %v1647_v13 = vld [vmem:[%s2954_s0 + $0x188] ss:$16 sm:%s371_s12]  }
  0x15   :  { %v1629_v36 = vld [vmem:[%s2954_s0 + $0x189] ss:$16 sm:%s257_s5]   ;;  %v255_v38 = vsel %vm14_vm2, %v1628_v33, %v250_v35  ;;  %s165_s5 = smov 48  ;;  %v1648_v14 = vld [vmem:[%s2954_s0 + $0x188] ss:$16 sm:%s376_s13]   ;;  %s351_s29 = smov 192 }
  0x16   :  { %v1630_v37 = vld [vmem:[%s2954_s0 + $0x189] ss:$16 sm:%s260_s10]   ;;  %s170_s10 = smov 192  ;;  %s412_s3 = smov 3  ;;  %v1642_v18 = vld [vmem:[%s2954_s0 + $0x108] ss:$16 sm:%s341_s22]  }
  0x17   :  { %v263_v39 = vsel %vm6_vm0, %v1630_v37, %v1629_v36  ;;  %v1631_v40 = vld [vmem:[%s2954_s0 + $0x189] ss:$16 sm:%s265_s11]   ;;  %v1643_v19 = vld [vmem:[%s2954_s0 + $0x108] ss:$16 sm:%s346_s23]   ;;  %s420_s9 = smov 48  ;;  %s388_s12 = smov 3 }
  0x18   :  { %v268_v41 = vsel %vm10_vm1, %v1631_v40, %v263_v39  ;;  %v1632_v42 = vld [vmem:[%s2954_s0 + $0x189] ss:$16 sm:%s270_s16]   ;;  %v1644_v21 = vld [vmem:[%s2954_s0 + $0x108] ss:$16 sm:%s351_s29]   ;;  %s391_s18 = smov 12  ;;  %s396_s19 = smov 48 }
  0x19   :  { %v1609_v43 = vld [vmem:[%s2954_s0 + $0x89] ss:$16 sm:%s139_s17]   ;;  %v273_v44 = vsel %vm14_vm2, %v1632_v42, %v268_v41  ;;  %s338_s17 = smov 3  ;;  %v1653_v23 = vld [vmem:[%s2954_s0 + $0x87] ss:$16 sm:%s412_s3]   ;;  %s401_s25 = smov 192 }
  0x1a   :  { %v1610_v45 = vld [vmem:[%s2954_s0 + $0x89] ss:$16 sm:%s142_s20]   ;;  %v275_v47 = vsel %vm125_vm3, %v273_v44, %v255_v38  ;;  %s326_s20 = smov 192  ;;  %v1641_v16 = vld [vmem:[%s2954_s0 + $0x108] ss:$16 sm:%s338_s17]   ;;  %s1855_s6 = smov 98  }
  0x1b   :  { %v1611_v46 = vld [vmem:[%s2954_s0 + $0x89] ss:$16 sm:%s147_s21]   ;;  %v145_v48 = vsel %vm6_vm0, %v1610_v45, %v1609_v43  ;;  %276 = vrot.lane.b32.xlu1 %v275_v47, %s1853_s24  ;;  %v344_v20 = vsel %vm6_vm0, %v1642_v18, %v1641_v16  ;;  %s440_s13 = smov 12  ;;  %s445_s15 = smov 48 }
  0x1c   :  { %v1612_v49 = vld [vmem:[%s2954_s0 + $0x89] ss:$16 sm:%s152_s27]   ;;  %v150_v51 = vsel %vm10_vm1, %v1611_v46, %v145_v48  ;;  %s292_s27 = smov 12  ;;  %v1640_v63 = vld [vmem:[%s2954_s0 + $0x88] ss:$16 sm:%s326_s20]   ;;  %v349_v22 = vsel %vm10_vm1, %v1643_v19, %v344_v20  ;;  %s450_s20 = smov 192 }
  0x1d   :  { %v1613_v50 = vld [vmem:[%s2954_s0 + $0x89] ss:$16 sm:%s157_s28]   ;;  %v155_v53 = vsel %vm14_vm2, %v1612_v49, %v150_v51  ;;  %v1634_v3 = vld [vmem:[%s2954_s0 + $0x8] ss:$16 sm:%s292_s27]   ;;  %v329_v4 = vsel %vm14_vm2, %v1640_v63, %v324_v1  ;;  %v354_v25 = vsel %vm14_vm2, %v1644_v21, %v349_v22  ;;  %s462_s27 = smov 3  ;;  %s465_s28 = smov 12 }
  0x1e   :  { %v1614_v52 = vld [vmem:[%s2954_s0 + $0x89] ss:$16 sm:%s160_s4]   ;;  %s302_s4 = smov 192  ;;  %v295_v5 = vsel %vm6_vm0, %v1634_v3, %v1633_v2  ;;  %v1655_v27 = vld [vmem:[%s2954_s0 + $0x87] ss:$16 sm:%s420_s9]   ;;  %s437_s9 = smov 3 }
  0x1f   :  { %v163_v54 = vsel %vm6_vm0, %v1614_v52, %v1613_v50  ;;  %v1615_v55 = vld [vmem:[%s2954_s0 + $0x89] ss:$16 sm:%s165_s5]   ;;  %330 = vrot.lane.b32.xlu1 %v329_v4, %s1854_s14  ;;  %v300_v7 = vsel %vm10_vm1, %v1635_v6, %v295_v5  ;;  %s475_s5 = smov 192  ;;  %s511_s23 = smov 3 }
  0x20   :  { %v1616_v56 = vld [vmem:[%s2954_s0 + $0x89] ss:$16 sm:%s170_s10]   ;;  %v168_v57 = vsel %vm10_vm1, %v1615_v55, %v163_v54  ;;  %s366_s10 = smov 12  ;;  %v1636_v8 = vld [vmem:[%s2954_s0 + $0x8] ss:$16 sm:%s302_s4]   ;;  %s415_s4 = smov 12 }
  0x21   :  { %v173_v60 = vsel %vm14_vm2, %v1616_v56, %v168_v57  ;;  %v305_v9 = vsel %vm14_vm2, %v1636_v8, %v300_v7  ;;  %v1646_v11 = vld [vmem:[%s2954_s0 + $0x188] ss:$16 sm:%s366_s10]   ;;  %s425_s10 = smov 192  ;;  %v1654_v24 = vld [vmem:[%s2954_s0 + $0x87] ss:$16 sm:%s415_s4]   ;;  %s470_s4 = smov 48 }
  0x22   :  { %v175_v0 = vsel %vm125_vm3, %v173_v60, %v155_v53  ;;  %v369_v12 = vsel %vm6_vm0, %v1646_v11, %v1645_v10  ;;  %v418_v26 = vsel %vm6_vm0, %v1654_v24, %v1653_v23  ;;  %v1656_v28 = vld [vmem:[%s2954_s0 + $0x87] ss:$16 sm:%s425_s10]   ;;  %s519_s29 = smov 48  ;;  %s524_s30 = smov 192  ;;  %v1669_v51 = vld [vmem:[%s2954_s0 + $0x86] ss:$16 sm:%s511_s23]  }
  0x23   :  { %176 = vrot.lane.b32.xlu0 %v175_v0, %s1853_s24  ;;  %v374_v15 = vsel %vm10_vm1, %v1647_v13, %v369_v12  ;;  %v423_v29 = vsel %vm10_vm1, %v1655_v27, %v418_v26  ;;  %v1649_v30 = vld [vmem:[%s2954_s0 + $0x7] ss:$16 sm:%s388_s12]   ;;  %s490_s10 = smov 12  ;;  %s495_s24 = smov 48 }
  0x24   :  { %v379_v17 = vsel %vm14_vm2, %v1648_v14, %v374_v15  ;;  %v428_v31 = vsel %vm14_vm2, %v1656_v28, %v423_v29  ;;  %v1650_v32 = vld [vmem:[%s2954_s0 + $0x7] ss:$16 sm:%s391_s18]   ;;  %v1671_v55 = vld [vmem:[%s2954_s0 + $0x86] ss:$16 sm:%s519_s29]   ;;  %s500_s16 = smov 192  ;;  %s561_s18 = smov 3 }
  0x25   :  { %380 = vrot.lane.b32.xlu1 %v379_v17, %s1854_s14  ;;  %v1651_v33 = vld [vmem:[%s2954_s0 + $0x7] ss:$16 sm:%s396_s19]   ;;  %v394_v34 = vsel %vm6_vm0, %v1650_v32, %v1649_v30  ;;  %s564_s19 = smov 12  ;;  %s1856_s26 = smov 84  }
  0x26   :  { %v1652_v35 = vld [vmem:[%s2954_s0 + $0x7] ss:$16 sm:%s401_s25]   ;;  %v399_v36 = vsel %vm10_vm1, %v1651_v33, %v394_v34  ;;  %s514_s25 = smov 12  ;;  %v1672_v56 = vld [vmem:[%s2954_s0 + $0x86] ss:$16 sm:%s524_s30]   ;;  %s536_s29 = smov 3 }
  0x27   :  { %306 = vrot.lane.b32.xlu0 %v305_v9, %s1854_s14  ;;  %v1661_v37 = vld [vmem:[%s2954_s0 + $0x187] ss:$16 sm:%s462_s27]   ;;  %v404_v39 = vsel %vm14_vm2, %v1652_v35, %v399_v36  ;;  %s544_s7 = smov 48  ;;  %s549_s11 = smov 192 }
  0x28   :  { %v1662_v38 = vld [vmem:[%s2954_s0 + $0x187] ss:$16 sm:%s465_s28]   ;;  %v1670_v52 = vld [vmem:[%s2954_s0 + $0x86] ss:$16 sm:%s514_s25]   ;;  %s569_s25 = smov 48  ;;  %s623_s21 = smov 192 }
  0x29   :  { %429 = vrot.lane.b32.xlu1 %v428_v31, %s1855_s6  ;;  %v468_v40 = vsel %vm6_vm0, %v1662_v38, %v1661_v37  ;;  %v1663_v41 = vld [vmem:[%s2954_s0 + $0x187] ss:$16 sm:%s470_s4]   ;;  %s487_s4 = smov 3  ;;  %v517_v54 = vsel %vm6_vm0, %v1670_v52, %v1669_v51  ;;  %s589_s30 = smov 12 }
  0x2a   :  { %v1664_v42 = vld [vmem:[%s2954_s0 + $0x187] ss:$16 sm:%s475_s5]   ;;  %v473_v43 = vsel %vm10_vm1, %v1663_v41, %v468_v40  ;;  %v522_v57 = vsel %vm10_vm1, %v1671_v55, %v517_v54  ;;  %v1665_v58 = vld [vmem:[%s2954_s0 + $0x6] ss:$16 sm:%s487_s4]   ;;  %s539_s5 = smov 12  ;;  %s594_s2 = smov 48 }
  0x2b   :  { %355 = vrot.lane.b32.xlu0 %v354_v25, %s1854_s14  ;;  %v1657_v44 = vld [vmem:[%s2954_s0 + $0x107] ss:$16 sm:%s437_s9]   ;;  %v478_v45 = vsel %vm14_vm2, %v1664_v42, %v473_v43  ;;  %v527_v59 = vsel %vm14_vm2, %v1672_v56, %v522_v57  ;;  %s574_s14 = smov 192  ;;  %s599_s8 = smov 192 }
  0x2c   :  { %v1658_v46 = vld [vmem:[%s2954_s0 + $0x107] ss:$16 sm:%s440_s13]   ;;  %v1666_v60 = vld [vmem:[%s2954_s0 + $0x6] ss:$16 sm:%s490_s10]   ;;  %s660_s10 = smov 3  ;;  %s1857_s17 = smov 70  }
  0x2d   :  { %v1659_v47 = vld [vmem:[%s2954_s0 + $0x107] ss:$16 sm:%s445_s15]   ;;  %479 = vrot.lane.b32.xlu1 %v478_v45, %s1855_s6  ;;  %v443_v48 = vsel %vm6_vm0, %v1658_v46, %v1657_v44  ;;  %v493_v62 = vsel %vm6_vm0, %v1666_v60, %v1665_v58  ;;  %s610_s15 = smov 3  ;;  %s643_s27 = smov 48 }
  0x2e   :  { %v1660_v49 = vld [vmem:[%s2954_s0 + $0x107] ss:$16 sm:%s450_s20]   ;;  %v448_v50 = vsel %vm10_vm1, %v1659_v47, %v443_v48  ;;  %v1667_v61 = vld [vmem:[%s2954_s0 + $0x6] ss:$16 sm:%s495_s24]   ;;  %s618_s20 = smov 48  ;;  %s663_s24 = smov 12 }
  0x2f   :  { %405 = vrot.lane.b32.xlu0 %v404_v39, %s1855_s6  ;;  %v453_v53 = vsel %vm14_vm2, %v1660_v49, %v448_v50  ;;  %v1668_v63 = vld [vmem:[%s2954_s0 + $0x6] ss:$16 sm:%s500_s16]   ;;  %v498_v0 = vsel %vm10_vm1, %v1667_v61, %v493_v62  ;;  %s613_s16 = smov 12  ;;  %s648_s3 = smov 192 }
  0x30   :  { %v1677_v1 = vld [vmem:[%s2954_s0 + $0x186] ss:$16 sm:%s561_s18]   ;;  %v503_v3 = vsel %vm14_vm2, %v1668_v63, %v498_v0  ;;  %v1685_v15 = vld [vmem:[%s2954_s0 + $0x85] ss:$16 sm:%s610_s15]   ;;  %s722_s12 = smov 192  ;;  %s693_s22 = smov 48 }
  0x31   :  { %528 = vrot.lane.b32.xlu1 %v527_v59, %s1856_s26  ;;  %v1678_v2 = vld [vmem:[%s2954_s0 + $0x186] ss:$16 sm:%s564_s19]   ;;  %s698_s28 = smov 192  ;;  %s1858_s9 = smov 56  }
  0x32   :  { %v567_v4 = vsel %vm6_vm0, %v1678_v2, %v1677_v1  ;;  %v1679_v5 = vld [vmem:[%s2954_s0 + $0x186] ss:$16 sm:%s569_s25]   ;;  %s586_s25 = smov 3  ;;  %v1686_v16 = vld [vmem:[%s2954_s0 + $0x85] ss:$16 sm:%s613_s16]   ;;  %s668_s16 = smov 48 }
  0x33   :  { %454 = vrot.lane.b32.xlu0 %v453_v53, %s1855_s6  ;;  %v1680_v6 = vld [vmem:[%s2954_s0 + $0x186] ss:$16 sm:%s574_s14]   ;;  %v572_v7 = vsel %vm10_vm1, %v1679_v5, %v567_v4  ;;  %v616_v18 = vsel %vm6_vm0, %v1686_v16, %v1685_v15  ;;  %s673_s6 = smov 192  ;;  %s638_s14 = smov 12 }
  0x34   :  { %v1673_v8 = vld [vmem:[%s2954_s0 + $0x106] ss:$16 sm:%s536_s29]   ;;  %v577_v9 = vsel %vm14_vm2, %v1680_v6, %v572_v7  ;;  %v1687_v19 = vld [vmem:[%s2954_s0 + $0x85] ss:$16 sm:%s618_s20]   ;;  %s635_s20 = smov 3  ;;  %s742_s18 = smov 48 }
  0x35   :  { %v1674_v10 = vld [vmem:[%s2954_s0 + $0x106] ss:$16 sm:%s539_s5]   ;;  %578 = vrot.lane.b32.xlu1 %v577_v9, %s1856_s26  ;;  %v621_v21 = vsel %vm10_vm1, %v1687_v19, %v616_v18  ;;  %s747_s23 = smov 192  ;;  %s822_s4 = smov 192 }
  0x36   :  { %v1675_v11 = vld [vmem:[%s2954_s0 + $0x106] ss:$16 sm:%s544_s7]   ;;  %v542_v12 = vsel %vm6_vm0, %v1674_v10, %v1673_v8  ;;  %v1688_v20 = vld [vmem:[%s2954_s0 + $0x85] ss:$16 sm:%s623_s21]   ;;  %s709_s7 = smov 3  ;;  %s688_s21 = smov 12 }
  0x37   :  { %504 = vrot.lane.b32.xlu0 %v503_v3, %s1856_s26  ;;  %v1676_v13 = vld [vmem:[%s2954_s0 + $0x106] ss:$16 sm:%s549_s11]   ;;  %v547_v14 = vsel %vm10_vm1, %v1675_v11, %v542_v12  ;;  %v626_v23 = vsel %vm14_vm2, %v1688_v20, %v621_v21  ;;  %s717_s11 = smov 48  ;;  %s792_s13 = smov 48 }
  0x38   :  { %v552_v17 = vsel %vm14_vm2, %v1676_v13, %v547_v14  ;;  %v1681_v22 = vld [vmem:[%s2954_s0 + $0x5] ss:$16 sm:%s586_s25]   ;;  %v1701_v43 = vld [vmem:[%s2954_s0 + $0x84] ss:$16 sm:%s709_s7]   ;;  %s797_s19 = smov 192  ;;  %s1859_s29 = smov 54  }
  0x39   :  { %v1682_v24 = vld [vmem:[%s2954_s0 + $0x5] ss:$16 sm:%s589_s30]   ;;  %627 = vrot.lane.b32.xlu1 %v626_v23, %s1857_s17  ;;  %s759_s30 = smov 3  ;;  %s847_s15 = smov 192 }
  0x3a   :  { %v1683_v25 = vld [vmem:[%s2954_s0 + $0x5] ss:$16 sm:%s594_s2]   ;;  %v592_v26 = vsel %vm6_vm0, %v1682_v24, %v1681_v22  ;;  %v1703_v47 = vld [vmem:[%s2954_s0 + $0x84] ss:$16 sm:%s717_s11]   ;;  %s762_s2 = smov 12  ;;  %s734_s11 = smov 3 }
  0x3b   :  { %553 = vrot.lane.b32.xlu0 %v552_v17, %s1856_s26  ;;  %v1684_v27 = vld [vmem:[%s2954_s0 + $0x5] ss:$16 sm:%s599_s8]   ;;  %v597_v28 = vsel %vm10_vm1, %v1683_v25, %v592_v26  ;;  %s712_s8 = smov 12  ;;  %s772_s26 = smov 192 }
  0x3c   :  { %v1693_v29 = vld [vmem:[%s2954_s0 + $0x185] ss:$16 sm:%s660_s10]   ;;  %v602_v31 = vsel %vm14_vm2, %v1684_v27, %v597_v28  ;;  %v1702_v44 = vld [vmem:[%s2954_s0 + $0x84] ss:$16 sm:%s712_s8]   ;;  %s767_s8 = smov 48  ;;  %s842_s10 = smov 48 }
  0x3d   :  { %v1694_v30 = vld [vmem:[%s2954_s0 + $0x185] ss:$16 sm:%s663_s24]   ;;  %v715_v46 = vsel %vm6_vm0, %v1702_v44, %v1701_v43  ;;  %v1704_v48 = vld [vmem:[%s2954_s0 + $0x84] ss:$16 sm:%s722_s12]   ;;  %s787_s12 = smov 12  ;;  %s921_s25 = smov 192 }
  0x3e   :  { %v666_v32 = vsel %vm6_vm0, %v1694_v30, %v1693_v29  ;;  %v1695_v33 = vld [vmem:[%s2954_s0 + $0x185] ss:$16 sm:%s668_s16]   ;;  %s685_s16 = smov 3  ;;  %v720_v49 = vsel %vm10_vm1, %v1703_v47, %v715_v46  ;;  %v1698_v52 = vld [vmem:[%s2954_s0 + $0x4] ss:$16 sm:%s688_s21]   ;;  %s859_s21 = smov 3 }
  0x3f   :  { %v1696_v34 = vld [vmem:[%s2954_s0 + $0x185] ss:$16 sm:%s673_s6]   ;;  %603 = vrot.lane.b32.xlu0 %v602_v31, %s1857_s17  ;;  %v671_v35 = vsel %vm10_vm1, %v1695_v33, %v666_v32  ;;  %v725_v51 = vsel %vm14_vm2, %v1704_v48, %v720_v49  ;;  %s737_s6 = smov 12  ;;  %s892_s5 = smov 48 }
  0x40   :  { %v1689_v36 = vld [vmem:[%s2954_s0 + $0x105] ss:$16 sm:%s635_s20]   ;;  %v676_v37 = vsel %vm14_vm2, %v1696_v34, %v671_v35  ;;  %v1697_v50 = vld [vmem:[%s2954_s0 + $0x4] ss:$16 sm:%s685_s16]   ;;  %s897_s24 = smov 192  ;;  %s1860_s20 = smov 42  }
  0x41   :  { %v1690_v38 = vld [vmem:[%s2954_s0 + $0x105] ss:$16 sm:%s638_s14]   ;;  %677 = vrot.lane.b32.xlu1 %v676_v37, %s1857_s17  ;;  %v691_v54 = vsel %vm6_vm0, %v1698_v52, %v1697_v50  ;;  %s946_s7 = smov 192  ;;  %s1021_s16 = smov 192 }
  0x42   :  { %v1691_v39 = vld [vmem:[%s2954_s0 + $0x105] ss:$16 sm:%s643_s27]   ;;  %v641_v40 = vsel %vm6_vm0, %v1690_v38, %v1689_v36  ;;  %v1699_v53 = vld [vmem:[%s2954_s0 + $0x4] ss:$16 sm:%s693_s22]   ;;  %s809_s27 = smov 3  ;;  %s862_s22 = smov 12 }
  0x43   :  { %v1692_v41 = vld [vmem:[%s2954_s0 + $0x105] ss:$16 sm:%s648_s3]   ;;  %v646_v42 = vsel %vm10_vm1, %v1691_v39, %v641_v40  ;;  %v1700_v55 = vld [vmem:[%s2954_s0 + $0x4] ss:$16 sm:%s698_s28]   ;;  %v696_v56 = vsel %vm10_vm1, %v1699_v53, %v691_v54  ;;  %s812_s28 = smov 12  ;;  %s817_s3 = smov 48 }
  0x44   :  { %v651_v45 = vsel %vm14_vm2, %v1692_v41, %v646_v42  ;;  %v1709_v57 = vld [vmem:[%s2954_s0 + $0x184] ss:$16 sm:%s759_s30]   ;;  %v701_v59 = vsel %vm14_vm2, %v1700_v55, %v696_v56  ;;  %v1717_v7 = vld [vmem:[%s2954_s0 + $0x8d] ss:$16 sm:%s809_s27]   ;;  %s941_s30 = smov 48  ;;  %s991_s14 = smov 48 }
  0x45   :  { %652 = vrot.lane.b32.xlu0 %v651_v45, %s1857_s17  ;;  %726 = vrot.lane.b32.xlu1 %v725_v51, %s1858_s9  ;;  %v1710_v58 = vld [vmem:[%s2954_s0 + $0x184] ss:$16 sm:%s762_s2]   ;;  %s872_s17 = smov 192  ;;  %s996_s2 = smov 192 }
  0x46   :  { %v765_v60 = vsel %vm6_vm0, %v1710_v58, %v1709_v57  ;;  %v1711_v61 = vld [vmem:[%s2954_s0 + $0x184] ss:$16 sm:%s767_s8]   ;;  %s784_s8 = smov 3  ;;  %v1718_v8 = vld [vmem:[%s2954_s0 + $0x8d] ss:$16 sm:%s812_s28]   ;;  %s867_s28 = smov 48 }
  0x47   :  { %v1712_v62 = vld [vmem:[%s2954_s0 + $0x184] ss:$16 sm:%s772_s26]   ;;  %v770_v63 = vsel %vm10_vm1, %v1711_v61, %v765_v60  ;;  %v815_v10 = vsel %vm6_vm0, %v1718_v8, %v1717_v7  ;;  %v1719_v11 = vld [vmem:[%s2954_s0 + $0x8d] ss:$16 sm:%s817_s3]   ;;  %s834_s3 = smov 3  ;;  %s837_s26 = smov 12 }
  0x48   :  { %v1705_v0 = vld [vmem:[%s2954_s0 + $0x104] ss:$16 sm:%s734_s11]   ;;  %v775_v1 = vsel %vm14_vm2, %v1712_v62, %v770_v63  ;;  %v1720_v12 = vld [vmem:[%s2954_s0 + $0x8d] ss:$16 sm:%s822_s4]   ;;  %v820_v13 = vsel %vm10_vm1, %v1719_v11, %v815_v10  ;;  %s887_s4 = smov 12  ;;  %s1861_s11 = smov 40  }
  0x49   :  { %702 = vrot.lane.b32.xlu0 %v701_v59, %s1858_s9  ;;  %v1706_v2 = vld [vmem:[%s2954_s0 + $0x104] ss:$16 sm:%s737_s6]   ;;  %776 = vrot.lane.b32.xlu1 %v775_v1, %s1858_s9  ;;  %v825_v15 = vsel %vm14_vm2, %v1720_v12, %v820_v13  ;;  %s1046_s27 = smov 192  ;;  %s1091_s6 = smov 48 }
  0x4a   :  { %v1707_v3 = vld [vmem:[%s2954_s0 + $0x104] ss:$16 sm:%s742_s18]   ;;  %v740_v4 = vsel %vm6_vm0, %v1706_v2, %v1705_v0  ;;  %v1713_v14 = vld [vmem:[%s2954_s0 + $0xd] ss:$16 sm:%s784_s8]   ;;  %s908_s18 = smov 3  ;;  %s1120_s8 = smov 192 }
  0x4b   :  { %v1708_v5 = vld [vmem:[%s2954_s0 + $0x104] ss:$16 sm:%s747_s23]   ;;  %v745_v6 = vsel %vm10_vm1, %v1707_v3, %v740_v4  ;;  %v1714_v16 = vld [vmem:[%s2954_s0 + $0xd] ss:$16 sm:%s787_s12]   ;;  %s916_s23 = smov 48  ;;  %s958_s12 = smov 3 }
  0x4c   :  { %v750_v9 = vsel %vm14_vm2, %v1708_v5, %v745_v6  ;;  %v1715_v17 = vld [vmem:[%s2954_s0 + $0xd] ss:$16 sm:%s792_s13]   ;;  %v790_v18 = vsel %vm6_vm0, %v1714_v16, %v1713_v14  ;;  %v1733_v35 = vld [vmem:[%s2954_s0 + $0x83] ss:$16 sm:%s908_s18]   ;;  %s961_s13 = smov 12  ;;  %s1145_s18 = smov 192 }
  0x4d   :  { %751 = vrot.lane.b32.xlu0 %v750_v9, %s1858_s9  ;;  %826 = vrot.lane.b32.xlu1 %v825_v15, %s1859_s29  ;;  %v1716_v19 = vld [vmem:[%s2954_s0 + $0xd] ss:$16 sm:%s797_s19]   ;;  %v795_v20 = vsel %vm10_vm1, %v1715_v17, %v790_v18  ;;  %s911_s19 = smov 12  ;;  %s971_s9 = smov 192 }
  0x4e   :  { %v1725_v21 = vld [vmem:[%s2954_s0 + $0x18d] ss:$16 sm:%s859_s21]   ;;  %v800_v23 = vsel %vm14_vm2, %v1716_v19, %v795_v20  ;;  %v1734_v36 = vld [vmem:[%s2954_s0 + $0x83] ss:$16 sm:%s911_s19]   ;;  %s966_s19 = smov 48  ;;  %s1041_s21 = smov 48 }
  0x4f   :  { %v1726_v22 = vld [vmem:[%s2954_s0 + $0x18d] ss:$16 sm:%s862_s22]   ;;  %v914_v38 = vsel %vm6_vm0, %v1734_v36, %v1733_v35  ;;  %v1735_v39 = vld [vmem:[%s2954_s0 + $0x83] ss:$16 sm:%s916_s23]   ;;  %s933_s23 = smov 3  ;;  %s1096_s22 = smov 192 }
  0x50   :  { %v865_v24 = vsel %vm6_vm0, %v1726_v22, %v1725_v21  ;;  %v1727_v25 = vld [vmem:[%s2954_s0 + $0x18d] ss:$16 sm:%s867_s28]   ;;  %s884_s28 = smov 3  ;;  %v1736_v40 = vld [vmem:[%s2954_s0 + $0x83] ss:$16 sm:%s921_s25]   ;;  %v919_v41 = vsel %vm10_vm1, %v1735_v39, %v914_v38  ;;  %s986_s25 = smov 12 }
  0x51   :  { %v1728_v26 = vld [vmem:[%s2954_s0 + $0x18d] ss:$16 sm:%s872_s17]   ;;  %801 = vrot.lane.b32.xlu0 %v800_v23, %s1859_s29  ;;  %v870_v27 = vsel %vm10_vm1, %v1727_v25, %v865_v24  ;;  %v924_v43 = vsel %vm14_vm2, %v1736_v40, %v919_v41  ;;  %s936_s17 = smov 12 }
  0x52   :  { %v1721_v28 = vld [vmem:[%s2954_s0 + $0x10d] ss:$16 sm:%s834_s3]   ;;  %v875_v29 = vsel %vm14_vm2, %v1728_v26, %v870_v27  ;;  %v1729_v42 = vld [vmem:[%s2954_s0 + $0x3] ss:$16 sm:%s884_s28]   ;;  %s1862_s3 = smov 28   ;;  %s1220_s28 = smov 192 }
  0x53   :  { %v1722_v30 = vld [vmem:[%s2954_s0 + $0x10d] ss:$16 sm:%s837_s26]   ;;  %876 = vrot.lane.b32.xlu1 %v875_v29, %s1859_s29  ;;  %s1190_s26 = smov 48 }
  0x54   :  { %v1723_v31 = vld [vmem:[%s2954_s0 + $0x10d] ss:$16 sm:%s842_s10]   ;;  %v840_v32 = vsel %vm6_vm0, %v1722_v30, %v1721_v28  ;;  %v1730_v44 = vld [vmem:[%s2954_s0 + $0x3] ss:$16 sm:%s887_s4]   ;;  %s1008_s10 = smov 3  ;;  %s1058_s4 = smov 3 }
  0x55   :  { %v1724_v33 = vld [vmem:[%s2954_s0 + $0x10d] ss:$16 sm:%s847_s15]   ;;  %v845_v34 = vsel %vm10_vm1, %v1723_v31, %v840_v32  ;;  %v1731_v45 = vld [vmem:[%s2954_s0 + $0x3] ss:$16 sm:%s892_s5]   ;;  %v890_v46 = vsel %vm6_vm0, %v1730_v44, %v1729_v42  ;;  %s1016_s15 = smov 48  ;;  %s1061_s5 = smov 12 }
  0x56   :  { %v850_v37 = vsel %vm14_vm2, %v1724_v33, %v845_v34  ;;  %v1732_v47 = vld [vmem:[%s2954_s0 + $0x3] ss:$16 sm:%s897_s24]   ;;  %v895_v48 = vsel %vm10_vm1, %v1731_v45, %v890_v46  ;;  %s1011_s24 = smov 12  ;;  %v1749_v63 = vld [vmem:[%s2954_s0 + $0x8c] ss:$16 sm:%s1008_s10]   ;;  %s1245_s10 = smov 192 }
  0x57   :  { %851 = vrot.lane.b32.xlu0 %v850_v37, %s1859_s29  ;;  %925 = vrot.lane.b32.xlu1 %v924_v43, %s1860_s20  ;;  %v1741_v49 = vld [vmem:[%s2954_s0 + $0x183] ss:$16 sm:%s958_s12]   ;;  %v900_v51 = vsel %vm14_vm2, %v1732_v47, %v895_v48  ;;  %s1071_s29 = smov 192  ;;  %s1140_s12 = smov 48 }
  0x58   :  { %v1742_v50 = vld [vmem:[%s2954_s0 + $0x183] ss:$16 sm:%s961_s13]   ;;  %v1750_v0 = vld [vmem:[%s2954_s0 + $0x8c] ss:$16 sm:%s1011_s24]   ;;  %s1066_s24 = smov 48  ;;  %s1195_s13 = smov 192 }
  0x59   :  { %v964_v52 = vsel %vm6_vm0, %v1742_v50, %v1741_v49  ;;  %v1743_v53 = vld [vmem:[%s2954_s0 + $0x183] ss:$16 sm:%s966_s19]   ;;  %s983_s19 = smov 3  ;;  %v1014_v2 = vsel %vm6_vm0, %v1750_v0, %v1749_v63  ;;  %v1751_v3 = vld [vmem:[%s2954_s0 + $0x8c] ss:$16 sm:%s1016_s15]   ;;  %s1033_s15 = smov 3 }
  0x5a   :  { %v1744_v54 = vld [vmem:[%s2954_s0 + $0x183] ss:$16 sm:%s971_s9]   ;;  %v969_v55 = vsel %vm10_vm1, %v1743_v53, %v964_v52  ;;  %v1752_v4 = vld [vmem:[%s2954_s0 + $0x8c] ss:$16 sm:%s1021_s16]   ;;  %v1019_v5 = vsel %vm10_vm1, %v1751_v3, %v1014_v2  ;;  %s1036_s9 = smov 12  ;;  %s1086_s16 = smov 12 }
  0x5b   :  { %901 = vrot.lane.b32.xlu0 %v900_v51, %s1860_s20  ;;  %v1737_v56 = vld [vmem:[%s2954_s0 + $0x103] ss:$16 sm:%s933_s23]   ;;  %v974_v57 = vsel %vm14_vm2, %v1744_v54, %v969_v55  ;;  %v1024_v7 = vsel %vm14_vm2, %v1752_v4, %v1019_v5  ;;  %s1863_s23 = smov 26  }
  0x5c   :  { %v1738_v58 = vld [vmem:[%s2954_s0 + $0x103] ss:$16 sm:%s936_s17]   ;;  %975 = vrot.lane.b32.xlu1 %v974_v57, %s1860_s20  ;;  %s1290_s17 = smov 48 }
  0x5d   :  { %v1739_v59 = vld [vmem:[%s2954_s0 + $0x103] ss:$16 sm:%s941_s30]   ;;  %v939_v60 = vsel %vm6_vm0, %v1738_v58, %v1737_v56  ;;  %v1745_v6 = vld [vmem:[%s2954_s0 + $0xc] ss:$16 sm:%s983_s19]   ;;  %s1107_s30 = smov 3  ;;  %s1319_s19 = smov 192 }
  0x5e   :  { %v1740_v61 = vld [vmem:[%s2954_s0 + $0x103] ss:$16 sm:%s946_s7]   ;;  %v944_v62 = vsel %vm10_vm1, %v1739_v59, %v939_v60  ;;  %v1746_v8 = vld [vmem:[%s2954_s0 + $0xc] ss:$16 sm:%s986_s25]   ;;  %s1115_s7 = smov 48  ;;  %s1157_s25 = smov 3 }
  0x5f   :  { %v949_v1 = vsel %vm14_vm2, %v1740_v61, %v944_v62  ;;  %v1747_v9 = vld [vmem:[%s2954_s0 + $0xc] ss:$16 sm:%s991_s14]   ;;  %v989_v10 = vsel %vm6_vm0, %v1746_v8, %v1745_v6  ;;  %v1765_v27 = vld [vmem:[%s2954_s0 + $0x82] ss:$16 sm:%s1107_s30]   ;;  %s1160_s14 = smov 12  ;;  %s1344_s30 = smov 192 }
  0x60   :  { %950 = vrot.lane.b32.xlu0 %v949_v1, %s1860_s20  ;;  %1025 = vrot.lane.b32.xlu1 %v1024_v7, %s1861_s11  ;;  %v1748_v11 = vld [vmem:[%s2954_s0 + $0xc] ss:$16 sm:%s996_s2]   ;;  %v994_v12 = vsel %vm10_vm1, %v1747_v9, %v989_v10  ;;  %s1110_s2 = smov 12  ;;  %s1170_s20 = smov 192 }
  0x61   :  { %v1757_v13 = vld [vmem:[%s2954_s0 + $0x18c] ss:$16 sm:%s1058_s4]   ;;  %v999_v15 = vsel %vm14_vm2, %v1748_v11, %v994_v12  ;;  %v1766_v28 = vld [vmem:[%s2954_s0 + $0x82] ss:$16 sm:%s1110_s2]   ;;  %s1165_s2 = smov 48  ;;  %s1240_s4 = smov 48 }
  0x62   :  { %v1758_v14 = vld [vmem:[%s2954_s0 + $0x18c] ss:$16 sm:%s1061_s5]   ;;  %v1113_v30 = vsel %vm6_vm0, %v1766_v28, %v1765_v27  ;;  %v1767_v31 = vld [vmem:[%s2954_s0 + $0x82] ss:$16 sm:%s1115_s7]   ;;  %s1132_s7 = smov 3  ;;  %s1295_s5 = smov 192 }
  0x63   :  { %v1064_v16 = vsel %vm6_vm0, %v1758_v14, %v1757_v13  ;;  %v1759_v17 = vld [vmem:[%s2954_s0 + $0x18c] ss:$16 sm:%s1066_s24]   ;;  %s1083_s24 = smov 3  ;;  %v1768_v32 = vld [vmem:[%s2954_s0 + $0x82] ss:$16 sm:%s1120_s8]   ;;  %v1118_v33 = vsel %vm10_vm1, %v1767_v31, %v1113_v30  ;;  %s1185_s8 = smov 12 }
  0x64   :  { %v1760_v18 = vld [vmem:[%s2954_s0 + $0x18c] ss:$16 sm:%s1071_s29]   ;;  %1000 = vrot.lane.b32.xlu0 %v999_v15, %s1861_s11  ;;  %v1069_v19 = vsel %vm10_vm1, %v1759_v17, %v1064_v16  ;;  %v1123_v35 = vsel %vm14_vm2, %v1768_v32, %v1118_v33  ;;  %s1135_s29 = smov 12 }
  0x65   :  { %v1753_v20 = vld [vmem:[%s2954_s0 + $0x10c] ss:$16 sm:%s1033_s15]   ;;  %v1074_v21 = vsel %vm14_vm2, %v1760_v18, %v1069_v19  ;;  %v1761_v34 = vld [vmem:[%s2954_s0 + $0x2] ss:$16 sm:%s1083_s24]   ;;  %s1864_s15 = smov 14   ;;  %s1419_s24 = smov 192 }
  0x66   :  { %v1754_v22 = vld [vmem:[%s2954_s0 + $0x10c] ss:$16 sm:%s1036_s9]   ;;  %1075 = vrot.lane.b32.xlu1 %v1074_v21, %s1861_s11  ;;  %s1389_s9 = smov 48 }
  0x67   :  { %v1755_v23 = vld [vmem:[%s2954_s0 + $0x10c] ss:$16 sm:%s1041_s21]   ;;  %v1039_v24 = vsel %vm6_vm0, %v1754_v22, %v1753_v20  ;;  %v1762_v36 = vld [vmem:[%s2954_s0 + $0x2] ss:$16 sm:%s1086_s16]   ;;  %s1207_s21 = smov 3  ;;  %s1257_s16 = smov 3 }
  0x68   :  { %v1756_v25 = vld [vmem:[%s2954_s0 + $0x10c] ss:$16 sm:%s1046_s27]   ;;  %v1044_v26 = vsel %vm10_vm1, %v1755_v23, %v1039_v24  ;;  %v1763_v37 = vld [vmem:[%s2954_s0 + $0x2] ss:$16 sm:%s1091_s6]   ;;  %v1089_v38 = vsel %vm6_vm0, %v1762_v36, %v1761_v34  ;;  %s1215_s27 = smov 48  ;;  %s1260_s6 = smov 12 }
  0x69   :  { %v1049_v29 = vsel %vm14_vm2, %v1756_v25, %v1044_v26  ;;  %v1764_v39 = vld [vmem:[%s2954_s0 + $0x2] ss:$16 sm:%s1096_s22]   ;;  %v1094_v40 = vsel %vm10_vm1, %v1763_v37, %v1089_v38  ;;  %s1210_s22 = smov 12  ;;  %v1781_v55 = vld [vmem:[%s2954_s0 + $0x8b] ss:$16 sm:%s1207_s21]   ;;  %s1444_s21 = smov 192 }
  0x6a   :  { %1050 = vrot.lane.b32.xlu0 %v1049_v29, %s1861_s11  ;;  %1124 = vrot.lane.b32.xlu1 %v1123_v35, %s1862_s3  ;;  %v1773_v41 = vld [vmem:[%s2954_s0 + $0x182] ss:$16 sm:%s1157_s25]   ;;  %v1099_v43 = vsel %vm14_vm2, %v1764_v39, %v1094_v40  ;;  %s1270_s11 = smov 192  ;;  %s1339_s25 = smov 48 }
  0x6b   :  { %v1774_v42 = vld [vmem:[%s2954_s0 + $0x182] ss:$16 sm:%s1160_s14]   ;;  %v1782_v56 = vld [vmem:[%s2954_s0 + $0x8b] ss:$16 sm:%s1210_s22]   ;;  %s1265_s22 = smov 48  ;;  %s1394_s14 = smov 192 }
  0x6c   :  { %v1163_v44 = vsel %vm6_vm0, %v1774_v42, %v1773_v41  ;;  %v1775_v45 = vld [vmem:[%s2954_s0 + $0x182] ss:$16 sm:%s1165_s2]   ;;  %s1182_s2 = smov 3  ;;  %v1213_v58 = vsel %vm6_vm0, %v1782_v56, %v1781_v55  ;;  %v1783_v59 = vld [vmem:[%s2954_s0 + $0x8b] ss:$16 sm:%s1215_s27]   ;;  %s1232_s27 = smov 3 }
  0x6d   :  { %v1776_v46 = vld [vmem:[%s2954_s0 + $0x182] ss:$16 sm:%s1170_s20]   ;;  %v1168_v47 = vsel %vm10_vm1, %v1775_v45, %v1163_v44  ;;  %v1784_v60 = vld [vmem:[%s2954_s0 + $0x8b] ss:$16 sm:%s1220_s28]   ;;  %v1218_v61 = vsel %vm10_vm1, %v1783_v59, %v1213_v58  ;;  %s1235_s20 = smov 12  ;;  %s1285_s28 = smov 12 }
  0x6e   :  { %1100 = vrot.lane.b32.xlu0 %v1099_v43, %s1862_s3  ;;  %v1769_v48 = vld [vmem:[%s2954_s0 + $0x102] ss:$16 sm:%s1132_s7]   ;;  %v1173_v49 = vsel %vm14_vm2, %v1776_v46, %v1168_v47  ;;  %v1223_v63 = vsel %vm14_vm2, %v1784_v60, %v1218_v61  ;;  %s1865_s7 = smov 12  }
  0x6f   :  { %v1770_v50 = vld [vmem:[%s2954_s0 + $0x102] ss:$16 sm:%s1135_s29]   ;;  %1174 = vrot.lane.b32.xlu1 %v1173_v49, %s1862_s3  ;;  %s2_s29 = smov 3 }
  0x70   :  { %v1771_v51 = vld [vmem:[%s2954_s0 + $0x102] ss:$16 sm:%s1140_s12]   ;;  %v1138_v52 = vsel %vm6_vm0, %v1770_v50, %v1769_v48  ;;  %v1777_v62 = vld [vmem:[%s2954_s0 + $0xb] ss:$16 sm:%s1182_s2]   ;;  %s1306_s12 = smov 3  ;;  %s34_s2 = smov 192 }
  0x71   :  { %v1772_v53 = vld [vmem:[%s2954_s0 + $0x102] ss:$16 sm:%s1145_s18]   ;;  %v1143_v54 = vsel %vm10_vm1, %v1771_v51, %v1138_v52  ;;  %v1778_v0 = vld [vmem:[%s2954_s0 + $0xb] ss:$16 sm:%s1185_s8]   ;;  %s1314_s18 = smov 48  ;;  %s1356_s8 = smov 3 }
  0x72   :  { %v1148_v57 = vsel %vm14_vm2, %v1772_v53, %v1143_v54  ;;  %v1779_v1 = vld [vmem:[%s2954_s0 + $0xb] ss:$16 sm:%s1190_s26]   ;;  %v1188_v2 = vsel %vm6_vm0, %v1778_v0, %v1777_v62  ;;  %v1797_v19 = vld [vmem:[%s2954_s0 + $0x81] ss:$16 sm:%s1306_s12]   ;;  %s1359_s26 = smov 12 }
  0x73   :  { %1149 = vrot.lane.b32.xlu0 %v1148_v57, %s1862_s3  ;;  %1224 = vrot.lane.b32.xlu1 %v1223_v63, %s1863_s23  ;;  %v1780_v3 = vld [vmem:[%s2954_s0 + $0xb] ss:$16 sm:%s1195_s13]   ;;  %v1193_v4 = vsel %vm10_vm1, %v1779_v1, %v1188_v2  ;;  %s1309_s13 = smov 12  ;;  %s1369_s3 = smov 192 }
  0x74   :  { %v1789_v5 = vld [vmem:[%s2954_s0 + $0x18b] ss:$16 sm:%s1257_s16]   ;;  %v1198_v7 = vsel %vm14_vm2, %v1780_v3, %v1193_v4  ;;  %v1798_v20 = vld [vmem:[%s2954_s0 + $0x81] ss:$16 sm:%s1309_s13]   ;;  %s1364_s13 = smov 48  ;;  %s1439_s16 = smov 48 }
  0x75   :  { %v1790_v6 = vld [vmem:[%s2954_s0 + $0x18b] ss:$16 sm:%s1260_s6]   ;;  %v1312_v22 = vsel %vm6_vm0, %v1798_v20, %v1797_v19  ;;  %v1799_v23 = vld [vmem:[%s2954_s0 + $0x81] ss:$16 sm:%s1314_s18]   ;;  %s1331_s18 = smov 3  ;;  %s4_s6 = smov 12 }
  0x76   :  { %v1263_v8 = vsel %vm6_vm0, %v1790_v6, %v1789_v5  ;;  %v1791_v9 = vld [vmem:[%s2954_s0 + $0x18b] ss:$16 sm:%s1265_s22]   ;;  %s1282_s22 = smov 3  ;;  %v1800_v24 = vld [vmem:[%s2954_s0 + $0x81] ss:$16 sm:%s1319_s19]   ;;  %v1317_v25 = vsel %vm10_vm1, %v1799_v23, %v1312_v22  ;;  %s1384_s19 = smov 12 }
  0x77   :  { %v1792_v10 = vld [vmem:[%s2954_s0 + $0x18b] ss:$16 sm:%s1270_s11]   ;;  %1199 = vrot.lane.b32.xlu0 %v1198_v7, %s1863_s23  ;;  %v1268_v11 = vsel %vm10_vm1, %v1791_v9, %v1263_v8  ;;  %v1322_v27 = vsel %vm14_vm2, %v1800_v24, %v1317_v25  ;;  %s1334_s11 = smov 12 }
  0x78   :  { %v1785_v12 = vld [vmem:[%s2954_s0 + $0x10b] ss:$16 sm:%s1232_s27]   ;;  %v1273_v13 = vsel %vm14_vm2, %v1792_v10, %v1268_v11  ;;  %v1793_v26 = vld [vmem:[%s2954_s0 + $0x1] ss:$16 sm:%s1282_s22]   ;;  %s44_s27 = smov 3 }
  0x79   :  { %v1786_v14 = vld [vmem:[%s2954_s0 + $0x10b] ss:$16 sm:%s1235_s20]   ;;  %1274 = vrot.lane.b32.xlu1 %v1273_v13, %s1863_s23  ;;  %s47_s20 = smov 12 }
  0x7a   :  { %v1787_v15 = vld [vmem:[%s2954_s0 + $0x10b] ss:$16 sm:%s1240_s4]   ;;  %v1238_v16 = vsel %vm6_vm0, %v1786_v14, %v1785_v12  ;;  %v1794_v28 = vld [vmem:[%s2954_s0 + $0x1] ss:$16 sm:%s1285_s28]   ;;  %s1406_s4 = smov 3  ;;  %s1456_s28 = smov 3 }
  0x7b   :  { %v1788_v17 = vld [vmem:[%s2954_s0 + $0x10b] ss:$16 sm:%s1245_s10]   ;;  %v1243_v18 = vsel %vm10_vm1, %v1787_v15, %v1238_v16  ;;  %v1795_v29 = vld [vmem:[%s2954_s0 + $0x1] ss:$16 sm:%s1290_s17]   ;;  %v1288_v30 = vsel %vm6_vm0, %v1794_v28, %v1793_v26  ;;  %s1414_s10 = smov 48  ;;  %s1459_s17 = smov 12 }
  0x7c   :  { %v1248_v21 = vsel %vm14_vm2, %v1788_v17, %v1243_v18  ;;  %v1796_v31 = vld [vmem:[%s2954_s0 + $0x1] ss:$16 sm:%s1295_s5]   ;;  %v1293_v33 = vsel %vm10_vm1, %v1795_v29, %v1288_v30  ;;  %s1409_s5 = smov 12  ;;  %v1813_v49 = vld [vmem:[%s2954_s0 + $0x8a] ss:$16 sm:%s1406_s4]   ;;  %s52_s4 = smov 48 }
  0x7d   :  { %1249 = vrot.lane.b32.xlu0 %v1248_v21, %s1863_s23  ;;  %1323 = vrot.lane.b32.xlu1 %v1322_v27, %s1864_s15  ;;  %v2673_v32 = vpop.permute.xlu1 %226   ;;  %v1805_v34 = vld [vmem:[%s2954_s0 + $0x181] ss:$16 sm:%s1356_s8]   ;;  %v1298_v36 = vsel %vm14_vm2, %v1796_v31, %v1293_v33  ;;  %s1469_s23 = smov 192 }
  0x7e   :  { %v1806_v35 = vld [vmem:[%s2954_s0 + $0x181] ss:$16 sm:%s1359_s26]   ;;  %230 = vst.msk [vmem:[#allocation0 + $0x48] sm:$0xf] %vm129_vm4, %v2673_v32   ;;  %232 = vst.msk [vmem:[#allocation0 + $0x54] sm:$0xf0] %vm129_vm4, %v2673_v32  }
  0x7f   :  { %v1362_v37 = vsel %vm6_vm0, %v1806_v35, %v1805_v34  ;;  %v1807_v38 = vld [vmem:[%s2954_s0 + $0x181] ss:$16 sm:%s1364_s13]   ;;  %s1381_s13 = smov 3  ;;  %v1814_v50 = vld [vmem:[%s2954_s0 + $0x8a] ss:$16 sm:%s1409_s5]   ;;  %s1464_s5 = smov 48 }
  0x80   :  { %v1808_v39 = vld [vmem:[%s2954_s0 + $0x181] ss:$16 sm:%s1369_s3]   ;;  %v1367_v40 = vsel %vm10_vm1, %v1807_v38, %v1362_v37  ;;  %v1412_v52 = vsel %vm6_vm0, %v1814_v50, %v1813_v49  ;;  %v1815_v53 = vld [vmem:[%s2954_s0 + $0x8a] ss:$16 sm:%s1414_s10]   ;;  %s1431_s10 = smov 3  ;;  %s1434_s3 = smov 12 }
  0x81   :  { %1299 = vrot.lane.b32.xlu0 %v1298_v36, %s1864_s15  ;;  %v1801_v41 = vld [vmem:[%s2954_s0 + $0x101] ss:$16 sm:%s1331_s18]   ;;  %v1372_v42 = vsel %vm14_vm2, %v1808_v39, %v1367_v40  ;;  %v1417_v55 = vsel %vm10_vm1, %v1815_v53, %v1412_v52  ;;  %s67_s18 = smov 3 }
  0x82   :  { %v1802_v43 = vld [vmem:[%s2954_s0 + $0x101] ss:$16 sm:%s1334_s11]   ;;  %1373 = vrot.lane.b32.xlu1 %v1372_v42, %s1864_s15 }
  0x83   :  { %v1803_v44 = vld [vmem:[%s2954_s0 + $0x101] ss:$16 sm:%s1339_s25]   ;;  %v1337_v46 = vsel %vm6_vm0, %v1802_v43, %v1801_v41  ;;  %v1816_v54 = vld [vmem:[%s2954_s0 + $0x8a] ss:$16 sm:%s1419_s24]   ;;  %s21_s25 = smov 3  ;;  %s12_s24 = smov 192 }
  0x84   :  { %v1804_v47 = vld [vmem:[%s2954_s0 + $0x101] ss:$16 sm:%s1344_s30]   ;;  %v1342_v48 = vsel %vm10_vm1, %v1803_v44, %v1337_v46  ;;  %v1809_v56 = vld [vmem:[%s2954_s0 + $0xa] ss:$16 sm:%s1381_s13]   ;;  %v1422_v58 = vsel %vm14_vm2, %v1816_v54, %v1417_v55  ;;  %s29_s30 = smov 48 }
  0x85   :  { %v2706_v45 = vpop.permute.xlu0 %127   ;;  %v1347_v51 = vsel %vm14_vm2, %v1804_v47, %v1342_v48  ;;  %v1810_v59 = vld [vmem:[%s2954_s0 + $0xa] ss:$16 sm:%s1384_s19]   ;;  %v1589_v16 = vld [vmem:[%s2954_s0 + $0x80] ss:$16 sm:%s21_s25]  }
  0x86   :  { %131 = vst.msk [vmem:[#allocation0 + $0x8] sm:$0xf] %vm129_vm4, %v2706_v45   ;;  %133 = vst.msk [vmem:[#allocation0 + $0x14] sm:$0xf0] %vm129_vm4, %v2706_v45   ;;  %1348 = vrot.lane.b32.xlu0 %v1347_v51, %s1864_s15  ;;  %v1811_v60 = vld [vmem:[%s2954_s0 + $0xa] ss:$16 sm:%s1389_s9]   ;;  %1423 = vrot.lane.b32.xlu1 %v1422_v58, %s1865_s7  ;;  %v1387_v61 = vsel %vm6_vm0, %v1810_v59, %v1809_v56 }
  0x87   :  { %v1812_v62 = vld [vmem:[%s2954_s0 + $0xa] ss:$16 sm:%s1394_s14]   ;;  %v1392_v63 = vsel %vm10_vm1, %v1811_v60, %v1387_v61  ;;  %s24_s14 = smov 12  ;;  %v1591_v19 = vld [vmem:[%s2954_s0 + $0x80] ss:$16 sm:%s29_s30]   ;;  %s70_s9 = smov 12 }
  0x88   :  { %v1821_v0 = vld [vmem:[%s2954_s0 + $0x18a] ss:$16 sm:%s1456_s28]   ;;  %v1397_v2 = vsel %vm14_vm2, %v1812_v62, %v1392_v63  ;;  %v1590_v17 = vld [vmem:[%s2954_s0 + $0x80] ss:$16 sm:%s24_s14]   ;;  %s80_s15 = smov 192 }
  0x89   :  { %v1822_v1 = vld [vmem:[%s2954_s0 + $0x18a] ss:$16 sm:%s1459_s17]   ;;  %v1592_v20 = vld [vmem:[%s2954_s0 + $0x80] ss:$16 sm:%s34_s2]   ;;  %v27_v21 = vsel %vm6_vm0, %v1590_v17, %v1589_v16 }
  0x8a   :  { %v1462_v3 = vsel %vm6_vm0, %v1822_v1, %v1821_v0  ;;  %v1823_v4 = vld [vmem:[%s2954_s0 + $0x18a] ss:$16 sm:%s1464_s5]   ;;  %1398 = vrot.lane.b32.xlu0 %v1397_v2, %s1865_s7  ;;  %s8_s5 = smov 48  ;;  %v32_v23 = vsel %vm10_vm1, %v1591_v19, %v27_v21 }
  0x8b   :  { %v1824_v5 = vld [vmem:[%s2954_s0 + $0x18a] ss:$16 sm:%s1469_s23]   ;;  %v1467_v6 = vsel %vm10_vm1, %v1823_v4, %v1462_v3  ;;  %v9_v24 = vld [vmem:[%s2954_s0] ss:$16 sm:%s8_s5]   ;;  %v37_v25 = vsel %vm14_vm2, %v1592_v20, %v32_v23 }
  0x8c   :  { %v1817_v7 = vld [vmem:[%s2954_s0 + $0x10a] ss:$16 sm:%s1431_s10]   ;;  %v1472_v9 = vsel %vm14_vm2, %v1824_v5, %v1467_v6  ;;  %v13_v26 = vld [vmem:[%s2954_s0] ss:$16 sm:%s12_s24]   ;;  %40 = vst.msk [vmem:[#allocation0 + $0x20] sm:$0xf] %vm16_vm5, %v37_v25  }
  0x8d   :  { %v2737_v57 = vpop.permute.xlu1 %276   ;;  %v1818_v10 = vld [vmem:[%s2954_s0 + $0x10a] ss:$16 sm:%s1434_s3]   ;;  %1473 = vrot.lane.b32.xlu1 %v1472_v9, %s1865_s7  ;;  %42 = vst.msk [vmem:[#allocation0 + $0x2c] sm:$0xf0] %vm16_vm5, %v37_v25   ;;  %s57_s10 = smov 192 }
  0x8e   :  { %280 = vst.msk [vmem:[#allocation0 + $0x68] sm:$0xf] %vm129_vm4, %v2737_v57   ;;  %282 = vst.msk [vmem:[#allocation0 + $0x74] sm:$0xf0] %vm129_vm4, %v2737_v57   ;;  %v1819_v11 = vld [vmem:[%s2954_s0 + $0x10a] ss:$16 sm:%s1439_s16]   ;;  %v1437_v13 = vsel %vm6_vm0, %v1818_v10, %v1817_v7 }
  0x8f   :  { %v1820_v14 = vld [vmem:[%s2954_s0 + $0x10a] ss:$16 sm:%s1444_s21]   ;;  %v1442_v15 = vsel %vm10_vm1, %v1819_v11, %v1437_v13  ;;  %s75_s21 = smov 48  ;;  %v3_v27 = vld [vmem:[%s2954_s0] ss:$16 sm:%s2_s29]  }
  0x90   :  { %v1447_v18 = vsel %vm14_vm2, %v1820_v14, %v1442_v15  ;;  %v5_v29 = vld [vmem:[%s2954_s0] ss:$16 sm:%s4_s6]  }
  0x91   :  { %v331_v12 = vpop.permute.xlu1 %330   ;;  %1448 = vrot.lane.b32.xlu0 %v1447_v18, %s1865_s7  ;;  %v1597_v30 = vld [vmem:[%s2954_s0 + $0x180] ss:$16 sm:%s67_s18]   ;;  %v7_v31 = vsel %vm6_vm0, %v5_v29, %v3_v27 }
  0x92   :  { %v1598_v33 = vld [vmem:[%s2954_s0 + $0x180] ss:$16 sm:%s70_s9]   ;;  %v11_v35 = vsel %vm10_vm1, %v9_v24, %v7_v31 }
  0x93   :  { %v1599_v34 = vld [vmem:[%s2954_s0 + $0x180] ss:$16 sm:%s75_s21]   ;;  %v73_v37 = vsel %vm6_vm0, %v1598_v33, %v1597_v30  ;;  %v15_v40 = vsel %vm14_vm2, %v13_v26, %v11_v35 }
  0x94   :  { %v1600_v36 = vld [vmem:[%s2954_s0 + $0x180] ss:$16 sm:%s80_s15]   ;;  %v78_v41 = vsel %vm10_vm1, %v1599_v34, %v73_v37  ;;  %17 = vst.msk [vmem:[#allocation0] sm:$0xf] %vm16_vm5, %v15_v40   ;;  %19 = vst.msk [vmem:[#allocation0 + $0xc] sm:$0xf0] %vm16_vm5, %v15_v40  }
  0x95   :  { %v177_v8 = vpop.permute.xlu0 %176   ;;  %v1593_v38 = vld [vmem:[%s2954_s0 + $0x100] ss:$16 sm:%s44_s27]   ;;  %v83_v44 = vsel %vm14_vm2, %v1600_v36, %v78_v41  ;;  %135 = vst.msk [vmem:[#allocation0] sm:$0xf] %vm134_vm6, %v2706_v45   ;;  %137 = vst.msk [vmem:[#allocation0 + $0xc] sm:$0xf0] %vm134_vm6, %v2706_v45  }
  0x96   :  { %180 = vst.msk [vmem:[#allocation0 + $0x28] sm:$0xf] %vm129_vm4, %v177_v8   ;;  %182 = vst.msk [vmem:[#allocation0 + $0x34] sm:$0xf0] %vm129_vm4, %v177_v8   ;;  %v1594_v42 = vld [vmem:[%s2954_s0 + $0x100] ss:$16 sm:%s47_s20]  }
  0x97   :  { %v381_v28 = vpop.permute.xlu1 %380   ;;  %185 = vst.msk [vmem:[#allocation0 + $0x20] sm:$0xf] %vm134_vm6, %v177_v8   ;;  %187 = vst.msk [vmem:[#allocation0 + $0x2c] sm:$0xf0] %vm134_vm6, %v177_v8   ;;  %v1595_v43 = vld [vmem:[%s2954_s0 + $0x100] ss:$16 sm:%s52_s4]   ;;  %v50_v47 = vsel %vm6_vm0, %v1594_v42, %v1593_v38 }
  0x98   :  { %334 = vst.msk [vmem:[#allocation0 + $0x20] sm:$0xf] %vm308_vm7, %v331_v12   ;;  %336 = vst.msk [vmem:[#allocation0 + $0x2c] sm:$0xf0] %vm308_vm7, %v331_v12   ;;  %v1596_v46 = vld [vmem:[%s2954_s0 + $0x100] ss:$16 sm:%s57_s10]   ;;  %v55_v45 = vsel %vm10_vm1, %v1595_v43, %v50_v47 }
  0x99   :  { %v307_v22 = vpop.permute.xlu0 %306   ;;  %86 = vst.msk [vmem:[#allocation0 + $0x60] sm:$0xf] %vm16_vm5, %v83_v44   ;;  %88 = vst.msk [vmem:[#allocation0 + $0x6c] sm:$0xf0] %vm16_vm5, %v83_v44   ;;  %v60_v49 = vsel %vm14_vm2, %v1596_v46, %v55_v45  ;;  %vm1201_vm0 = vcmask 326864   ;;  %vm1301_vm1 = vcmask 228464  }
  0x9a   :  { %309 = vst.msk [vmem:[#allocation0] sm:$0xf] %vm308_vm7, %v307_v22   ;;  %311 = vst.msk [vmem:[#allocation0 + $0xc] sm:$0xf0] %vm308_vm7, %v307_v22   ;;  %vm1400_vm2 = vcmask 212064  }
  0x9b   :  { %v430_v48 = vpop.permute.xlu1 %429   ;;  %285 = vst.msk [vmem:[#allocation0 + $0x60] sm:$0xf] %vm134_vm6, %v2737_v57   ;;  %287 = vst.msk [vmem:[#allocation0 + $0x6c] sm:$0xf0] %vm134_vm6, %v2737_v57  }
  0x9c   :  { %433 = vst.msk [vmem:[#allocation0 + $0x20] sm:$0xf] %vm407_vm8, %v430_v48   ;;  %435 = vst.msk [vmem:[#allocation0 + $0x2c] sm:$0xf0] %vm407_vm8, %v430_v48  }
  0x9d   :  { %v356_v39 = vpop.permute.xlu0 %355   ;;  %384 = vst.msk [vmem:[#allocation0 + $0x60] sm:$0xf] %vm308_vm7, %v381_v28   ;;  %386 = vst.msk [vmem:[#allocation0 + $0x6c] sm:$0xf0] %vm308_vm7, %v381_v28  }
  0x9e   :  { %63 = vst.msk [vmem:[#allocation0 + $0x40] sm:$0xf] %vm16_vm5, %v60_v49   ;;  %65 = vst.msk [vmem:[#allocation0 + $0x4c] sm:$0xf0] %vm16_vm5, %v60_v49  }
  0x9f   :  { %235 = vst.msk [vmem:[#allocation0 + $0x40] sm:$0xf] %vm134_vm6, %v2673_v32   ;;  %237 = vst.msk [vmem:[#allocation0 + $0x4c] sm:$0xf0] %vm134_vm6, %v2673_v32   ;;  %v480_v32 = vpop.permute.xlu1 %479  }
  0xa0   :  { %359 = vst.msk [vmem:[#allocation0 + $0x40] sm:$0xf] %vm308_vm7, %v356_v39   ;;  %361 = vst.msk [vmem:[#allocation0 + $0x4c] sm:$0xf0] %vm308_vm7, %v356_v39  }
  0xa1   :  { %v406_v50 = vpop.permute.xlu0 %405   ;;  %483 = vst.msk [vmem:[#allocation0 + $0x60] sm:$0xf] %vm407_vm8, %v480_v32   ;;  %485 = vst.msk [vmem:[#allocation0 + $0x6c] sm:$0xf0] %vm407_vm8, %v480_v32  }
  0xa2   :  { %408 = vst.msk [vmem:[#allocation0] sm:$0xf] %vm407_vm8, %v406_v50   ;;  %410 = vst.msk [vmem:[#allocation0 + $0xc] sm:$0xf0] %vm407_vm8, %v406_v50  }
  0xa3   :  { %v529_v52 = vpop.permute.xlu1 %528  }
  0xa4   :  { %532 = vst.msk [vmem:[#allocation0 + $0x20] sm:$0xf] %vm506_vm9, %v529_v52   ;;  %534 = vst.msk [vmem:[#allocation0 + $0x2c] sm:$0xf0] %vm506_vm9, %v529_v52  }
  0xa5   :  { %v455_v51 = vpop.permute.xlu0 %454  }
  0xa6   :  { %458 = vst.msk [vmem:[#allocation0 + $0x40] sm:$0xf] %vm407_vm8, %v455_v51   ;;  %460 = vst.msk [vmem:[#allocation0 + $0x4c] sm:$0xf0] %vm407_vm8, %v455_v51  }
  0xa7   :  { %v579_v54 = vpop.permute.xlu1 %578  }
  0xa8   :  { %582 = vst.msk [vmem:[#allocation0 + $0x60] sm:$0xf] %vm506_vm9, %v579_v54   ;;  %584 = vst.msk [vmem:[#allocation0 + $0x6c] sm:$0xf0] %vm506_vm9, %v579_v54  }
  0xa9   :  { %v505_v53 = vpop.permute.xlu0 %504  }
  0xaa   :  { %507 = vst.msk [vmem:[#allocation0] sm:$0xf] %vm506_vm9, %v505_v53   ;;  %509 = vst.msk [vmem:[#allocation0 + $0xc] sm:$0xf0] %vm506_vm9, %v505_v53  }
  0xab   :  { %v628_v56 = vpop.permute.xlu1 %627  }
  0xac   :  { %631 = vst.msk [vmem:[#allocation0 + $0x20] sm:$0xf] %vm605_vm10, %v628_v56   ;;  %633 = vst.msk [vmem:[#allocation0 + $0x2c] sm:$0xf0] %vm605_vm10, %v628_v56  }
  0xad   :  { %v554_v55 = vpop.permute.xlu0 %553  }
  0xae   :  { %557 = vst.msk [vmem:[#allocation0 + $0x40] sm:$0xf] %vm506_vm9, %v554_v55   ;;  %559 = vst.msk [vmem:[#allocation0 + $0x4c] sm:$0xf0] %vm506_vm9, %v554_v55  }
  0xb1   :  { %v604_v57 = vpop.permute.xlu0 %603  }
  0xb2   :  { %606 = vst.msk [vmem:[#allocation0] sm:$0xf] %vm605_vm10, %v604_v57   ;;  %608 = vst.msk [vmem:[#allocation0 + $0xc] sm:$0xf0] %vm605_vm10, %v604_v57  }
  0xb3   :  { %v678_v58 = vpop.permute.xlu1 %677  }
  0xb4   :  { %681 = vst.msk [vmem:[#allocation0 + $0x60] sm:$0xf] %vm605_vm10, %v678_v58   ;;  %683 = vst.msk [vmem:[#allocation0 + $0x6c] sm:$0xf0] %vm605_vm10, %v678_v58  }
  0xb7   :  { %v653_v59 = vpop.permute.xlu0 %652   ;;  %v727_v60 = vpop.permute.xlu1 %726  }
  0xb8   :  { %656 = vst.msk [vmem:[#allocation0 + $0x40] sm:$0xf] %vm605_vm10, %v653_v59   ;;  %658 = vst.msk [vmem:[#allocation0 + $0x4c] sm:$0xf0] %vm605_vm10, %v653_v59  }
  0xb9   :  { %730 = vst.msk [vmem:[#allocation0 + $0x20] sm:$0xf] %vm704_vm11, %v727_v60   ;;  %732 = vst.msk [vmem:[#allocation0 + $0x2c] sm:$0xf0] %vm704_vm11, %v727_v60  }
  0xbb   :  { %v703_v61 = vpop.permute.xlu0 %702   ;;  %v777_v62 = vpop.permute.xlu1 %776  }
  0xbc   :  { %705 = vst.msk [vmem:[#allocation0] sm:$0xf] %vm704_vm11, %v703_v61   ;;  %707 = vst.msk [vmem:[#allocation0 + $0xc] sm:$0xf0] %vm704_vm11, %v703_v61  }
  0xbd   :  { %780 = vst.msk [vmem:[#allocation0 + $0x60] sm:$0xf] %vm704_vm11, %v777_v62   ;;  %782 = vst.msk [vmem:[#allocation0 + $0x6c] sm:$0xf0] %vm704_vm11, %v777_v62  }
  0xbf   :  { %v752_v63 = vpop.permute.xlu0 %751   ;;  %v827_v0 = vpop.permute.xlu1 %826  }
  0xc0   :  { %755 = vst.msk [vmem:[#allocation0 + $0x40] sm:$0xf] %vm704_vm11, %v752_v63   ;;  %757 = vst.msk [vmem:[#allocation0 + $0x4c] sm:$0xf0] %vm704_vm11, %v752_v63  }
  0xc1   :  { %830 = vst.msk [vmem:[#allocation0 + $0x28] sm:$0xf] %vm803_vm12, %v827_v0   ;;  %832 = vst.msk [vmem:[#allocation0 + $0x34] sm:$0xf0] %vm803_vm12, %v827_v0  }
  0xc3   :  { %v802_v1 = vpop.permute.xlu0 %801  }
  0xc4   :  { %805 = vst.msk [vmem:[#allocation0 + $0x8] sm:$0xf] %vm803_vm12, %v802_v1   ;;  %807 = vst.msk [vmem:[#allocation0 + $0x14] sm:$0xf0] %vm803_vm12, %v802_v1  }
  0xc5   :  { %v877_v2 = vpop.permute.xlu1 %876  }
  0xc6   :  { %880 = vst.msk [vmem:[#allocation0 + $0x68] sm:$0xf] %vm803_vm12, %v877_v2   ;;  %882 = vst.msk [vmem:[#allocation0 + $0x74] sm:$0xf0] %vm803_vm12, %v877_v2  }
  0xc9   :  { %v852_v3 = vpop.permute.xlu0 %851   ;;  %v926_v4 = vpop.permute.xlu1 %925  }
  0xca   :  { %855 = vst.msk [vmem:[#allocation0 + $0x48] sm:$0xf] %vm803_vm12, %v852_v3   ;;  %857 = vst.msk [vmem:[#allocation0 + $0x54] sm:$0xf0] %vm803_vm12, %v852_v3  }
  0xcb   :  { %929 = vst.msk [vmem:[#allocation0 + $0x20] sm:$0xf] %vm903_vm13, %v926_v4   ;;  %931 = vst.msk [vmem:[#allocation0 + $0x2c] sm:$0xf0] %vm903_vm13, %v926_v4  }
  0xcd   :  { %v902_v5 = vpop.permute.xlu0 %901  }
  0xce   :  { %904 = vst.msk [vmem:[#allocation0] sm:$0xf] %vm903_vm13, %v902_v5   ;;  %906 = vst.msk [vmem:[#allocation0 + $0xc] sm:$0xf0] %vm903_vm13, %v902_v5   ;;  %v976_v6 = vpop.permute.xlu1 %975  }
  0xcf   :  { %979 = vst.msk [vmem:[#allocation0 + $0x60] sm:$0xf] %vm903_vm13, %v976_v6   ;;  %981 = vst.msk [vmem:[#allocation0 + $0x6c] sm:$0xf0] %vm903_vm13, %v976_v6  }
  0xd2   :  { %v951_v7 = vpop.permute.xlu0 %950   ;;  %v1026_v8 = vpop.permute.xlu1 %1025  }
  0xd3   :  { %954 = vst.msk [vmem:[#allocation0 + $0x40] sm:$0xf] %vm903_vm13, %v951_v7   ;;  %956 = vst.msk [vmem:[#allocation0 + $0x4c] sm:$0xf0] %vm903_vm13, %v951_v7  }
  0xd4   :  { %1029 = vst.msk [vmem:[#allocation0 + $0x28] sm:$0xf] %vm1002_vm14, %v1026_v8   ;;  %1031 = vst.msk [vmem:[#allocation0 + $0x34] sm:$0xf0] %vm1002_vm14, %v1026_v8  }
  0xd6   :  { %v1001_v9 = vpop.permute.xlu0 %1000  }
  0xd7   :  { %1004 = vst.msk [vmem:[#allocation0 + $0x8] sm:$0xf] %vm1002_vm14, %v1001_v9   ;;  %1006 = vst.msk [vmem:[#allocation0 + $0x14] sm:$0xf0] %vm1002_vm14, %v1001_v9  }
  0xd8   :  { %v1076_v10 = vpop.permute.xlu1 %1075  }
  0xd9   :  { %1079 = vst.msk [vmem:[#allocation0 + $0x68] sm:$0xf] %vm1002_vm14, %v1076_v10   ;;  %1081 = vst.msk [vmem:[#allocation0 + $0x74] sm:$0xf0] %vm1002_vm14, %v1076_v10  }
  0xdc   :  { %v1051_v11 = vpop.permute.xlu0 %1050   ;;  %v1125_v12 = vpop.permute.xlu1 %1124  }
  0xdd   :  { %1054 = vst.msk [vmem:[#allocation0 + $0x48] sm:$0xf] %vm1002_vm14, %v1051_v11   ;;  %1056 = vst.msk [vmem:[#allocation0 + $0x54] sm:$0xf0] %vm1002_vm14, %v1051_v11  }
  0xde   :  { %1128 = vst.msk [vmem:[#allocation0 + $0x20] sm:$0xf] %vm1102_vm15, %v1125_v12   ;;  %1130 = vst.msk [vmem:[#allocation0 + $0x2c] sm:$0xf0] %vm1102_vm15, %v1125_v12  }
  0xe0   :  { %v1101_v13 = vpop.permute.xlu0 %1100  }
  0xe1   :  { %1103 = vst.msk [vmem:[#allocation0] sm:$0xf] %vm1102_vm15, %v1101_v13   ;;  %1105 = vst.msk [vmem:[#allocation0 + $0xc] sm:$0xf0] %vm1102_vm15, %v1101_v13   ;;  %v1175_v14 = vpop.permute.xlu1 %1174  }
  0xe2   :  { %1178 = vst.msk [vmem:[#allocation0 + $0x60] sm:$0xf] %vm1102_vm15, %v1175_v14   ;;  %1180 = vst.msk [vmem:[#allocation0 + $0x6c] sm:$0xf0] %vm1102_vm15, %v1175_v14  }
  0xe5   :  { %v1150_v15 = vpop.permute.xlu0 %1149   ;;  %v1225_v16 = vpop.permute.xlu1 %1224  }
  0xe6   :  { %1153 = vst.msk [vmem:[#allocation0 + $0x40] sm:$0xf] %vm1102_vm15, %v1150_v15   ;;  %1155 = vst.msk [vmem:[#allocation0 + $0x4c] sm:$0xf0] %vm1102_vm15, %v1150_v15  }
  0xe7   :  { %1228 = vst.msk [vmem:[#allocation0 + $0x28] sm:$0xf] %vm1201_vm0, %v1225_v16   ;;  %1230 = vst.msk [vmem:[#allocation0 + $0x34] sm:$0xf0] %vm1201_vm0, %v1225_v16  }
  0xe9   :  { %v1200_v17 = vpop.permute.xlu0 %1199  }
  0xea   :  { %1203 = vst.msk [vmem:[#allocation0 + $0x8] sm:$0xf] %vm1201_vm0, %v1200_v17   ;;  %1205 = vst.msk [vmem:[#allocation0 + $0x14] sm:$0xf0] %vm1201_vm0, %v1200_v17  }
  0xeb   :  { %v1275_v18 = vpop.permute.xlu1 %1274  }
  0xec   :  { %1278 = vst.msk [vmem:[#allocation0 + $0x68] sm:$0xf] %vm1201_vm0, %v1275_v18   ;;  %1280 = vst.msk [vmem:[#allocation0 + $0x74] sm:$0xf0] %vm1201_vm0, %v1275_v18  }
  0xef   :  { %v1250_v19 = vpop.permute.xlu0 %1249   ;;  %v1324_v20 = vpop.permute.xlu1 %1323  }
  0xf0   :  { %1253 = vst.msk [vmem:[#allocation0 + $0x48] sm:$0xf] %vm1201_vm0, %v1250_v19   ;;  %1255 = vst.msk [vmem:[#allocation0 + $0x54] sm:$0xf0] %vm1201_vm0, %v1250_v19  }
  0xf1   :  { %1327 = vst.msk [vmem:[#allocation0 + $0x20] sm:$0xf] %vm1301_vm1, %v1324_v20   ;;  %1329 = vst.msk [vmem:[#allocation0 + $0x2c] sm:$0xf0] %vm1301_vm1, %v1324_v20  }
  0xf3   :  { %v1300_v21 = vpop.permute.xlu0 %1299  }
  0xf4   :  { %1302 = vst.msk [vmem:[#allocation0] sm:$0xf] %vm1301_vm1, %v1300_v21   ;;  %1304 = vst.msk [vmem:[#allocation0 + $0xc] sm:$0xf0] %vm1301_vm1, %v1300_v21   ;;  %v1374_v22 = vpop.permute.xlu1 %1373  }
  0xf5   :  { %1377 = vst.msk [vmem:[#allocation0 + $0x60] sm:$0xf] %vm1301_vm1, %v1374_v22   ;;  %1379 = vst.msk [vmem:[#allocation0 + $0x6c] sm:$0xf0] %vm1301_vm1, %v1374_v22  }
  0xf8   :  { %v1504_v23 = vld [vmem:[#allocation0 + $0x20] sm:$0xf]  ;;  %v1516_v24 = vld [vmem:[#allocation0 + $0x30] sm:$0xf]  ;;  %v1349_v25 = vpop.permute.xlu0 %1348   ;;  %v1424_v26 = vpop.permute.xlu1 %1423  }
  0xf9   :  { %1828 = vst [vmem:[%s2955_s1 + $0x10] sm:$0xf] %v1504_v23  ;;  %1830 = vst [vmem:[%s2955_s1 + $0x18] sm:$0xf] %v1516_v24 }
  0xfa   :  { %1352 = vst.msk [vmem:[#allocation0 + $0x40] sm:$0xf] %vm1301_vm1, %v1349_v25   ;;  %1354 = vst.msk [vmem:[#allocation0 + $0x4c] sm:$0xf0] %vm1301_vm1, %v1349_v25  }
  0xfb   :  { %v1483_v27 = vld [vmem:[#allocation0] sm:$0xf]  ;;  %v1492_v28 = vld [vmem:[#allocation0 + $0x10] sm:$0xf]  ;;  %1427 = vst.msk [vmem:[#allocation0 + $0x28] sm:$0xf] %vm1400_vm2, %v1424_v26  }
  0xfc   :  { %1429 = vst.msk [vmem:[#allocation0 + $0x34] sm:$0xf0] %vm1400_vm2, %v1424_v26   ;;  %1485 = vst [vmem:[%s2955_s1] sm:$0xf] %v1483_v27  ;;  %v1552_v29 = vld [vmem:[#allocation0 + $0x60] sm:$0xf]  ;;  %v1399_v31 = vpop.permute.xlu0 %1398  }
  0xfd   :  { %1826 = vst [vmem:[%s2955_s1 + $0x8] sm:$0xf] %v1492_v28  ;;  %v1564_v30 = vld [vmem:[#allocation0 + $0x70] sm:$0xf]  ;;  %1836 = vst [vmem:[%s2955_s1 + $0x30] sm:$0xf] %v1552_v29 }
  0xfe   :  { %1838 = vst [vmem:[%s2955_s1 + $0x38] sm:$0xf] %v1564_v30  ;;  %1402 = vst.msk [vmem:[#allocation0 + $0x8] sm:$0xf] %vm1400_vm2, %v1399_v31  }
  0xff   :  { %1404 = vst.msk [vmem:[#allocation0 + $0x14] sm:$0xf0] %vm1400_vm2, %v1399_v31   ;;  %v1474_v33 = vpop.permute.xlu1 %1473  }
 0x100   :  { %1477 = vst.msk [vmem:[#allocation0 + $0x68] sm:$0xf] %vm1400_vm2, %v1474_v33   ;;  %1479 = vst.msk [vmem:[#allocation0 + $0x74] sm:$0xf0] %vm1400_vm2, %v1474_v33  }
 0x101   :  { %v1528_v34 = vld [vmem:[#allocation0 + $0x40] sm:$0xf]  ;;  %v1540_v35 = vld [vmem:[#allocation0 + $0x50] sm:$0xf] }
 0x102   :  { %1832 = vst [vmem:[%s2955_s1 + $0x20] sm:$0xf] %v1528_v34  ;;  %1834 = vst [vmem:[%s2955_s1 + $0x28] sm:$0xf] %v1540_v35  ;;  %v1510_v36 = vld [vmem:[#allocation0 + $0x28] sm:$0xf] }
 0x103   :  { %v1522_v37 = vld [vmem:[#allocation0 + $0x38] sm:$0xf]  ;;  %v1449_v38 = vpop.permute.xlu0 %1448   ;;  %1829 = vst [vmem:[%s2955_s1 + $0x14] sm:$0xf] %v1510_v36 }
 0x104   :  { %1831 = vst [vmem:[%s2955_s1 + $0x1c] sm:$0xf] %v1522_v37  ;;  %1452 = vst.msk [vmem:[#allocation0 + $0x48] sm:$0xf] %vm1400_vm2, %v1449_v38  }
 0x105   :  { %1454 = vst.msk [vmem:[#allocation0 + $0x54] sm:$0xf0] %vm1400_vm2, %v1449_v38   ;;  %v1487_v39 = vld [vmem:[#allocation0 + $0x8] sm:$0xf] }
 0x106   :  { %v1498_v40 = vld [vmem:[#allocation0 + $0x18] sm:$0xf]  ;;  %1825 = vst [vmem:[%s2955_s1 + $0x4] sm:$0xf] %v1487_v39 }
 0x107   :  { %1827 = vst [vmem:[%s2955_s1 + $0xc] sm:$0xf] %v1498_v40  ;;  %v1558_v41 = vld [vmem:[#allocation0 + $0x68] sm:$0xf]  ;;  %v1570_v42 = vld [vmem:[#allocation0 + $0x78] sm:$0xf] }
 0x108   :  { %1837 = vst [vmem:[%s2955_s1 + $0x34] sm:$0xf] %v1558_v41  ;;  %1839 = vst [vmem:[%s2955_s1 + $0x3c] sm:$0xf] %v1570_v42 }
 0x10b   :  { %v1534_v43 = vld [vmem:[#allocation0 + $0x48] sm:$0xf] }
 0x10c   :  { %v1546_v44 = vld [vmem:[#allocation0 + $0x58] sm:$0xf]  ;;  %1833 = vst [vmem:[%s2955_s1 + $0x24] sm:$0xf] %v1534_v43 }
 0x10d   :  { %1835 = vst [vmem:[%s2955_s1 + $0x2c] sm:$0xf] %v1546_v44 }

// kernel: dipnet_forward.1
= control target key start
LH: loop header
LB: loop body
LE: loop exit
PB: predicated region body
PF: predicated region fallthrough
CT: control target
= control target key end

     0   :  { %s3333_s0 = inlined_call_operand.vmem [shape: s32[16], index: 0, kind: input, shape index: {}]   ;;  %s3334_s1 = inlined_call_operand.vmem [shape: bf16[64,640], index: 1, kind: input, shape index: {}]   ;;  %s3335_s2 = inlined_call_operand.vmem [shape: bf16[640,128], index: 2, kind: input, shape index: {}]   ;;  %s3336_s3 = inlined_call_operand.vmem [shape: bf16[128,256], index: 3, kind: input, shape index: {}]   ;;  %s3337_s4 = inlined_call_operand.vmem [shape: f32[1,256], index: 4, kind: input, shape index: {}]   ;;  %s3338_s5 = inlined_call_operand.vmem [shape: bf16[256,128], index: 5, kind: input, shape index: {}]   ;;  %s3339_s6 = inlined_call_operand.vmem [shape: f32[3,128], index: 6, kind: input, shape index: {}]   ;;  %s3340_s7 = inlined_call_operand.vmem [shape: bf16[2,128,128], index: 7, kind: input, shape index: {}]   ;;  %s3341_s8 = inlined_call_operand.vmem [shape: f32[2,16,128], index: 8, kind: output, shape index: {}]  }
   0x1   :  { %s13_s29 = sshll.u32 %s3333_s0, 4  ;;  %s14_s29 = int_to_ptr.vmem [resolvable:$true] %s13_s29 }
   0x2   :  { %s2615_s30 = scalar_lea.vmem %s14_s29, 16  ;;  %p2620_p1 = scmp.lt.s32.totalorder %s14_s29, %s14_s29 }
   0x3   :  { %p2616_p0 = scmp.ne.s32.totalorder %s14_s29, %s2615_s30  ;;  %p2621_p2 = scmp.lt.s32.totalorder %s2615_s30, %s2615_s30 }
   0x5   :  { %p2622_p3 = por %p2621_p2, %p2620_p1 }
   0x7   :  { %p2623_p4 = pnand %p2622_p3, %p2616_p0 }
   0x9   :  { %2626 = shalt.err (!%p2623_p4)  }
   0xa   :  { %s2629_s9 = smov [#allocation5]  }
   0xb   :  { %16 = dma.vmem_to_smem %s14_s29, 16, %s2629_s9, [#allocation4] }
   0xc   :  { %2627 = dma.done.wait [#allocation4], 16 }
   0xd   :  { %2628 = vsyncadd [#allocation4], 4294967280 }
   0xe   :  { %18 = sfence }
   0xf   :  { %v2411_v0 = vld [vmem:[%s3335_s2 + $0x40] sm:$0xff]   ;;  %v2415_v4 = vld [vmem:[%s3335_s2 + $0x48] sm:$0xff]   ;;  %v2419_v8 = vld [vmem:[%s3335_s2 + $0x50] sm:$0xff]   ;;  %vm2632_vm0 = vmmov 0   ;;  %s2020_s27 = sld [smem:[#allocation5 + $0x1]]  ;;  %s2023_s9 = sld [smem:[#allocation5 + $0x2]] }
  0x10   :  { %v2412_v1 = vld [vmem:[%s3335_s2 + $0xc0] sm:$0xff]   ;;  %2135 = vmatprep.subr.bf16.mxu0 %v2411_v0  ;;  %v2416_v5 = vld [vmem:[%s3335_s2 + $0xc8] sm:$0xff]   ;;  %v2420_v9 = vld [vmem:[%s3335_s2 + $0xd0] sm:$0xff]   ;;  %s2026_s0 = sld [smem:[#allocation5 + $0x3]]  ;;  %s2029_s19 = sld [smem:[#allocation5 + $0x4]] }
  0x11   :  { %v2413_v2 = vld [vmem:[%s3335_s2] sm:$0xff]   ;;  %2175 = vmatprep.subr.bf16.mxu1 %v2412_v1  ;;  %v2417_v6 = vld [vmem:[%s3335_s2 + $0x8] sm:$0xff]   ;;  %v2421_v10 = vld [vmem:[%s3335_s2 + $0x10] sm:$0xff]   ;;  %s2032_s23 = sld [smem:[#allocation5 + $0x5]] }
  0x12   :  { %v2414_v3 = vld [vmem:[%s3335_s2 + $0x80] sm:$0xff]   ;;  %2136 = vmatpush3.bf16.msra.mxu0 %v2413_v2  ;;  %v2418_v7 = vld [vmem:[%s3335_s2 + $0x88] sm:$0xff]   ;;  %v2422_v11 = vld [vmem:[%s3335_s2 + $0x90] sm:$0xff]  }
  0x13   :  { %2176 = vmatpush3.bf16.msra.mxu1 %v2414_v3  ;;  %2137 = vmatprep.subr.bf16.mxu0 %v2415_v4  ;;  %v2423_v12 = vld [vmem:[%s3335_s2 + $0x58] sm:$0xff]   ;;  %v2427_v16 = vld [vmem:[%s3335_s2 + $0x60] sm:$0xff]   ;;  %v2431_v20 = vld [vmem:[%s3335_s2 + $0x68] sm:$0xff]  }
  0x14   :  { %2177 = vmatprep.subr.bf16.mxu1 %v2416_v5  ;;  %v2424_v13 = vld [vmem:[%s3335_s2 + $0xd8] sm:$0xff]   ;;  %v2428_v17 = vld [vmem:[%s3335_s2 + $0xe0] sm:$0xff]   ;;  %v2432_v21 = vld [vmem:[%s3335_s2 + $0xe8] sm:$0xff]  }
  0x15   :  { %v2425_v14 = vld [vmem:[%s3335_s2 + $0x18] sm:$0xff]   ;;  %v2429_v18 = vld [vmem:[%s3335_s2 + $0x20] sm:$0xff]   ;;  %v2433_v22 = vld [vmem:[%s3335_s2 + $0x28] sm:$0xff]   ;;  %s2105_s30 = sshll.u32 %s2020_s27, 4 }
  0x16   :  { %2138 = vmatpush3.bf16.msra.mxu0 %v2417_v6  ;;  %v2426_v15 = vld [vmem:[%s3335_s2 + $0x98] sm:$0xff]   ;;  %v2430_v19 = vld [vmem:[%s3335_s2 + $0xa0] sm:$0xff]   ;;  %v2434_v23 = vld [vmem:[%s3335_s2 + $0xa8] sm:$0xff]   ;;  %s2106_s11 = sadd.s32 32, %s2105_s30  ;;  %s2109_s18 = sshll.u32 %s2026_s0, 4 }
  0x17   :  { %2178 = vmatpush3.bf16.msra.mxu1 %v2418_v7  ;;  %2139 = vmatprep.subr.bf16.mxu0 %v2419_v8  ;;  %v2435_v24 = vld [vmem:[%s3335_s2 + $0x70] sm:$0xff]   ;;  %v2439_v28 = vld [vmem:[%s3335_s2 + $0x78] sm:$0xff]   ;;  %v2448_v35 = vld [vmem:[%s3334_s1 + $0xc] ss:$20 sps:$4 sm:$0xff]   ;;  %s1408_s12 = sshra.s32 %s2106_s11, 4  ;;  %s2110_s20 = sadd.s32 32, %s2109_s18 }
  0x18   :  { %2179 = vmatprep.subr.bf16.mxu1 %v2420_v9  ;;  %v2436_v25 = vld [vmem:[%s3335_s2 + $0xf0] sm:$0xff]   ;;  %v2440_v29 = vld [vmem:[%s3335_s2 + $0xf8] sm:$0xff]   ;;  %v2449_v36 = vld [vmem:[%s3335_s2 + $0x100] sm:$0xff]   ;;  %579 = vmatprep.mubr.bf16.mxu1 %v2448_v35  ;;  %s2022_s14 = sshll.u32 %s1408_s12, 3  ;;  %s2111_s22 = sshll.u32 %s2029_s19, 4 }
  0x19   :  { %v2437_v26 = vld [vmem:[%s3335_s2 + $0x30] sm:$0xff]   ;;  %v2441_v30 = vld [vmem:[%s3335_s2 + $0x38] sm:$0xff]   ;;  %v2450_v37 = vld [vmem:[%s3335_s2 + $0x108] sm:$0xff]   ;;  %s1411_s17 = scalar_lea.vmem [#allocation2], %s2022_s14  ;;  %s2112_s25 = sadd.s32 32, %s2111_s22 }
  0x1a   :  { %2140 = vmatpush3.bf16.msra.mxu0 %v2421_v10  ;;  %v2438_v27 = vld [vmem:[%s3335_s2 + $0xb0] sm:$0xff]   ;;  %v2442_v31 = vld [vmem:[%s3335_s2 + $0xb8] sm:$0xff]   ;;  %v2451_v38 = vld [vmem:[%s3334_s1 + $0x2c] ss:$20 sps:$4 sm:$0xff]  }
  0x1b   :  { %2180 = vmatpush3.bf16.msra.mxu1 %v2422_v11  ;;  %2141 = vmatprep.subr.bf16.mxu0 %v2423_v12  ;;  %v2443_v32 = vld [vmem:[%s3334_s1] ss:$20 sps:$4 sm:$0xff]   ;;  %v2445_v33 = vld [vmem:[%s3334_s1 + $0x4] ss:$20 sps:$4 sm:$0xff]   ;;  %v2446_v34 = vld [vmem:[%s3334_s1 + $0x8] ss:$20 sps:$4 sm:$0xff]  }
  0x1c   :  { %2181 = vmatprep.subr.bf16.mxu1 %v2424_v13  ;;  %514 = vmatprep.mubr.bf16.mxu0 %v2445_v33  ;;  %v2453_v39 = vld [vmem:[%s3334_s1 + $0x34] ss:$20 sps:$4 sm:$0xff]   ;;  %v2456_v42 = vld [vmem:[%s3334_s1 + $0x30] ss:$20 sps:$4 sm:$0xff]   ;;  %v2458_v44 = vld [vmem:[%s3335_s2 + $0x118] sm:$0xff]   ;;  %v2630_v12 = vmov 0  }
  0x1d   :  { %v2455_v40 = vld [vmem:[%s3334_s1 + $0x28] ss:$20 sps:$4 sm:$0xff]   ;;  %v2457_v41 = vld [vmem:[%s3335_s2 + $0x110] sm:$0xff]   ;;  %v2465_v46 = vld [vmem:[%s3335_s2 + $0x120] sm:$0xff]  }
  0x1e   :  { %2142 = vmatpush3.bf16.msra.mxu0 %v2425_v14  ;;  %v2459_v43 = vld [vmem:[%s3334_s1 + $0x54] ss:$20 sps:$4 sm:$0xff]   ;;  %v2461_v45 = vld [vmem:[%s3334_s1 + $0x5c] ss:$20 sps:$4 sm:$0xff]   ;;  %v2464_v48 = vld [vmem:[%s3334_s1 + $0x58] ss:$20 sps:$4 sm:$0xff]  }
  0x1f   :  { %2182 = vmatpush3.bf16.msra.mxu1 %v2426_v15  ;;  %2143 = vmatprep.subr.bf16.mxu0 %v2427_v16  ;;  %v2463_v47 = vld [vmem:[%s3334_s1 + $0x50] ss:$20 sps:$4 sm:$0xff]   ;;  %v2466_v51 = vld [vmem:[%s3335_s2 + $0x128] sm:$0xff]   ;;  %v2472_v54 = vld [vmem:[%s3334_s1 + $0x80] ss:$20 sps:$4 sm:$0xff]  }
  0x20   :  { %2183 = vmatprep.subr.bf16.mxu1 %v2428_v17  ;;  %v2467_v49 = vld [vmem:[%s3334_s1 + $0x7c] ss:$20 sps:$4 sm:$0xff]   ;;  %v2469_v50 = vld [vmem:[%s3334_s1 + $0x84] ss:$20 sps:$4 sm:$0xff]   ;;  %v2477_v58 = vld [vmem:[%s3334_s1 + $0x60] ss:$20 sps:$4 sm:$0xff]  }
  0x21   :  { %v2471_v52 = vld [vmem:[%s3334_s1 + $0x78] ss:$20 sps:$4 sm:$0xff]   ;;  %v2473_v53 = vld [vmem:[%s3335_s2 + $0x130] sm:$0xff]   ;;  %v2478_v59 = vld [vmem:[%s3334_s1 + $0x88] ss:$20 sps:$4 sm:$0xff]  }
  0x22   :  { %2144 = vmatpush3.bf16.msra.mxu0 %v2429_v18  ;;  %v2475_v55 = vld [vmem:[%s3334_s1 + $0x10] ss:$20 sps:$4 sm:$0xff]   ;;  %v2474_v56 = vld [vmem:[%s3335_s2 + $0x138] sm:$0xff]   ;;  %v2479_v61 = vld [vmem:[%s3336_s3] ss:$8 sps:$4 sm:$0xff]   ;;  %s2107_s2 = sshll.u32 %s2023_s9, 4 }
  0x23   :  { %2184 = vmatpush3.bf16.msra.mxu1 %v2430_v19  ;;  %2145 = vmatprep.subr.bf16.mxu0 %v2431_v20  ;;  %v2476_v57 = vld [vmem:[%s3334_s1 + $0x38] ss:$20 sps:$4 sm:$0xff]   ;;  %v2484_v62 = vld [vmem:[%s3336_s3 + $0x14] ss:$8 sps:$4 sm:$0xff]   ;;  %v2485_v1 = vld [vmem:[%s3336_s3 + $0x20] ss:$8 sps:$4 sm:$0xff]  }
  0x24   :  { %2185 = vmatprep.subr.bf16.mxu1 %v2432_v21  ;;  %v2481_v60 = vld [vmem:[%s3336_s3 + $0x4] ss:$8 sps:$4 sm:$0xff]   ;;  %v2482_v63 = vld [vmem:[%s3336_s3 + $0x10] ss:$8 sps:$4 sm:$0xff]   ;;  %v2490_v2 = vld [vmem:[%s3336_s3 + $0x34] ss:$8 sps:$4 sm:$0xff]  }
  0x25   :  { %v2487_v0 = vld [vmem:[%s3336_s3 + $0x24] ss:$8 sps:$4 sm:$0xff]   ;;  %v2488_v3 = vld [vmem:[%s3336_s3 + $0x30] ss:$8 sps:$4 sm:$0xff]   ;;  %v2491_v5 = vld [vmem:[%s3336_s3 + $0x40] ss:$8 sps:$4 sm:$0xff]  }
  0x26   :  { %2146 = vmatpush3.bf16.msra.mxu0 %v2433_v22  ;;  %v2493_v4 = vld [vmem:[%s3336_s3 + $0x44] ss:$8 sps:$4 sm:$0xff]   ;;  %v2496_v6 = vld [vmem:[%s3336_s3 + $0x54] ss:$8 sps:$4 sm:$0xff]   ;;  %v2494_v7 = vld [vmem:[%s3336_s3 + $0x50] ss:$8 sps:$4 sm:$0xff]  }
  0x27   :  { %2186 = vmatpush3.bf16.msra.mxu1 %v2434_v23  ;;  %2147 = vmatprep.subr.bf16.mxu0 %v2435_v24  ;;  %v2499_v8 = vld [vmem:[%s3336_s3 + $0x64] ss:$8 sps:$4 sm:$0xff]   ;;  %v2497_v9 = vld [vmem:[%s3336_s3 + $0x60] ss:$8 sps:$4 sm:$0xff]   ;;  %v2502_v10 = vld [vmem:[%s3336_s3 + $0x74] ss:$8 sps:$4 sm:$0xff]  }
  0x28   :  { %2187 = vmatprep.subr.bf16.mxu1 %v2436_v25  ;;  %v2500_v11 = vld [vmem:[%s3336_s3 + $0x70] ss:$8 sps:$4 sm:$0xff]   ;;  %s2108_s15 = sadd.s32 32, %s2107_s2  ;;  %s1426_s1 = sshra.s32 %s2110_s20, 4 }
  0x29   :  { %s1417_s16 = sshra.s32 %s2108_s15, 4  ;;  %s2028_s24 = sshll.u32 %s1426_s1, 3 }
  0x2a   :  { %2148 = vmatpush3.bf16.msra.mxu0 %v2437_v26  ;;  %s2025_s3 = sshll.u32 %s1417_s16, 3 }
  0x2b   :  { %2188 = vmatpush3.bf16.msra.mxu1 %v2438_v27  ;;  %2149 = vmatprep.subr.bf16.mxu0 %v2439_v28  ;;  %s1420_s21 = scalar_lea.vmem [#allocation2], %s2025_s3 }
  0x2c   :  { %2189 = vmatprep.subr.bf16.mxu1 %v2440_v29 }
  0x2e   :  { %2150 = vmatpush3.bf16.msra.mxu0 %v2441_v30 }
  0x2f   :  { %2190 = vmatpush3.bf16.msra.mxu1 %v2442_v31  ;;  %2303 = vmatprep.subr.bf16.mxu0 %v2449_v36 }
  0x30   :  { %789 = vmatprep.subr.bf16.mxu1 %v2481_v60 }
  0x31   :  { %515 = vmatmul.mubr.bf16.vlgmr.msra.gmra.mrb[0].mxu0 %v2443_v32 }
  0x32   :  { %580 = vmatmul.mubr.bf16.vlgmr.msra.gmra.mrb[0].mxu1 %v2446_v34  ;;  %2304 = vmatpush3.bf16.msra.mxu0 %v2449_v36 }
  0x33   :  { %2305 = vmatprep.subr.bf16.mxu0 %v2450_v37  ;;  %522 = vmatprep.mubr.bf16.mxu0 %v2451_v38 }
  0x34   :  { %587 = vmatprep.mubr.bf16.mxu1 %v2453_v39  ;;  %790 = vmatpush1.bf16.msra.mxu1 %v2479_v61 }
  0x35   :  { %791 = vmatprep.subr.bf16.mxu1 %v2484_v62 }
  0x36   :  { %2306 = vmatpush3.bf16.msra.mxu0 %v2450_v37 }
  0x37   :  { %2307 = vmatprep.subr.bf16.mxu0 %v2457_v41 }
  0x38   :  { %792 = vmatpush1.bf16.msra.mxu1 %v2482_v63 }
  0x39   :  { %523 = vmatmul.mubr.bf16.gmra.mrb[4].mxu0 %v2455_v40  ;;  %793 = vmatprep.subr.bf16.mxu1 %v2487_v0 }
  0x3a   :  { %588 = vmatmul.mubr.bf16.gmra.mrb[4].mxu1 %v2456_v42  ;;  %530 = vmatprep.mubr.bf16.mxu0 %v2459_v43 }
  0x3b   :  { %2308 = vmatpush3.bf16.msra.mxu0 %v2457_v41  ;;  %595 = vmatprep.mubr.bf16.mxu1 %v2461_v45 }
  0x3c   :  { %2309 = vmatprep.subr.bf16.mxu0 %v2458_v44  ;;  %794 = vmatpush1.bf16.msra.mxu1 %v2485_v1 }
  0x3d   :  { %795 = vmatprep.subr.bf16.mxu1 %v2490_v2 }
  0x3f   :  { %2310 = vmatpush3.bf16.msra.mxu0 %v2458_v44 }
  0x40   :  { %2311 = vmatprep.subr.bf16.mxu0 %v2465_v46  ;;  %796 = vmatpush1.bf16.msra.mxu1 %v2488_v3 }
  0x41   :  { %531 = vmatmul.mubr.bf16.gmra.mrb[8].mxu0 %v2463_v47  ;;  %797 = vmatprep.subr.bf16.mxu1 %v2493_v4 }
  0x42   :  { %596 = vmatmul.mubr.bf16.gmra.mrb[8].mxu1 %v2464_v48  ;;  %538 = vmatprep.mubr.bf16.mxu0 %v2467_v49 }
  0x43   :  { %2312 = vmatpush3.bf16.msra.mxu0 %v2465_v46  ;;  %603 = vmatprep.mubr.bf16.mxu1 %v2469_v50 }
  0x44   :  { %2313 = vmatprep.subr.bf16.mxu0 %v2466_v51  ;;  %798 = vmatpush1.bf16.msra.mxu1 %v2491_v5 }
  0x45   :  { %799 = vmatprep.subr.bf16.mxu1 %v2496_v6 }
  0x47   :  { %2314 = vmatpush3.bf16.msra.mxu0 %v2466_v51 }
  0x48   :  { %2315 = vmatprep.subr.bf16.mxu0 %v2473_v53  ;;  %800 = vmatpush1.bf16.msra.mxu1 %v2494_v7 }
  0x49   :  { %539 = vmatmul.mubr.bf16.gmra.mrb[12].mxu0 %v2471_v52  ;;  %801 = vmatprep.subr.bf16.mxu1 %v2499_v8 }
  0x4a   :  { %604 = vmatmul.mubr.bf16.gmra.mrb[12].mxu1 %v2472_v54  ;;  %2319 = vmatprep.mubr.bf16.mxu0 %v2475_v55 }
  0x4b   :  { %2316 = vmatpush3.bf16.msra.mxu0 %v2473_v53  ;;  %821 = vmatprep.mubr.bf16.mxu1 %v2630_v12 }
  0x4c   :  { %2317 = vmatprep.subr.bf16.mxu0 %v2474_v56  ;;  %802 = vmatpush1.bf16.msra.mxu1 %v2497_v9 }
  0x4d   :  { %803 = vmatprep.subr.bf16.mxu1 %v2502_v10 }
  0x4f   :  { %2318 = vmatpush3.bf16.msra.mxu0 %v2474_v56 }
  0x50   :  { %804 = vmatpush1.bf16.msra.mxu1 %v2500_v11 }
  0x52   :  { %2320 = vmatmul.mubr.bf16.vlgmr.msra.gmra.mrb[16].mxu0 %v2476_v57 }
  0x53   :  { %2323 = vmatprep.mubr.bf16.mxu0 %v2477_v58 }
  0x5a   :  { %2324 = vmatmul.mubr.bf16.gmra.mrb[20].mxu0 %v2478_v59 }
 0x104   :  { %v2151_v13 = vpop.f32.mrb[0].mxu0 }
 0x105   :  { %v2191_v14 = vpop.f32.mrb[0].mxu1  ;;  %v2152_v15 = vpop.f32.mrb[1].mxu0 }
 0x106   :  { %v2153_v16 = vadd.f32 %v2152_v15, %v2151_v13  ;;  %v2192_v17 = vpop.f32.mrb[1].mxu1  ;;  %v2154_v18 = vpop.f32.mrb[2].mxu0 }
 0x107   :  { %v2193_v19 = vadd.f32 %v2192_v17, %v2191_v14  ;;  %v2194_v20 = vpop.f32.mrb[2].mxu1  ;;  %v2155_v21 = vpop.f32.mrb[3].mxu0 }
 0x108   :  { %v2156_v22 = vadd.f32 %v2155_v21, %v2154_v18  ;;  %v2195_v23 = vpop.f32.mrb[3].mxu1 }
 0x109   :  { %v2196_v24 = vadd.f32 %v2195_v23, %v2194_v20  ;;  %v582_v25 = vadd.f32 %v2193_v19, %v2153_v16 }
 0x10b   :  { %v585_v26 = vadd.f32 %v2196_v24, %v2156_v22 }
 0x10c   :  { %v2157_v27 = vpop.f32.mrb[4].mxu0 }
 0x10d   :  { %v2197_v28 = vpop.f32.mrb[4].mxu1  ;;  %v2158_v29 = vpop.f32.mrb[5].mxu0 }
 0x10e   :  { %v2159_v30 = vadd.f32 %v2158_v29, %v2157_v27  ;;  %v2198_v31 = vpop.f32.mrb[5].mxu1  ;;  %v2160_v32 = vpop.f32.mrb[6].mxu0  ;;  %v2506_v29 = vld [vmem:[%s3338_s5 + $0x8] sm:$0xff]  }
 0x10f   :  { %v2199_v33 = vadd.f32 %v2198_v31, %v2197_v28  ;;  %v2200_v34 = vpop.f32.mrb[6].mxu1  ;;  %v2161_v35 = vpop.f32.mrb[7].mxu0  ;;  %v2505_v28 = vld [vmem:[%s3338_s5 + $0x48] sm:$0xff]   ;;  %v2509_v31 = vld [vmem:[%s3338_s5 + $0x58] sm:$0xff]  }
 0x110   :  { %v2162_v36 = vadd.f32 %v2161_v35, %v2160_v32  ;;  %v2201_v37 = vpop.f32.mrb[7].mxu1  ;;  %v2510_v32 = vld [vmem:[%s3338_s5 + $0x18] sm:$0xff]   ;;  %v2513_v35 = vld [vmem:[%s3338_s5 + $0x68] sm:$0xff]  }
 0x111   :  { %v2202_v38 = vadd.f32 %v2201_v37, %v2200_v34  ;;  %v590_v39 = vadd.f32 %v2199_v33, %v2159_v30  ;;  %v2508_v30 = vld [vmem:[%s3338_s5 + $0x10] sm:$0xff]   ;;  %v2511_v33 = vld [vmem:[%s3338_s5 + $0x60] sm:$0xff]  }
 0x112   :  { %v2512_v34 = vld [vmem:[%s3338_s5 + $0x20] sm:$0xff]   ;;  %v2515_v37 = vld [vmem:[%s3338_s5 + $0x70] sm:$0xff]  }
 0x113   :  { %v593_v40 = vadd.f32 %v2202_v38, %v2162_v36  ;;  %v2514_v36 = vld [vmem:[%s3338_s5 + $0x28] sm:$0xff]   ;;  %v2516_v38 = vld [vmem:[%s3338_s5 + $0x30] sm:$0xff]  }
 0x114   :  { %v2163_v41 = vpop.f32.mrb[8].mxu0 }
 0x115   :  { %v2203_v42 = vpop.f32.mrb[8].mxu1  ;;  %v2164_v43 = vpop.f32.mrb[9].mxu0 }
 0x116   :  { %v2165_v44 = vadd.f32 %v2164_v43, %v2163_v41  ;;  %v2204_v45 = vpop.f32.mrb[9].mxu1  ;;  %v2166_v46 = vpop.f32.mrb[10].mxu0  ;;  %v699_v41 = vlaneseq }
 0x117   :  { %v2205_v47 = vadd.f32 %v2204_v45, %v2203_v42  ;;  %v2206_v48 = vpop.f32.mrb[10].mxu1  ;;  %v2167_v49 = vpop.f32.mrb[11].mxu0 }
 0x118   :  { %v2168_v50 = vadd.f32 %v2167_v49, %v2166_v46  ;;  %v2207_v51 = vpop.f32.mrb[11].mxu1  ;;  %v2961_v42 = vshrl.u32 %v699_v41, 7 }
 0x119   :  { %v2208_v52 = vadd.f32 %v2207_v51, %v2206_v48  ;;  %v598_v53 = vadd.f32 %v2205_v47, %v2165_v44  ;;  %v697_v44 = vld [vmem:[%s3337_s4] sm:$0x3]  ;;  %s1435_s4 = sshra.s32 %s2112_s25, 4 }
 0x11a   :  { %v701_v43 = vsub.s32 0, %v2961_v42  ;;  %v705_v45 = vsub.s32 1, %v2961_v42  ;;  %s2031_s27 = sshll.u32 %s1435_s4, 3 }
 0x11b   :  { %v601_v54 = vadd.f32 %v2208_v52, %v2168_v50  ;;  %s1438_s30 = scalar_lea.vmem [#allocation2], %s2031_s27 }
 0x11c   :  { %v2169_v55 = vpop.f32.mrb[12].mxu0  ;;  %v2970_v46 = vrot.slane %v697_v44, %v701_v43  ;;  %v2974_v47 = vrot.slane %v697_v44, %v705_v45 }
 0x11d   :  { %v2209_v56 = vpop.f32.mrb[12].mxu1  ;;  %v2170_v57 = vpop.f32.mrb[13].mxu0 }
 0x11e   :  { %v2171_v58 = vadd.f32 %v2170_v57, %v2169_v55  ;;  %v2210_v59 = vpop.f32.mrb[13].mxu1  ;;  %v2172_v60 = vpop.f32.mrb[14].mxu0 }
 0x11f   :  { %v2211_v61 = vadd.f32 %v2210_v59, %v2209_v56  ;;  %v2212_v62 = vpop.f32.mrb[14].mxu1  ;;  %v2173_v63 = vpop.f32.mrb[15].mxu0 }
 0x120   :  { %v2174_v0 = vadd.f32 %v2173_v63, %v2172_v60  ;;  %v2213_v1 = vpop.f32.mrb[15].mxu1 }
 0x121   :  { %v2214_v2 = vadd.f32 %v2213_v1, %v2212_v62  ;;  %v606_v3 = vadd.f32 %v2211_v61, %v2171_v58 }
 0x123   :  { %v609_v4 = vadd.f32 %v2214_v2, %v2174_v0 }
 0x125   :  { %v2321_v5 = vpop.f32.mrb[16].mxu0 }
 0x126   :  { %v655_v6 = vadd.f32 %v2321_v5, %v590_v39  ;;  %v646_v7 = vpop.f32.mrb[17].mxu0  ;;  %v2517_v39 = vld [vmem:[%s3338_s5 + $0x78] sm:$0xff]  }
 0x127   :  { %v647_v8 = vadd.f32 %v646_v7, %v582_v25  ;;  %v2322_v9 = vpop.f32.mrb[18].mxu0  ;;  %v2503_v25 = vld [vmem:[%s3338_s5 + $0x40] sm:$0xff]  }
 0x128   :  { %v658_v10 = vadd.f32 %v2322_v9, %v593_v40  ;;  %v649_v11 = vpop.f32.mrb[19].mxu0  ;;  %2227 = vmatprep.subr.bf16.mxu0 %v2503_v25  ;;  %v2518_v40 = vld [vmem:[%s3338_s5 + $0x38] sm:$0xff]  }
 0x129   :  { %v650_v13 = vadd.f32 %v649_v11, %v585_v26  ;;  %v2504_v26 = vld [vmem:[%s3338_s5] sm:$0xff]  }
 0x12a   :  { %v678_v14 = vpack.c.bf16 %v658_v10, %v655_v6  ;;  %2228 = vmatpush3.bf16.msra.mxu0 %v2504_v26 }
 0x12b   :  { %v677_v15 = vpack.c.bf16 %v650_v13, %v647_v8  ;;  %2229 = vmatprep.subr.bf16.mxu0 %v2505_v28 }
 0x12d   :  { %v2325_v16 = vpop.f32.mrb[20].mxu0  ;;  %822 = vmatmul.mubr.bf16.vlgmr.msra.gmra.mrb[16].mxu1 %v677_v15 }
 0x12e   :  { %v671_v17 = vadd.f32 %v2325_v16, %v606_v3  ;;  %v662_v18 = vpop.f32.mrb[21].mxu0  ;;  %831 = vmatprep.mubr.bf16.mxu1 %v2630_v12  ;;  %2230 = vmatpush3.bf16.msra.mxu0 %v2506_v29 }
 0x12f   :  { %v663_v19 = vadd.f32 %v662_v18, %v598_v53  ;;  %v2326_v20 = vpop.f32.mrb[22].mxu0 }
 0x130   :  { %v674_v21 = vadd.f32 %v2326_v20, %v609_v4  ;;  %v665_v22 = vpop.f32.mrb[23].mxu0 }
 0x131   :  { %v666_v23 = vadd.f32 %v665_v22, %v601_v54 }
 0x132   :  { %v680_v24 = vpack.c.bf16 %v674_v21, %v671_v17 }
 0x133   :  { %v679_v27 = vpack.c.bf16 %v666_v23, %v663_v19 }
 0x135   :  { %832 = vmatmul.mubr.bf16.gmra.mrb[20].mxu1 %v678_v14 }
 0x136   :  { %841 = vmatprep.mubr.bf16.mxu1 %v2630_v12 }
 0x13d   :  { %842 = vmatmul.mubr.bf16.gmra.mrb[24].mxu1 %v679_v27 }
 0x13e   :  { %851 = vmatprep.mubr.bf16.mxu1 %v2630_v12  ;;  %v2507_v12 = vld [vmem:[%s3338_s5 + $0x50] sm:$0xff]   ;;  %s1429_s5 = scalar_lea.vmem [#allocation2], %s2028_s24 }
 0x13f   :  { %2231 = vmatprep.subr.bf16.mxu0 %v2507_v12 }
 0x140   :  { %2232 = vmatpush3.bf16.msra.mxu0 %v2508_v30 }
 0x141   :  { %2233 = vmatprep.subr.bf16.mxu0 %v2509_v31 }
 0x144   :  { %2234 = vmatpush3.bf16.msra.mxu0 %v2510_v32 }
 0x145   :  { %852 = vmatmul.mubr.bf16.gmra.mrb[28].mxu1 %v680_v24  ;;  %2235 = vmatprep.subr.bf16.mxu0 %v2511_v33 }
 0x148   :  { %2236 = vmatpush3.bf16.msra.mxu0 %v2512_v34 }
 0x149   :  { %2237 = vmatprep.subr.bf16.mxu0 %v2513_v35 }
 0x14c   :  { %2238 = vmatpush3.bf16.msra.mxu0 %v2514_v36 }
 0x14d   :  { %2239 = vmatprep.subr.bf16.mxu0 %v2515_v37 }
 0x150   :  { %2240 = vmatpush3.bf16.msra.mxu0 %v2516_v38 }
 0x151   :  { %2241 = vmatprep.subr.bf16.mxu0 %v2517_v39 }
 0x154   :  { %2242 = vmatpush3.bf16.msra.mxu0 %v2518_v40 }
 0x200   :  { %v823_v48 = vpop.f32.mrb[16].mxu1 }
 0x201   :  { %v2977_v49 = vadd.f32 %v823_v48, %v2970_v46  ;;  %v825_v50 = vpop.f32.mrb[17].mxu1 }
 0x202   :  { %v2980_v51 = vadd.f32 %v825_v50, %v2974_v47  ;;  %v827_v52 = vpop.f32.mrb[18].mxu1 }
 0x203   :  { %v862_v53 = vmul.f32 %v2977_v49, %v2977_v49  ;;  %v2985_v54 = vadd.f32 %v827_v52, %v2970_v46  ;;  %v829_v55 = vpop.f32.mrb[19].mxu1 }
 0x204   :  { %v863_v56 = vmul.f32 %v2980_v51, %v2980_v51  ;;  %v2990_v57 = vadd.f32 %v829_v55, %v2974_v47 }
 0x205   :  { %v878_v58 = vmul.f32 %v862_v53, %v2977_v49  ;;  %v864_v59 = vmul.f32 %v2985_v54, %v2985_v54 }
 0x206   :  { %v879_v60 = vmul.f32 %v863_v56, %v2980_v51  ;;  %v865_v61 = vmul.f32 %v2990_v57, %v2990_v57 }
 0x207   :  { %v894_v62 = vmul.f32 0.044715, %v878_v58  ;;  %v880_v63 = vmul.f32 %v864_v59, %v2985_v54 }
 0x208   :  { %v895_v0 = vmul.f32 0.044715, %v879_v60  ;;  %v881_v1 = vmul.f32 %v865_v61, %v2990_v57  ;;  %v833_v2 = vpop.f32.mrb[20].mxu1 }
 0x209   :  { %v910_v3 = vadd.f32 %v894_v62, %v2977_v49  ;;  %v896_v4 = vmul.f32 0.044715, %v880_v63  ;;  %v3002_v5 = vadd.f32 %v833_v2, %v2970_v46  ;;  %v835_v6 = vpop.f32.mrb[21].mxu1 }
 0x20a   :  { %v911_v7 = vadd.f32 %v895_v0, %v2980_v51  ;;  %v897_v8 = vmul.f32 0.044715, %v881_v1  ;;  %v3006_v9 = vadd.f32 %v835_v6, %v2974_v47  ;;  %v837_v10 = vpop.f32.mrb[22].mxu1 }
 0x20b   :  { %v926_v11 = vmul.f32 0.7978846, %v910_v3  ;;  %v912_v13 = vadd.f32 %v896_v4, %v2985_v54  ;;  %v866_v14 = vmul.f32 %v3002_v5, %v3002_v5  ;;  %v3012_v15 = vadd.f32 %v837_v10, %v2970_v46  ;;  %v839_v16 = vpop.f32.mrb[23].mxu1 }
 0x20c   :  { %v927_v17 = vmul.f32 0.7978846, %v911_v7  ;;  %v913_v18 = vadd.f32 %v897_v8, %v2990_v57  ;;  %v867_v19 = vmul.f32 %v3006_v9, %v3006_v9  ;;  %v3018_v20 = vadd.f32 %v839_v16, %v2974_v47 }
 0x20d   :  { %2535 = vtanh.f32 %v926_v11  ;;  %v928_v21 = vmul.f32 0.7978846, %v912_v13  ;;  %v882_v22 = vmul.f32 %v866_v14, %v3002_v5  ;;  %v868_v23 = vmul.f32 %v3012_v15, %v3012_v15 }
 0x20e   :  { %2537 = vtanh.f32 %v927_v17  ;;  %v929_v24 = vmul.f32 0.7978846, %v913_v18  ;;  %v883_v27 = vmul.f32 %v867_v19, %v3006_v9  ;;  %v869_v25 = vmul.f32 %v3018_v20, %v3018_v20 }
 0x20f   :  { %2539 = vtanh.f32 %v928_v21  ;;  %v898_v26 = vmul.f32 0.044715, %v882_v22  ;;  %v884_v28 = vmul.f32 %v868_v23, %v3012_v15 }
 0x210   :  { %v899_v29 = vmul.f32 0.044715, %v883_v27  ;;  %v885_v12 = vmul.f32 %v869_v25, %v3018_v20  ;;  %v843_v30 = vpop.f32.mrb[24].mxu1  ;;  %2541 = vtanh.f32 %v929_v24 }
 0x211   :  { %v914_v31 = vadd.f32 %v898_v26, %v3002_v5  ;;  %v900_v32 = vmul.f32 0.044715, %v884_v28  ;;  %v3030_v33 = vadd.f32 %v843_v30, %v2970_v46  ;;  %v845_v34 = vpop.f32.mrb[25].mxu1 }
 0x212   :  { %v915_v35 = vadd.f32 %v899_v29, %v3006_v9  ;;  %v901_v36 = vmul.f32 0.044715, %v885_v12  ;;  %v3034_v37 = vadd.f32 %v845_v34, %v2974_v47  ;;  %v847_v38 = vpop.f32.mrb[26].mxu1 }
 0x213   :  { %v930_v39 = vmul.f32 0.7978846, %v914_v31  ;;  %v916_v40 = vadd.f32 %v900_v32, %v3012_v15  ;;  %v870_v41 = vmul.f32 %v3030_v33, %v3030_v33  ;;  %v3040_v44 = vadd.f32 %v847_v38, %v2970_v46  ;;  %v849_v48 = vpop.f32.mrb[27].mxu1 }
 0x214   :  { %v931_v50 = vmul.f32 0.7978846, %v915_v35  ;;  %v917_v52 = vadd.f32 %v901_v36, %v3018_v20  ;;  %v871_v53 = vmul.f32 %v3034_v37, %v3034_v37  ;;  %v3046_v55 = vadd.f32 %v849_v48, %v2974_v47 }
 0x215   :  { %2543 = vtanh.f32 %v930_v39  ;;  %v932_v56 = vmul.f32 0.7978846, %v916_v40  ;;  %v886_v58 = vmul.f32 %v870_v41, %v3030_v33  ;;  %v872_v59 = vmul.f32 %v3040_v44, %v3040_v44 }
 0x216   :  { %2545 = vtanh.f32 %v931_v50  ;;  %v933_v60 = vmul.f32 0.7978846, %v917_v52  ;;  %v887_v61 = vmul.f32 %v871_v53, %v3034_v37  ;;  %v873_v62 = vmul.f32 %v3046_v55, %v3046_v55 }
 0x217   :  { %v2536_v63 = vpop.eup %2535  ;;  %2547 = vtanh.f32 %v932_v56  ;;  %v902_v0 = vmul.f32 0.044715, %v886_v58  ;;  %v888_v1 = vmul.f32 %v872_v59, %v3040_v44 }
 0x218   :  { %v2538_v2 = vpop.eup %2537  ;;  %v958_v3 = vadd.f32 1.0, %v2536_v63  ;;  %2549 = vtanh.f32 %v933_v60  ;;  %v903_v4 = vmul.f32 0.044715, %v887_v61  ;;  %v889_v6 = vmul.f32 %v873_v62, %v3046_v55  ;;  %v853_v7 = vpop.f32.mrb[28].mxu1 }
 0x219   :  { %v2540_v8 = vpop.eup %2539  ;;  %v918_v10 = vadd.f32 %v902_v0, %v3030_v33  ;;  %v904_v11 = vmul.f32 0.044715, %v888_v1  ;;  %v3058_v13 = vadd.f32 %v853_v7, %v2970_v46  ;;  %v855_v14 = vpop.f32.mrb[29].mxu1  ;;  %v959_v16 = vadd.f32 1.0, %v2538_v2 }
 0x21a   :  { %v974_v17 = vmul.f32 0.5, %v958_v3  ;;  %v960_v18 = vadd.f32 1.0, %v2540_v8  ;;  %v919_v19 = vadd.f32 %v903_v4, %v3034_v37  ;;  %v905_v21 = vmul.f32 0.044715, %v889_v6  ;;  %v857_v22 = vpop.f32.mrb[30].mxu1  ;;  %v2542_v28 = vpop.eup %2541 }
 0x21b   :  { %v934_v23 = vmul.f32 0.7978846, %v918_v10  ;;  %v920_v24 = vadd.f32 %v904_v11, %v3040_v44  ;;  %v874_v27 = vmul.f32 %v3058_v13, %v3058_v13  ;;  %v3065_v25 = vadd.f32 %v855_v14, %v2974_v47  ;;  %v859_v26 = vpop.f32.mrb[31].mxu1 }
 0x21c   :  { %v990_v29 = vmul.f32 %v974_v17, %v2977_v49  ;;  %v976_v12 = vmul.f32 0.5, %v960_v18  ;;  %v935_v30 = vmul.f32 0.7978846, %v919_v19  ;;  %v921_v31 = vadd.f32 %v905_v21, %v3046_v55 }
 0x21d   :  { %2551 = vtanh.f32 %v934_v23  ;;  %v936_v32 = vmul.f32 0.7978846, %v920_v24  ;;  %v890_v34 = vmul.f32 %v874_v27, %v3058_v13  ;;  %v875_v35 = vmul.f32 %v3065_v25, %v3065_v25 }
 0x21e   :  { %v992_v36 = vmul.f32 %v976_v12, %v2985_v54  ;;  %2553 = vtanh.f32 %v935_v30  ;;  %v937_v38 = vmul.f32 0.7978846, %v921_v31  ;;  %v3074_v39 = vadd.f32 %v857_v22, %v2970_v46 }
 0x21f   :  { %v2544_v40 = vpop.eup %2543  ;;  %2555 = vtanh.f32 %v936_v32  ;;  %v906_v49 = vmul.f32 0.044715, %v890_v34  ;;  %v891_v41 = vmul.f32 %v875_v35, %v3065_v25  ;;  %v3078_v48 = vadd.f32 %v859_v26, %v2974_v47 }
 0x220   :  { %v2546_v50 = vpop.eup %2545  ;;  %v1006_v52 = vpack.c.bf16 %v992_v36, %v990_v29  ;;  %2557 = vtanh.f32 %v937_v38  ;;  %v876_v53 = vmul.f32 %v3074_v39, %v3074_v39  ;;  %v961_v54 = vadd.f32 1.0, %v2542_v28 }
 0x221   :  { %v2548_v56 = vpop.eup %2547  ;;  %v922_v58 = vadd.f32 %v906_v49, %v3058_v13  ;;  %v907_v46 = vmul.f32 0.044715, %v891_v41  ;;  %v877_v59 = vmul.f32 %v3078_v48, %v3078_v48  ;;  %v975_v60 = vmul.f32 0.5, %v959_v16 }
 0x222   :  { %v2550_v61 = vpop.eup %2549  ;;  %v892_v62 = vmul.f32 %v876_v53, %v3074_v39  ;;  %v977_v47 = vmul.f32 0.5, %v961_v54  ;;  %v963_v63 = vadd.f32 1.0, %v2546_v50  ;;  %v962_v0 = vadd.f32 1.0, %v2544_v40 }
 0x223   :  { %v938_v1 = vmul.f32 0.7978846, %v922_v58  ;;  %v923_v2 = vadd.f32 %v907_v46, %v3065_v25  ;;  %v893_v3 = vmul.f32 %v877_v59, %v3078_v48  ;;  %v991_v4 = vmul.f32 %v975_v60, %v2980_v51 }
 0x224   :  { %v908_v6 = vmul.f32 0.044715, %v892_v62  ;;  %v993_v7 = vmul.f32 %v977_v47, %v2990_v57  ;;  %v965_v8 = vadd.f32 1.0, %v2550_v61  ;;  %v979_v10 = vmul.f32 0.5, %v963_v63 }
 0x225   :  { %2559 = vtanh.f32 %v938_v1  ;;  %v939_v11 = vmul.f32 0.7978846, %v923_v2  ;;  %v909_v14 = vmul.f32 0.044715, %v893_v3  ;;  %v964_v16 = vadd.f32 1.0, %v2548_v56 }
 0x226   :  { %v924_v17 = vadd.f32 %v908_v6, %v3074_v39  ;;  %v1007_v18 = vpack.c.bf16 %v993_v7, %v991_v4  ;;  %v981_v19 = vmul.f32 0.5, %v965_v8  ;;  %v978_v23 = vmul.f32 0.5, %v962_v0  ;;  %v3107_v6 = vld [vmem:[%s3339_s6] sm:$0x7]  ;;  %s1396_s6 = sld [smem:[#allocation5]] }
 0x227   :  { %v2552_v21 = vpop.eup %2551  ;;  %2561 = vtanh.f32 %v939_v11  ;;  %v925_v22 = vadd.f32 %v909_v14, %v3078_v48  ;;  %v980_v24 = vmul.f32 0.5, %v964_v16  ;;  %v995_v57 = vmul.f32 %v979_v10, %v3006_v9 }
 0x228   :  { %v2554_v51 = vpop.eup %2553  ;;  %v940_v27 = vmul.f32 0.7978846, %v924_v17  ;;  %1179 = vmatprep.mubr.bf16.mxu0 %v1007_v18  ;;  %v997_v26 = vmul.f32 %v981_v19, %v3018_v20  ;;  %v966_v28 = vadd.f32 1.0, %v2552_v21  ;;  %v994_v30 = vmul.f32 %v978_v23, %v3002_v5 }
 0x229   :  { %v2556_v29 = vpop.eup %2555  ;;  %v941_v12 = vmul.f32 0.7978846, %v925_v22  ;;  %1180 = vmatmul.mubr.bf16.vlgmr.msra.gmra.mrb[24].mxu0 %v1006_v52  ;;  %v996_v31 = vmul.f32 %v980_v24, %v3012_v15  ;;  %v967_v32 = vadd.f32 1.0, %v2554_v51 }
 0x22a   :  { %v2558_v34 = vpop.eup %2557  ;;  %2563 = vtanh.f32 %v940_v27  ;;  %v1009_v35 = vpack.c.bf16 %v997_v26, %v995_v57  ;;  %v968_v36 = vadd.f32 1.0, %v2556_v29  ;;  %v982_v38 = vmul.f32 0.5, %v966_v28 }
 0x22b   :  { %2565 = vtanh.f32 %v941_v12  ;;  %v1008_v40 = vpack.c.bf16 %v996_v31, %v994_v30  ;;  %v969_v49 = vadd.f32 1.0, %v2558_v34  ;;  %v983_v9 = vmul.f32 0.5, %v967_v32 }
 0x22c   :  { %1187 = vmatprep.mubr.bf16.mxu0 %v1009_v35  ;;  %v984_v20 = vmul.f32 0.5, %v968_v36  ;;  %v998_v50 = vmul.f32 %v982_v38, %v3030_v33  ;;  %s2103_s26 = sshll.u32 %s1396_s6, 4  ;;  %s2113_s6 = sshll.u32 %s2032_s23, 4 }
 0x22d   :  { %v985_v41 = vmul.f32 0.5, %v969_v49  ;;  %v999_v15 = vmul.f32 %v983_v9, %v3034_v37  ;;  %s2104_s28 = sadd.s32 32, %s2103_s26  ;;  %s2035_s26 = sld [smem:[#allocation5 + $0x6]] }
 0x22e   :  { %v1000_v52 = vmul.f32 %v984_v20, %v3040_v44  ;;  %s1399_s29 = sshra.s32 %s2104_s28, 4  ;;  %s2114_s28 = sadd.s32 32, %s2113_s6 }
 0x22f   :  { %v2560_v5 = vpop.eup %2559  ;;  %v1001_v53 = vmul.f32 %v985_v41, %v3046_v55  ;;  %s2019_s10 = sshll.u32 %s1399_s29, 3  ;;  %s1444_s29 = sshra.s32 %s2114_s28, 4 }
 0x230   :  { %v1010_v54 = vpack.c.bf16 %v1000_v52, %v998_v50  ;;  %v970_v46 = vadd.f32 1.0, %v2560_v5  ;;  %s1402_s13 = scalar_lea.vmem [#allocation2], %s2019_s10  ;;  %s2038_s10 = sld [smem:[#allocation5 + $0x7]] }
 0x231   :  { %v2562_v56 = vpop.eup %2561  ;;  %1188 = vmatmul.mubr.bf16.gmra.mrb[28].mxu0 %v1008_v40  ;;  %v1011_v58 = vpack.c.bf16 %v1001_v53, %v999_v15  ;;  %s2034_s11 = sshll.u32 %s1444_s29, 3  ;;  %s2053_s23 = sld [smem:[#allocation5 + $0xc]] }
 0x232   :  { %v971_v59 = vadd.f32 1.0, %v2562_v56  ;;  %v986_v47 = vmul.f32 0.5, %v970_v46  ;;  %s1447_s2 = scalar_lea.vmem [#allocation2], %s2034_s11  ;;  %s2044_s11 = sld [smem:[#allocation5 + $0x9]] }
 0x233   :  { %1195 = vmatprep.mubr.bf16.mxu0 %v1011_v58  ;;  %s2115_s9 = sshll.u32 %s2035_s26, 4  ;;  %s2056_s26 = sld [smem:[#allocation5 + $0xd]] }
 0x234   :  { %v2564_v60 = vpop.eup %2563  ;;  %v987_v33 = vmul.f32 0.5, %v971_v59  ;;  %v1002_v37 = vmul.f32 %v986_v47, %v3058_v13  ;;  %v1050_v13 = vrot.slane %v3107_v6, %v701_v43  ;;  %s2116_s12 = sadd.s32 32, %s2115_s9  ;;  %s2041_s9 = sld [smem:[#allocation5 + $0x8]] }
 0x235   :  { %v2566_v61 = vpop.eup %2565  ;;  %v972_v62 = vadd.f32 1.0, %v2564_v60 }
 0x236   :  { %v973_v63 = vadd.f32 1.0, %v2566_v61  ;;  %v1003_v1 = vmul.f32 %v987_v33, %v3065_v25  ;;  %s2117_s0 = sshll.u32 %s2038_s10, 4 }
 0x237   :  { %v988_v0 = vmul.f32 0.5, %v972_v62  ;;  %s2118_s15 = sadd.s32 32, %s2117_s0  ;;  %s2047_s0 = sld [smem:[#allocation5 + $0xa]] }
 0x238   :  { %v989_v44 = vmul.f32 0.5, %v973_v63  ;;  %s1462_s16 = sshra.s32 %s2118_s15, 4  ;;  %s2127_s6 = sshll.u32 %s2053_s23, 4 }
 0x239   :  { %1196 = vmatmul.mubr.bf16.gmra.mrb[32].mxu0 %v1010_v54  ;;  %v1004_v55 = vmul.f32 %v988_v0, %v3074_v39  ;;  %s2040_s18 = sshll.u32 %s1462_s16, 3  ;;  %s2128_s28 = sadd.s32 32, %s2127_s6 }
 0x23a   :  { %v1005_v2 = vmul.f32 %v989_v44, %v3078_v48  ;;  %s1465_s19 = scalar_lea.vmem [#allocation2], %s2040_s18  ;;  %s2119_s10 = sshll.u32 %s2041_s9, 4 }
 0x23b   :  { %v1012_v3 = vpack.c.bf16 %v1004_v55, %v1002_v37  ;;  %s1507_s29 = sshra.s32 %s2128_s28, 4  ;;  %s2129_s9 = sshll.u32 %s2056_s26, 4 }
 0x23c   :  { %v1013_v4 = vpack.c.bf16 %v1005_v2, %v1003_v1 }
 0x23d   :  { %s2123_s18 = sshll.u32 %s2047_s0, 4 }
 0x23e   :  { %1203 = vmatprep.mubr.bf16.mxu0 %v1013_v4  ;;  %s2124_s20 = sadd.s32 32, %s2123_s18 }
 0x23f   :  { %s1489_s1 = sshra.s32 %s2124_s20, 4 }
 0x240   :  { %s2049_s24 = sshll.u32 %s1489_s1, 3 }
 0x241   :  { %1204 = vmatmul.mubr.bf16.gmra.mrb[36].mxu0 %v1012_v3 }
 0x2fc   :  { %v2243_v7 = vpop.f32.mrb[24].mxu0 }
 0x2fd   :  { %v2244_v8 = vpop.f32.mrb[25].mxu0 }
 0x2fe   :  { %v2245_v39 = vadd.f32 %v2244_v8, %v2243_v7  ;;  %v2246_v10 = vpop.f32.mrb[26].mxu0 }
 0x2ff   :  { %v2247_v25 = vpop.f32.mrb[27].mxu0 }
 0x300   :  { %v3112_v11 = vadd.f32 %v2245_v39, %v1050_v13  ;;  %v2248_v48 = vadd.f32 %v2247_v25, %v2246_v10 }
 0x302   :  { %v3114_v14 = vadd.f32 %v2248_v48, %v1050_v13  ;;  %1212 = vadd.xlane.f32.xlu0 %v3112_v11  ;;  %v1228_v24 = vmul.f32 %v3112_v11, %v3112_v11 }
 0x304   :  { %v2249_v16 = vpop.f32.mrb[28].mxu0  ;;  %v1229_v17 = vmul.f32 %v3114_v14, %v3114_v14 }
 0x305   :  { %v2250_v18 = vpop.f32.mrb[29].mxu0 }
 0x306   :  { %v2251_v19 = vadd.f32 %v2250_v18, %v2249_v16  ;;  %v2252_v21 = vpop.f32.mrb[30].mxu0  ;;  %1238 = vadd.xlane.f32.xlu1 %v1229_v17  ;;  %1214 = vadd.xlane.f32.xlu0 %v3114_v14 }
 0x307   :  { %v2253_v43 = vpop.f32.mrb[31].mxu0 }
 0x308   :  { %v3120_v22 = vadd.f32 %v2251_v19, %v1050_v13  ;;  %v2254_v23 = vadd.f32 %v2253_v43, %v2252_v21  ;;  %v1330_v21 = vsub.s32 2, %v2961_v42 }
 0x30a   :  { %1216 = vadd.xlane.f32.xlu1 %v3120_v22  ;;  %1236 = vadd.xlane.f32.xlu0 %v1228_v24  ;;  %v3125_v51 = vadd.f32 %v2254_v23, %v1050_v13  ;;  %v1230_v57 = vmul.f32 %v3120_v22, %v3120_v22 }
 0x30c   :  { %v2255_v27 = vpop.f32.mrb[32].mxu0  ;;  %v1231_v32 = vmul.f32 %v3125_v51, %v3125_v51 }
 0x30d   :  { %v2256_v26 = vpop.f32.mrb[33].mxu0 }
 0x30e   :  { %v2257_v28 = vadd.f32 %v2256_v26, %v2255_v27  ;;  %v2258_v29 = vpop.f32.mrb[34].mxu0  ;;  %1218 = vadd.xlane.f32.xlu1 %v3125_v51  ;;  %1240 = vadd.xlane.f32.xlu0 %v1230_v57  ;;  %v3166_v57 = vrot.slane %v3107_v6, %v705_v45 }
 0x30f   :  { %v2259_v12 = vpop.f32.mrb[35].mxu0 }
 0x310   :  { %v3130_v30 = vadd.f32 %v2257_v28, %v1050_v13  ;;  %v2260_v31 = vadd.f32 %v2259_v12, %v2258_v29 }
 0x312   :  { %1242 = vadd.xlane.f32.xlu1 %v1231_v32  ;;  %1220 = vadd.xlane.f32.xlu0 %v3130_v30  ;;  %v3135_v34 = vadd.f32 %v2260_v31, %v1050_v13  ;;  %v1232_v36 = vmul.f32 %v3130_v30, %v3130_v30 }
 0x314   :  { %v2261_v35 = vpop.f32.mrb[36].mxu0  ;;  %v1233_v50 = vmul.f32 %v3135_v34, %v3135_v34 }
 0x315   :  { %v2262_v38 = vpop.f32.mrb[37].mxu0 }
 0x316   :  { %v2263_v40 = vadd.f32 %v2262_v38, %v2261_v35  ;;  %v2264_v49 = vpop.f32.mrb[38].mxu0  ;;  %1222 = vadd.xlane.f32.xlu1 %v3135_v34  ;;  %1244 = vadd.xlane.f32.xlu0 %v1232_v36  ;;  %v3171_v36 = vrot.slane %v3107_v6, %v1330_v21 }
 0x317   :  { %v2265_v9 = vpop.f32.mrb[39].mxu0 }
 0x318   :  { %v3140_v20 = vadd.f32 %v2263_v40, %v1050_v13  ;;  %v2266_v41 = vadd.f32 %v2265_v9, %v2264_v49 }
 0x31a   :  { %1246 = vadd.xlane.f32.xlu1 %v1233_v50  ;;  %1224 = vadd.xlane.f32.xlu0 %v3140_v20  ;;  %v3145_v52 = vadd.f32 %v2266_v41, %v1050_v13  ;;  %v1234_v5 = vmul.f32 %v3140_v20, %v3140_v20 }
 0x31c   :  { %v1235_v15 = vmul.f32 %v3145_v52, %v3145_v52 }
 0x31e   :  { %1226 = vadd.xlane.f32.xlu1 %v3145_v52  ;;  %1248 = vadd.xlane.f32.xlu0 %v1234_v5 }
 0x322   :  { %1250 = vadd.xlane.f32.xlu1 %v1235_v15 }
 0x38f   :  { %v1213_v53 = vpop.xlane.xlu0 %1212 }
 0x390   :  { %v1252_v58 = vmul.f32 0.0078125, %v1213_v53 }
 0x392   :  { %v1268_v47 = vmul.f32 %v1252_v58, %v1252_v58  ;;  %v1284_v12 = vsub.f32 %v3112_v11, %v1252_v58 }
 0x393   :  { %v1239_v54 = vpop.xlane.xlu1 %1238  ;;  %v1215_v56 = vpop.xlane.xlu0 %1214 }
 0x394   :  { %v1253_v46 = vmul.f32 0.0078125, %v1215_v56  ;;  %v1261_v59 = vmul.f32 0.0078125, %v1239_v54 }
 0x396   :  { %v1269_v60 = vmul.f32 %v1253_v46, %v1253_v46  ;;  %v1285_v26 = vsub.f32 %v3114_v14, %v1253_v46 }
 0x397   :  { %v1217_v61 = vpop.xlane.xlu1 %1216  ;;  %v1237_v62 = vpop.xlane.xlu0 %1236 }
 0x398   :  { %v1277_v63 = vsub.f32 %v1261_v59, %v1269_v60  ;;  %v1254_v33 = vmul.f32 0.0078125, %v1217_v61  ;;  %v1260_v0 = vmul.f32 0.0078125, %v1237_v62 }
 0x39a   :  { %v1293_v44 = vadd.f32 1e-06, %v1277_v63  ;;  %v1276_v37 = vsub.f32 %v1260_v0, %v1268_v47  ;;  %v1270_v55 = vmul.f32 %v1254_v33, %v1254_v33  ;;  %v1286_v11 = vsub.f32 %v3120_v22, %v1254_v33 }
 0x39b   :  { %v1219_v1 = vpop.xlane.xlu1 %1218  ;;  %v1241_v2 = vpop.xlane.xlu0 %1240 }
 0x39c   :  { %2567 = vrsqrt.f32 %v1293_v44  ;;  %v1292_v3 = vadd.f32 1e-06, %v1276_v37  ;;  %v3152_v4 = vmul.f32 0.0078125, %v1219_v1  ;;  %v1262_v7 = vmul.f32 0.0078125, %v1241_v2 }
 0x39e   :  { %2569 = vrsqrt.f32 %v1292_v3  ;;  %v1278_v13 = vsub.f32 %v1262_v7, %v1270_v55  ;;  %v1271_v10 = vmul.f32 %v3152_v4, %v3152_v4  ;;  %v1287_v62 = vsub.f32 %v3125_v51, %v3152_v4 }
 0x39f   :  { %v1243_v8 = vpop.xlane.xlu1 %1242  ;;  %v1221_v39 = vpop.xlane.xlu0 %1220 }
 0x3a0   :  { %v1294_v25 = vadd.f32 1e-06, %v1278_v13  ;;  %v1263_v48 = vmul.f32 0.0078125, %v1243_v8  ;;  %v3156_v16 = vmul.f32 0.0078125, %v1221_v39 }
 0x3a2   :  { %2571 = vrsqrt.f32 %v1294_v25  ;;  %v1279_v17 = vsub.f32 %v1263_v48, %v1271_v10  ;;  %v1272_v23 = vmul.f32 %v3156_v16, %v3156_v16  ;;  %v1288_v51 = vsub.f32 %v3130_v30, %v3156_v16 }
 0x3a3   :  { %v1223_v18 = vpop.xlane.xlu1 %1222  ;;  %v1245_v19 = vpop.xlane.xlu0 %1244 }
 0x3a4   :  { %v1295_v43 = vadd.f32 1e-06, %v1279_v17  ;;  %v3161_v24 = vmul.f32 0.0078125, %v1223_v18  ;;  %v1264_v27 = vmul.f32 0.0078125, %v1245_v19 }
 0x3a6   :  { %v2568_v28 = vpop.eup %2567  ;;  %2573 = vrsqrt.f32 %v1295_v43  ;;  %v1280_v29 = vsub.f32 %v1264_v27, %v1272_v23  ;;  %v1273_v42 = vmul.f32 %v3161_v24, %v3161_v24  ;;  %v1289_v25 = vsub.f32 %v3135_v34, %v3161_v24 }
 0x3a7   :  { %v1309_v31 = vmul.f32 %v2568_v28, %v1285_v26  ;;  %v1247_v32 = vpop.xlane.xlu1 %1246  ;;  %v1225_v35 = vpop.xlane.xlu0 %1224 }
 0x3a8   :  { %v2570_v38 = vpop.eup %2569  ;;  %v1296_v40 = vadd.f32 1e-06, %v1280_v29  ;;  %v1265_v45 = vmul.f32 0.0078125, %v1247_v32  ;;  %v1258_v49 = vmul.f32 0.0078125, %v1225_v35 }
 0x3a9   :  { %v1321_v14 = vmul.f32 %v3166_v57, %v1309_v31  ;;  %v1308_v9 = vmul.f32 %v2570_v38, %v1284_v12 }
 0x3aa   :  { %2575 = vrsqrt.f32 %v1296_v40  ;;  %v1281_v41 = vsub.f32 %v1265_v45, %v1273_v42  ;;  %v1274_v56 = vmul.f32 %v1258_v49, %v1258_v49  ;;  %v1290_v19 = vsub.f32 %v3140_v20, %v1258_v49 }
 0x3ab   :  { %v1227_v50 = vpop.xlane.xlu1 %1226  ;;  %v1249_v5 = vpop.xlane.xlu0 %1248  ;;  %v3178_v15 = vadd.f32 %v3171_v36, %v1321_v14  ;;  %v1320_v6 = vmul.f32 %v3166_v57, %v1308_v9  ;;  %v2631_v42 = vmov 0.0  }
 0x3ac   :  { %v2572_v53 = vpop.eup %2571  ;;  %v1297_v54 = vadd.f32 1e-06, %v1281_v41  ;;  %v1259_v58 = vmul.f32 0.0078125, %v1227_v50  ;;  %v1266_v46 = vmul.f32 0.0078125, %v1249_v5  ;;  %2327 = vmatprep.subr.bf16.mxu1 %v2631_v42  ;;  %2347 = vmatprep.subr.bf16.mxu0 %v2631_v42 }
 0x3ad   :  { %v1341_v59 = vmul.f32 %v3178_v15, %v3178_v15  ;;  %v3184_v60 = vadd.f32 %v3171_v36, %v1320_v6  ;;  %v1310_v61 = vmul.f32 %v2572_v53, %v1286_v11  ;;  %2343 = vmatprep.mubr.msk.bf16.mxu1 %vm2632_vm0, %v2631_v42  ;;  %2363 = vmatprep.mubr.msk.bf16.mxu0 %vm2632_vm0, %v2631_v42 }
 0x3ae   :  { %2577 = vrsqrt.f32 %v1297_v54  ;;  %v1282_v22 = vsub.f32 %v1266_v46, %v1274_v56  ;;  %v1275_v44 = vmul.f32 %v1259_v58, %v1259_v58  ;;  %v1291_v27 = vsub.f32 %v3145_v52, %v1259_v58 }
 0x3af   :  { %v1251_v47 = vpop.xlane.xlu1 %1250  ;;  %1350 = vadd.xlane.f32.xlu1 %v1341_v59  ;;  %v1340_v63 = vmul.f32 %v3184_v60, %v3184_v60  ;;  %v1322_v33 = vmul.f32 %v3166_v57, %v1310_v61 }
 0x3b0   :  { %v2574_v0 = vpop.eup %2573  ;;  %v1298_v37 = vadd.f32 1e-06, %v1282_v22  ;;  %v1267_v55 = vmul.f32 0.0078125, %v1251_v47 }
 0x3b1   :  { %1348 = vadd.xlane.f32.xlu0 %v1340_v63  ;;  %v3192_v1 = vadd.f32 %v3171_v36, %v1322_v33  ;;  %v1311_v2 = vmul.f32 %v2574_v0, %v1287_v62 }
 0x3b2   :  { %2579 = vrsqrt.f32 %v1298_v37  ;;  %v1283_v3 = vsub.f32 %v1267_v55, %v1275_v44 }
 0x3b3   :  { %v1342_v4 = vmul.f32 %v3192_v1, %v3192_v1  ;;  %v1323_v7 = vmul.f32 %v3166_v57, %v1311_v2 }
 0x3b4   :  { %v2576_v13 = vpop.eup %2575  ;;  %v1299_v8 = vadd.f32 1e-06, %v1283_v3 }
 0x3b5   :  { %1352 = vadd.xlane.f32.xlu0 %v1342_v4  ;;  %v3200_v39 = vadd.f32 %v3171_v36, %v1323_v7  ;;  %v1312_v10 = vmul.f32 %v2576_v13, %v1288_v51 }
 0x3b6   :  { %2581 = vrsqrt.f32 %v1299_v8 }
 0x3b7   :  { %v1343_v48 = vmul.f32 %v3200_v39, %v3200_v39  ;;  %v1324_v30 = vmul.f32 %v3166_v57, %v1312_v10 }
 0x3b8   :  { %v2578_v16 = vpop.eup %2577 }
 0x3b9   :  { %1354 = vadd.xlane.f32.xlu1 %v1343_v48  ;;  %v3208_v17 = vadd.f32 %v3171_v36, %v1324_v30  ;;  %v1313_v18 = vmul.f32 %v2578_v16, %v1289_v25  ;;  %v2519_v16 = vld [vmem:[%s3340_s7] sm:$0xff]  }
 0x3ba   :  { %2348 = vmatpush3.bf16.msra.mxu0 %v2519_v16 }
 0x3bb   :  { %v1344_v21 = vmul.f32 %v3208_v17, %v3208_v17  ;;  %v1325_v43 = vmul.f32 %v3166_v57, %v1313_v18  ;;  %2349 = vmatprep.subr.bf16.mxu0 %v2631_v42  ;;  %v2521_v18 = vld [vmem:[%s3340_s7 + $0x10] sm:$0xff]  }
 0x3bc   :  { %v2580_v23 = vpop.eup %2579 }
 0x3bd   :  { %1356 = vadd.xlane.f32.xlu0 %v1344_v21  ;;  %v1337_v34 = vadd.f32 %v3171_v36, %v1325_v43  ;;  %v1314_v24 = vmul.f32 %v2580_v23, %v1290_v19  ;;  %v2522_v19 = vld [vmem:[%s3340_s7 + $0x18] sm:$0xff]   ;;  %v2523_v21 = vld [vmem:[%s3340_s7 + $0x20] sm:$0xff]  }
 0x3bf   :  { %v1345_v26 = vmul.f32 %v1337_v34, %v1337_v34  ;;  %v1326_v28 = vmul.f32 %v3166_v57, %v1314_v24 }
 0x3c0   :  { %v2582_v29 = vpop.eup %2581 }
 0x3c1   :  { %1358 = vadd.xlane.f32.xlu1 %v1345_v26  ;;  %v1338_v12 = vadd.f32 %v3171_v36, %v1326_v28  ;;  %v1315_v20 = vmul.f32 %v2582_v29, %v1291_v27 }
 0x3c3   :  { %v1346_v31 = vmul.f32 %v1338_v12, %v1338_v12  ;;  %v1327_v32 = vmul.f32 %v3166_v57, %v1315_v20 }
 0x3c5   :  { %1360 = vadd.xlane.f32.xlu0 %v1346_v31  ;;  %v1339_v35 = vadd.f32 %v3171_v36, %v1327_v32 }
 0x3c7   :  { %v1347_v38 = vmul.f32 %v1339_v35, %v1339_v35 }
 0x3c9   :  { %1362 = vadd.xlane.f32.xlu1 %v1347_v38  ;;  %v2525_v38 = vld [vmem:[%s3340_s7 + $0x30] sm:$0xff]  }
 0x43c   :  { %v1351_v52 = vpop.xlane.xlu1 %1350 }
 0x43d   :  { %v1365_v40 = vmax.f32 %v1351_v52, 1e-24  ;;  %v2526_v52 = vld [vmem:[%s3340_s7 + $0x38] sm:$0xff]  }
 0x43e   :  { %v1349_v57 = vpop.xlane.xlu0 %1348 }
 0x43f   :  { %2583 = vrsqrt.f32 %v1365_v40  ;;  %v1364_v45 = vmax.f32 %v1349_v57, 1e-24 }
 0x441   :  { %2585 = vrsqrt.f32 %v1364_v45 }
 0x442   :  { %v1353_v36 = vpop.xlane.xlu0 %1352 }
 0x443   :  { %v1366_v49 = vmax.f32 %v1353_v36, 1e-24 }
 0x445   :  { %2587 = vrsqrt.f32 %v1366_v49 }
 0x446   :  { %v1355_v14 = vpop.xlane.xlu1 %1354 }
 0x447   :  { %v1367_v9 = vmax.f32 %v1355_v14, 1e-24 }
 0x449   :  { %v2584_v41 = vpop.eup %2583  ;;  %2589 = vrsqrt.f32 %v1367_v9 }
 0x44a   :  { %v1357_v11 = vpop.xlane.xlu0 %1356  ;;  %v1381_v6 = vmul.f32 %v2584_v41, %v3178_v15 }
 0x44b   :  { %v2586_v50 = vpop.eup %2585  ;;  %v1368_v5 = vmax.f32 %v1357_v11, 1e-24 }
 0x44c   :  { %v1380_v53 = vmul.f32 %v2586_v50, %v3184_v60 }
 0x44d   :  { %2591 = vrsqrt.f32 %v1368_v5 }
 0x44e   :  { %v3228_v54 = vpack.c.bf16 %v1381_v6, %v1380_v53  ;;  %v1359_v56 = vpop.xlane.xlu1 %1358 }
 0x44f   :  { %v1369_v58 = vmax.f32 %v1359_v56, 1e-24  ;;  %v2588_v46 = vpop.eup %2587 }
 0x450   :  { %1392 = vst [vmem:[#allocation2] sm:$0xff] %v3228_v54  ;;  %v1382_v62 = vmul.f32 %v2588_v46, %v3192_v1  ;;  %v2528_v46 = vld [vmem:[%s3340_s7 + $0x48] sm:$0xff]  }
 0x451   :  { %2593 = vrsqrt.f32 %v1369_v58  ;;  %v2527_v58 = vld [vmem:[%s3340_s7 + $0x40] sm:$0xff]  }
 0x452   :  { %v1361_v59 = vpop.xlane.xlu0 %1360 }
 0x453   :  { %v2590_v61 = vpop.eup %2589  ;;  %v1370_v22 = vmax.f32 %v1361_v59, 1e-24  ;;  %v2529_v59 = vld [vmem:[%s3340_s7 + $0x50] sm:$0xff]  }
 0x454   :  { %v1383_v47 = vmul.f32 %v2590_v61, %v3200_v39  ;;  %v2530_v61 = vld [vmem:[%s3340_s7 + $0x58] sm:$0xff]  }
 0x455   :  { %2595 = vrsqrt.f32 %v1370_v22 }
 0x456   :  { %v3233_v63 = vpack.c.bf16 %v1383_v47, %v1382_v62  ;;  %v1363_v15 = vpop.xlane.xlu1 %1362 }
 0x457   :  { %v1371_v60 = vmax.f32 %v1363_v15, 1e-24  ;;  %v2592_v33 = vpop.eup %2591 }
 0x458   :  { %1393 = vst [vmem:[#allocation2 + $0x8] sm:$0xff] %v3233_v63  ;;  %v1384_v44 = vmul.f32 %v2592_v33, %v3208_v17  ;;  %v2520_v17 = vld [vmem:[%s3340_s7 + $0x8] sm:$0xff]  }
 0x459   :  { %2597 = vrsqrt.f32 %v1371_v60  ;;  %2350 = vmatpush3.bf16.msra.mxu0 %v2520_v17 }
 0x45a   :  { %2351 = vmatprep.subr.bf16.mxu0 %v2631_v42 }
 0x45b   :  { %v2594_v0 = vpop.eup %2593 }
 0x45c   :  { %v1385_v37 = vmul.f32 %v2594_v0, %v1337_v34 }
 0x45d   :  { %2352 = vmatpush3.bf16.msra.mxu0 %v2521_v18 }
 0x45e   :  { %v1390_v55 = vpack.c.bf16 %v1385_v37, %v1384_v44  ;;  %2353 = vmatprep.subr.bf16.mxu0 %v2631_v42 }
 0x45f   :  { %v2596_v1 = vpop.eup %2595 }
 0x460   :  { %1394 = vst [vmem:[#allocation2 + $0x10] sm:$0xff] %v1390_v55  ;;  %v1386_v3 = vmul.f32 %v2596_v1, %v1338_v12 }
 0x461   :  { %2354 = vmatpush3.bf16.msra.mxu0 %v2522_v19 }
 0x462   :  { %2355 = vmatprep.subr.bf16.mxu0 %v2631_v42 }
 0x463   :  { %v2598_v2 = vpop.eup %2597 }
 0x464   :  { %v1387_v51 = vmul.f32 %v2598_v2, %v1339_v35  ;;  %v2524_v35 = vld [vmem:[%s3340_s7 + $0x28] sm:$0xff]  }
 0x465   :  { %2356 = vmatpush3.bf16.msra.mxu0 %v2523_v21 }
 0x466   :  { %v1391_v4 = vpack.c.bf16 %v1387_v51, %v1386_v3  ;;  %2357 = vmatprep.subr.bf16.mxu0 %v2631_v42 }
 0x468   :  { %1395 = vst [vmem:[#allocation2 + $0x18] sm:$0xff] %v1391_v4 }
 0x469   :  { %2358 = vmatpush3.bf16.msra.mxu0 %v2524_v35 }
 0x46a   :  { %2359 = vmatprep.subr.bf16.mxu0 %v2631_v42 }
 0x46d   :  { %2360 = vmatpush3.bf16.msra.mxu0 %v2525_v38 }
 0x46e   :  { %2361 = vmatprep.subr.bf16.mxu0 %v2631_v42 }
 0x46f   :  { %v1403_v7 = vld [vmem:[%s1402_s13] sm:$0xff]  ;;  %s1453_s13 = sshra.s32 %s2116_s12, 4  ;;  %s2120_s12 = sadd.s32 32, %s2119_s10 }
 0x470   :  { %2328 = vmatpush3.bf16.xpose.msra.mxu1 %v1403_v7  ;;  %v1412_v13 = vld [vmem:[%s1411_s17] sm:$0xff]  ;;  %s2037_s14 = sshll.u32 %s1453_s13, 3  ;;  %s1471_s13 = sshra.s32 %s2120_s12, 4 }
 0x471   :  { %2329 = vmatprep.subr.bf16.mxu1 %v2631_v42  ;;  %v1421_v8 = vld [vmem:[%s1420_s21] sm:$0xff]  ;;  %s1456_s17 = scalar_lea.vmem [#allocation2], %s2037_s14  ;;  %2362 = vmatpush3.bf16.msra.mxu0 %v2526_v52  ;;  %s2043_s14 = sshll.u32 %s1471_s13, 3 }
 0x472   :  { %v1430_v39 = vld [vmem:[%s1429_s5] sm:$0xff]  ;;  %2367 = vmatprep.subr.bf16.mxu0 %v2631_v42  ;;  %s1492_s5 = scalar_lea.vmem [#allocation2], %s2049_s24  ;;  %s2059_s10 = sld [smem:[#allocation5 + $0xe]] }
 0x473   :  { %v1439_v10 = vld [vmem:[%s1438_s30] sm:$0xff]  ;;  %s2130_s12 = sadd.s32 32, %s2129_s9 }
 0x474   :  { %v1448_v25 = vld [vmem:[%s1447_s2] sm:$0xff]  ;;  %s2121_s2 = sshll.u32 %s2044_s11, 4  ;;  %s2055_s11 = sshll.u32 %s1507_s29, 3 }
 0x475   :  { %v1457_v48 = vld [vmem:[%s1456_s17] sm:$0xff]  ;;  %s2122_s15 = sadd.s32 32, %s2121_s2  ;;  %s1474_s17 = scalar_lea.vmem [#allocation2], %s2043_s14 }
 0x476   :  { %v1466_v30 = vld [vmem:[%s1465_s19] sm:$0xff]  ;;  %s1480_s16 = sshra.s32 %s2122_s15, 4  ;;  %s2050_s19 = sld [smem:[#allocation5 + $0xb]] }
 0x477   :  { %v1475_v41 = vld [vmem:[%s1474_s17] sm:$0xff]  ;;  %s2046_s3 = sshll.u32 %s1480_s16, 3  ;;  %s1516_s13 = sshra.s32 %s2130_s12, 4 }
 0x478   :  { %2330 = vmatpush3.bf16.xpose.msra.mxu1 %v1412_v13  ;;  %s1483_s21 = scalar_lea.vmem [#allocation2], %s2046_s3  ;;  %v1493_v50 = vld [vmem:[%s1492_s5] sm:$0xff]  ;;  %s1510_s2 = scalar_lea.vmem [#allocation2], %s2055_s11  ;;  %v2532_v13 = vld [vmem:[%s3340_s7 + $0x68] sm:$0xff]  }
 0x479   :  { %2331 = vmatprep.subr.bf16.mxu1 %v2631_v42  ;;  %v1484_v11 = vld [vmem:[%s1483_s21] sm:$0xff]  ;;  %s2131_s0 = sshll.u32 %s2059_s10, 4  ;;  %s2062_s14 = sld [smem:[#allocation5 + $0xf]] }
 0x47a   :  { %v1511_v6 = vld [vmem:[%s1510_s2] sm:$0xff]  ;;  %s2058_s15 = sshll.u32 %s1516_s13, 3  ;;  %s2132_s16 = sadd.s32 32, %s2131_s0 }
 0x47b   :  { %s1525_s17 = sshra.s32 %s2132_s16, 4  ;;  %s1519_s18 = scalar_lea.vmem [#allocation2], %s2058_s15  ;;  %v2531_v7 = vld [vmem:[%s3340_s7 + $0x60] sm:$0xff]  }
 0x47c   :  { %s2125_s22 = sshll.u32 %s2050_s19, 4  ;;  %v1520_v53 = vld [vmem:[%s1519_s18] sm:$0xff]  ;;  %s2061_s3 = sshll.u32 %s1525_s17, 3 }
 0x47d   :  { %s2126_s25 = sadd.s32 32, %s2125_s22  ;;  %s1528_s21 = scalar_lea.vmem [#allocation2], %s2061_s3 }
 0x47e   :  { %s1498_s4 = sshra.s32 %s2126_s25, 4 }
 0x47f   :  { %s2052_s27 = sshll.u32 %s1498_s4, 3  ;;  %s2133_s19 = sshll.u32 %s2062_s14, 4 }
 0x480   :  { %2332 = vmatpush3.bf16.xpose.msra.mxu1 %v1421_v8  ;;  %s1501_s30 = scalar_lea.vmem [#allocation2], %s2052_s27  ;;  %s2134_s20 = sadd.s32 32, %s2133_s19  ;;  %v2533_v8 = vld [vmem:[%s3340_s7 + $0x70] sm:$0xff]  }
 0x481   :  { %2333 = vmatprep.subr.bf16.mxu1 %v2631_v42  ;;  %v1502_v5 = vld [vmem:[%s1501_s30] sm:$0xff]  ;;  %s1534_s1 = sshra.s32 %s2134_s20, 4 }
 0x482   :  { %s2064_s22 = sshll.u32 %s1534_s1, 3 }
 0x483   :  { %s1537_s23 = scalar_lea.vmem [#allocation2], %s2064_s22 }
 0x484   :  { %v1538_v56 = vld [vmem:[%s1537_s23] sm:$0xff] }
 0x488   :  { %2334 = vmatpush3.bf16.xpose.msra.mxu1 %v1430_v39  ;;  %v2534_v39 = vld [vmem:[%s3340_s7 + $0x78] sm:$0xff]  }
 0x489   :  { %2335 = vmatprep.subr.bf16.mxu1 %v2631_v42 }
 0x490   :  { %2336 = vmatpush3.bf16.xpose.msra.mxu1 %v1439_v10 }
 0x491   :  { %2337 = vmatprep.subr.bf16.mxu1 %v2631_v42 }
 0x498   :  { %2338 = vmatpush3.bf16.xpose.msra.mxu1 %v1448_v25 }
 0x499   :  { %2339 = vmatprep.subr.bf16.mxu1 %v2631_v42 }
 0x4a0   :  { %2340 = vmatpush3.bf16.xpose.msra.mxu1 %v1457_v48 }
 0x4a1   :  { %2341 = vmatprep.subr.bf16.mxu1 %v2631_v42 }
 0x4a8   :  { %2342 = vmatpush3.bf16.xpose.msra.mxu1 %v1466_v30 }
 0x4a9   :  { %2387 = vmatprep.subr.bf16.mxu1 %v2631_v42 }
 0x4af   :  { %2344 = vmatmul.mubr.bf16.vlgmr.msra.gmra.mrb[32].mxu1 %v3228_v54  ;;  %v1529_v54 = vld [vmem:[%s1528_s21] sm:$0xff] }
 0x4b0   :  { %2403 = vmatprep.mubr.msk.bf16.mxu1 %vm2632_vm0, %v2631_v42  ;;  %2388 = vmatpush3.bf16.msra.mxu1 %v2527_v58 }
 0x4b1   :  { %2389 = vmatprep.subr.bf16.mxu1 %v2631_v42 }
 0x4b4   :  { %2390 = vmatpush3.bf16.msra.mxu1 %v2528_v46 }
 0x4b5   :  { %2391 = vmatprep.subr.bf16.mxu1 %v2631_v42 }
 0x4b8   :  { %2392 = vmatpush3.bf16.msra.mxu1 %v2529_v59 }
 0x4b9   :  { %2393 = vmatprep.subr.bf16.mxu1 %v2631_v42 }
 0x4bc   :  { %2394 = vmatpush3.bf16.msra.mxu1 %v2530_v61 }
 0x4bd   :  { %2395 = vmatprep.subr.bf16.mxu1 %v2631_v42 }
 0x4c0   :  { %2396 = vmatpush3.bf16.msra.mxu1 %v2531_v7 }
 0x4c1   :  { %2397 = vmatprep.subr.bf16.mxu1 %v2631_v42 }
 0x4c4   :  { %2398 = vmatpush3.bf16.msra.mxu1 %v2532_v13 }
 0x4c5   :  { %2399 = vmatprep.subr.bf16.mxu1 %v2631_v42 }
 0x4c8   :  { %2400 = vmatpush3.bf16.msra.mxu1 %v2533_v8 }
 0x4c9   :  { %2401 = vmatprep.subr.bf16.mxu1 %v2631_v42 }
 0x4cc   :  { %2402 = vmatpush3.bf16.msra.mxu1 %v2534_v39 }
 0x582   :  { %v1583_v43 = vpop.f32.mrb[32].mxu1 }
 0x583   :  { %v1590_v23 = vmul.f32 14.285714, %v1583_v43  ;;  %v2345_v34 = vpop.f32.mrb[33].mxu1 }
 0x584   :  { %v1586_v24 = vpop.f32.mrb[34].mxu1 }
 0x585   :  { %v2065_v27 = vadd.f32 -14.285714, %v1590_v23  ;;  %v1591_v26 = vmul.f32 14.285714, %v1586_v24  ;;  %v2346_v28 = vpop.f32.mrb[35].mxu1 }
 0x587   :  { %v1594_v29 = vmul.f32 1.442695, %v2065_v27  ;;  %v2066_v12 = vadd.f32 -14.285714, %v1591_v26 }
 0x589   :  { %2599 = vpow2.f32 %v1594_v29  ;;  %v1596_v20 = vmul.f32 1.442695, %v2066_v12 }
 0x58b   :  { %2601 = vpow2.f32 %v1596_v20 }
 0x593   :  { %v2600_v31 = vpop.eup %2599 }
 0x594   :  { %1598 = vadd.xlane.f32.xlu0 %v2600_v31 }
 0x595   :  { %v2602_v32 = vpop.eup %2601 }
 0x596   :  { %1600 = vadd.xlane.f32.xlu1 %v2602_v32 }
 0x621   :  { %v1599_v40 = vpop.xlane.xlu0 %1598 }
 0x622   :  { %2603 = vrcp.f32 %v1599_v40 }
 0x623   :  { %v1601_v57 = vpop.xlane.xlu1 %1600 }
 0x624   :  { %2605 = vrcp.f32 %v1601_v57 }
 0x62c   :  { %v2604_v45 = vpop.eup %2603 }
 0x62d   :  { %v1604_v49 = vmul.f32 %v2604_v45, %v2600_v31 }
 0x62e   :  { %v2606_v36 = vpop.eup %2605 }
 0x62f   :  { %v1605_v14 = vmul.f32 %v2606_v36, %v2602_v32 }
 0x631   :  { %v1606_v9 = vpack.c.bf16 %v1605_v14, %v1604_v49 }
 0x633   :  { %2364 = vmatmul.mubr.bf16.vlgmr.msra.gmra.mrb[40].mxu0 %v1606_v9 }
 0x634   :  { %2368 = vmatpush3.bf16.xpose.msra.mxu0 %v1475_v41  ;;  %2383 = vmatprep.mubr.msk.bf16.mxu0 %vm2632_vm0, %v2631_v42 }
 0x635   :  { %2369 = vmatprep.subr.bf16.mxu0 %v2631_v42 }
 0x63c   :  { %2370 = vmatpush3.bf16.xpose.msra.mxu0 %v1484_v11 }
 0x63d   :  { %2371 = vmatprep.subr.bf16.mxu0 %v2631_v42 }
 0x644   :  { %2372 = vmatpush3.bf16.xpose.msra.mxu0 %v1493_v50 }
 0x645   :  { %2373 = vmatprep.subr.bf16.mxu0 %v2631_v42 }
 0x64c   :  { %2374 = vmatpush3.bf16.xpose.msra.mxu0 %v1502_v5 }
 0x64d   :  { %2375 = vmatprep.subr.bf16.mxu0 %v2631_v42 }
 0x654   :  { %2376 = vmatpush3.bf16.xpose.msra.mxu0 %v1511_v6 }
 0x655   :  { %2377 = vmatprep.subr.bf16.mxu0 %v2631_v42 }
 0x65c   :  { %2378 = vmatpush3.bf16.xpose.msra.mxu0 %v1520_v53 }
 0x65d   :  { %2379 = vmatprep.subr.bf16.mxu0 %v2631_v42 }
 0x664   :  { %2380 = vmatpush3.bf16.xpose.msra.mxu0 %v1529_v54 }
 0x665   :  { %2381 = vmatprep.subr.bf16.mxu0 %v2631_v42 }
 0x66c   :  { %2382 = vmatpush3.bf16.xpose.msra.mxu0 %v1538_v56 }
 0x673   :  { %2384 = vmatmul.mubr.bf16.vlgmr.msra.gmra.mrb[44].mxu0 %v3233_v63 }
 0x706   :  { %v1705_v22 = vpop.f32.mrb[40].mxu0 }
 0x707   :  { %1712 = vst [vmem:[%s3341_s8] sm:$0xff] %v1705_v22  ;;  %v2365_v62 = vpop.f32.mrb[41].mxu0 }
 0x708   :  { %v1708_v47 = vpop.f32.mrb[42].mxu0 }
 0x709   :  { %1713 = vst [vmem:[%s3341_s8 + $0x8] sm:$0xff] %v1708_v47  ;;  %v2366_v63 = vpop.f32.mrb[43].mxu0 }
 0x746   :  { %v1757_v15 = vpop.f32.mrb[44].mxu0 }
 0x747   :  { %v1764_v60 = vmul.f32 14.285714, %v1757_v15  ;;  %v2385_v33 = vpop.f32.mrb[45].mxu0 }
 0x748   :  { %v1760_v0 = vpop.f32.mrb[46].mxu0 }
 0x749   :  { %v2075_v44 = vadd.f32 -14.285714, %v1764_v60  ;;  %v1765_v37 = vmul.f32 14.285714, %v1760_v0  ;;  %v2386_v55 = vpop.f32.mrb[47].mxu0 }
 0x74b   :  { %v1768_v1 = vmul.f32 1.442695, %v2075_v44  ;;  %v2076_v2 = vadd.f32 -14.285714, %v1765_v37 }
 0x74d   :  { %2607 = vpow2.f32 %v1768_v1  ;;  %v1770_v3 = vmul.f32 1.442695, %v2076_v2 }
 0x74f   :  { %2609 = vpow2.f32 %v1770_v3 }
 0x757   :  { %v2608_v51 = vpop.eup %2607 }
 0x758   :  { %1772 = vadd.xlane.f32.xlu0 %v2608_v51 }
 0x759   :  { %v2610_v4 = vpop.eup %2609 }
 0x75a   :  { %1774 = vadd.xlane.f32.xlu1 %v2610_v4 }
 0x7e5   :  { %v1773_v10 = vpop.xlane.xlu0 %1772 }
 0x7e6   :  { %2611 = vrcp.f32 %v1773_v10 }
 0x7e7   :  { %v1775_v25 = vpop.xlane.xlu1 %1774 }
 0x7e8   :  { %2613 = vrcp.f32 %v1775_v25 }
 0x7f0   :  { %v2612_v48 = vpop.eup %2611 }
 0x7f1   :  { %v1778_v16 = vmul.f32 %v2612_v48, %v2608_v51 }
 0x7f2   :  { %v2614_v30 = vpop.eup %2613 }
 0x7f3   :  { %v1779_v17 = vmul.f32 %v2614_v30, %v2610_v4 }
 0x7f5   :  { %v1780_v18 = vpack.c.bf16 %v1779_v17, %v1778_v16 }
 0x7f7   :  { %2404 = vmatmul.mubr.bf16.vlgmr.msra.gmra.mrb[36].mxu1 %v1780_v18 }
 0x8ca   :  { %v1880_v19 = vpop.f32.mrb[36].mxu1 }
 0x8cb   :  { %2101 = vst [vmem:[%s3341_s8 + $0x10] sm:$0xff] %v1880_v19  ;;  %v2405_v21 = vpop.f32.mrb[37].mxu1 }
 0x8cc   :  { %v1883_v43 = vpop.f32.mrb[38].mxu1 }
 0x8cd   :  { %2102 = vst [vmem:[%s3341_s8 + $0x18] sm:$0xff] %v1883_v43  ;;  %v2406_v42 = vpop.f32.mrb[39].mxu1 }

</bundles_post_ra>
